<compile_context>
chip_gen: v6e
topology: v6e:2x2x1
jax: 0.10.0
libtpu: 0.0.40
codegen_flags: <defaults>
</compile_context>

<pallas_src>
from functools import partial
import math

import jax
import jax.numpy as jnp
from jax import lax
from jax.experimental import pallas as pl
from jax.experimental.pallas import tpu as pltpu

_EPS = 1e-6
_SQRT_HALF = 0.7071067811865476
_VMEM_LIMIT = 32 * 1024 * 1024   # fits v5e/v6e/v7x (v7x physical VMEM is 64 MiB)


# ------------------------------ small helpers -------------------------------

def _erf(x):
    # Abramowitz & Stegun 7.1.26 rational erf, |error| < 1.5e-7 -> exact-GELU fidelity,
    # built only from exp/div/mul/where so it lowers cleanly in Mosaic.
    a1, a2, a3, a4, a5 = (0.254829592, -0.284496736, 1.421413741,
                          -1.453152027, 1.061405429)
    p = 0.3275911
    ax = jnp.abs(x)
    t = 1.0 / (1.0 + p * ax)
    poly = ((((a5 * t + a4) * t + a3) * t + a2) * t + a1) * t
    y = 1.0 - poly * jnp.exp(-ax * ax)
    return jnp.where(x >= 0, y, -y)


def _gelu_exact(x):
    # PyTorch nn.GELU() default = exact erf GELU.
    return 0.5 * x * (1.0 + _erf(x * _SQRT_HALF))


def _token_tile(total, cap=512):
    # Largest power-of-two tile (<= cap) dividing `total`; fall back to the full extent.
    t = math.gcd(total, cap)
    return t if (t % 8 == 0) else total


# ----------------------------- Pallas kernels ------------------------------

def stem_kernel(p_ref, w_ref, b_ref, g_ref, beta_ref, o_ref):
    # Fused patch-matmul (bf16 MXU operands, f32 accumulation) + bias + LayerNorm.
    # One lane-dense token tile in, one lane-dense token tile out.
    x = jnp.dot(p_ref[...], w_ref[...], preferred_element_type=jnp.float32) + b_ref[...]
    mu = jnp.mean(x, axis=-1, keepdims=True)
    var = jnp.mean(jnp.square(x - mu), axis=-1, keepdims=True)
    xn = (x - mu) * lax.rsqrt(var + _EPS)
    o_ref[...] = (xn * g_ref[...] + beta_ref[...]).astype(o_ref.dtype)


def convnext_block_kernel(x_ref, dww_ref, dwb_ref, lng_ref, lnb_ref,
                          w1_ref, b1_ref, w2_ref, b2_ref, gamma_ref,
                          o_ref, xpad_ref, dwtok_ref, *, H, W, K):
    # Fully fused ConvNeXt block for one image per grid step:
    #   zero-halo assembly -> depthwise KxK conv -> LayerNorm -> Linear(C,4C)
    #   -> GELU(erf) -> Linear(4C,C) -> layer-scale -> + residual
    # All kernel I/O is lane-dense token layout (H*W, C).
    pad = (K - 1) // 2
    C = x_ref.shape[-1]

    # In-kernel zero padding: the halo is just zeros at the image border, so no
    # jnp.pad / extra HBM pass in the wrapper. Image rows are written straight
    # from the token-layout input (no reshape needed).
    xpad_ref[...] = jnp.zeros_like(xpad_ref)
    for y in range(H):
        xpad_ref[pad + y, pad:pad + W, :] = x_ref[y * W:(y + 1) * W, :].astype(jnp.float32)

    # Depthwise KxK conv with f32 accumulation. Taps are loaded directly from the
    # VMEM scratch (C=128 keeps them lane-aligned) and accumulated row-by-row into
    # a token-layout scratch so the MLP below needs no in-kernel reshape.
    # TODO(synk): for large feature maps, grid over output rows and/or use pltpu.roll
    #             for the column shifts instead of fully unrolling H*K*K taps.
    bias = dwb_ref[...]
    for y in range(H):
        acc = jnp.zeros((W, C), jnp.float32) + bias
        for i in range(K):
            for j in range(K):
                acc = acc + (xpad_ref[y + i, j:j + W, :]
                             * dww_ref[i * K + j:i * K + j + 1, :])
        dwtok_ref[y * W:(y + 1) * W, :] = acc

    # LayerNorm (f32 stats) -> MLP (bf16 MXU operands, f32 accumulation).
    t = dwtok_ref[...]
    mu = jnp.mean(t, axis=-1, keepdims=True)
    var = jnp.mean(jnp.square(t - mu), axis=-1, keepdims=True)
    xn = (t - mu) * lax.rsqrt(var + _EPS)
    xn = xn * lng_ref[...] + lnb_ref[...]
    h = jnp.dot(xn.astype(jnp.bfloat16), w1_ref[...],
                preferred_element_type=jnp.float32) + b1_ref[...]
    h = _gelu_exact(h)
    yv = jnp.dot(h.astype(jnp.bfloat16), w2_ref[...],
                 preferred_element_type=jnp.float32) + b2_ref[...]
    res = x_ref[...].astype(jnp.float32)
    o_ref[...] = res + gamma_ref[...] * yv


# ----------------------------- wrapper / model ------------------------------

def init_params(key, c_in=3, dim=128, patch=4, k=7, k_pad=128):
    """Single-stage ConvNeXt-style backbone parameters.

    dim is a multiple of 128 so the channel axis is lane-dense. The stem
    contraction dim is zero-padded from patch*patch*c_in to k_pad (full-width
    MXU pushes) without changing semantics.
    dw_w layout: dw_w[i*k + j, c] == torch_weight[c, 0, i, j] for a PyTorch
    depthwise Conv2d weight of shape (C, 1, k, k).
    """
    ks = jax.random.split(key, 4)
    s = 0.02
    k_real = patch * patch * c_in
    assert k_pad >= k_real
    stem_w = jax.random.normal(ks[0], (k_real, dim), jnp.float32) * s
    stem_w = jnp.pad(stem_w, ((0, k_pad - k_real), (0, 0)))   # zero rows beyond k_real
    return {
        "stem_w": stem_w,                                    # (k_pad, dim)
        "stem_b": jnp.zeros((1, dim), jnp.float32),
        "stem_ln_g": jnp.ones((1, dim), jnp.float32),
        "stem_ln_b": jnp.zeros((1, dim), jnp.float32),
        "dw_w": jax.random.normal(ks[1], (k * k, dim), jnp.float32) * s,
        "dw_b": jnp.zeros((1, dim), jnp.float32),
        "blk_ln_g": jnp.ones((1, dim), jnp.float32),
        "blk_ln_b": jnp.zeros((1, dim), jnp.float32),
        "w1": jax.random.normal(ks[2], (dim, 4 * dim), jnp.float32) * s,
        "b1": jnp.zeros((1, 4 * dim), jnp.float32),
        "w2": jax.random.normal(ks[3], (4 * dim, dim), jnp.float32) * s,
        "b2": jnp.zeros((1, dim), jnp.float32),
        "ls_gamma": jnp.full((1, dim), 1e-6, jnp.float32),   # ConvNeXt layer-scale init
    }


def backbone_model(x_nchw, params, *, patch=4, k=7):
    """The wrapped `model`: returns a tuple of NCHW feature maps."""
    N, Cin, H, W = x_nchw.shape
    assert H % patch == 0 and W % patch == 0, "H/W must be multiples of the patch size"
    dim = params["stem_w"].shape[1]
    k_pad = params["stem_w"].shape[0]
    k_real = patch * patch * Cin
    Hs, Ws = H // patch, W // patch
    T_img = Hs * Ws
    T = N * T_img
    assert T_img % 8 == 0, "tokens per image must be a multiple of 8 for the block tiling"

    # --- patchify: ONE fused transpose folds NCHW->NHWC + 4x4 window extraction;
    #     contraction dim zero-padded to k_pad for full-width MXU pushes -------
    patches = (x_nchw.astype(jnp.float32)
               .reshape(N, Cin, Hs, patch, Ws, patch)
               .transpose(0, 2, 4, 3, 5, 1)
               .reshape(T, k_real))
    patches = jnp.pad(patches, ((0, 0), (0, k_pad - k_real))).astype(jnp.bfloat16)

    # --- stem: fused patch-matmul + LayerNorm, gridded over token tiles -------
    tile_t = _token_tile(T)
    feat_tok = pl.pallas_call(
        stem_kernel,
        out_shape=jax.ShapeDtypeStruct((T, dim), jnp.bfloat16),
        grid_spec=pltpu.PrefetchScalarGridSpec(
            num_scalar_prefetch=0,
            grid=(T // tile_t,),
            in_specs=[
                pl.BlockSpec((tile_t, k_pad), lambda i: (i, 0)),
                pl.BlockSpec((k_pad, dim), lambda i: (0, 0)),    # weights stay resident
                pl.BlockSpec((1, dim), lambda i: (0, 0)),
                pl.BlockSpec((1, dim), lambda i: (0, 0)),
                pl.BlockSpec((1, dim), lambda i: (0, 0)),
            ],
            out_specs=pl.BlockSpec((tile_t, dim), lambda i: (i, 0)),
        ),
        compiler_params=pltpu.CompilerParams(
            dimension_semantics=("parallel",),        # independent token tiles
            vmem_limit_bytes=_VMEM_LIMIT),
    )(patches, params["stem_w"].astype(jnp.bfloat16), params["stem_b"],
      params["stem_ln_g"], params["stem_ln_b"])

    # --- fused ConvNeXt block: one image per grid step ------------------------
    Hp, Wp = Hs + k - 1, Ws + k - 1
    flops = 2 * T * k * k * dim + 2 * 2 * T * dim * (4 * dim)
    bytes_accessed = 2 * T * dim + 4 * T * dim + 2 * 2 * dim * (4 * dim) + 4 * (k * k + 8) * dim
    out_tok = pl.pallas_call(
        partial(convnext_block_kernel, H=Hs, W=Ws, K=k),
        out_shape=jax.ShapeDtypeStruct((T, dim), jnp.float32),
        grid_spec=pltpu.PrefetchScalarGridSpec(
            num_scalar_prefetch=0,
            grid=(N,),
            in_specs=[
                pl.BlockSpec((T_img, dim), lambda n: (n, 0)),        # image tokens (+residual)
                pl.BlockSpec((k * k, dim), lambda n: (0, 0)),        # dw weights resident
                pl.BlockSpec((1, dim), lambda n: (0, 0)),
                pl.BlockSpec((1, dim), lambda n: (0, 0)),
                pl.BlockSpec((1, dim), lambda n: (0, 0)),
                pl.BlockSpec((dim, 4 * dim), lambda n: (0, 0)),
                pl.BlockSpec((1, 4 * dim), lambda n: (0, 0)),
                pl.BlockSpec((4 * dim, dim), lambda n: (0, 0)),
                pl.BlockSpec((1, dim), lambda n: (0, 0)),
                pl.BlockSpec((1, dim), lambda n: (0, 0)),
            ],
            out_specs=pl.BlockSpec((T_img, dim), lambda n: (n, 0)),
            scratch_shapes=[
                pltpu.VMEM((Hp, Wp, dim), jnp.float32),   # zero-padded image buffer
                pltpu.VMEM((T_img, dim), jnp.float32),    # dwconv output tokens
            ],
        ),
        compiler_params=pltpu.CompilerParams(
            dimension_semantics=("parallel",),   # images independent -> both v7x TCs used
            vmem_limit_bytes=_VMEM_LIMIT),
        cost_estimate=pl.CostEstimate(
            flops=int(flops), transcendentals=int(T * 4 * dim),
            bytes_accessed=int(bytes_accessed)),
    )(feat_tok, params["dw_w"], params["dw_b"],
      params["blk_ln_g"], params["blk_ln_b"],
      params["w1"].astype(jnp.bfloat16), params["b1"],
      params["w2"].astype(jnp.bfloat16), params["b2"],
      params["ls_gamma"])

    # Back to NCHW only at the true model boundary.
    out = out_tok.reshape(N, Hs, Ws, dim).transpose(0, 3, 1, 2)
    return (out,)


def convnext_forward(x_nchw, params):
    """ConvNext.forward: x = self.model(x)[0]"""
    return backbone_model(x_nchw, params)[0]


# --------------------------- pure-JAX reference ------------------------------

def reference_model(x_nchw, params, *, patch=4, k=7):
    """Pure-JAX reference of the same backbone (mirrors the kernels' bf16 matmul policy)."""
    N, Cin, H, W = x_nchw.shape
    dim = params["stem_w"].shape[1]
    Hs, Ws = H // patch, W // patch
    k_real = patch * patch * Cin

    x = jnp.transpose(x_nchw, (0, 2, 3, 1)).astype(jnp.float32)
    patches = (x.reshape(N, Hs, patch, Ws, patch, Cin)
               .transpose(0, 1, 3, 2, 4, 5)
               .reshape(N * Hs * Ws, k_real))
    tok = jnp.dot(patches.astype(jnp.bfloat16),
                  params["stem_w"][:k_real].astype(jnp.bfloat16),
                  preferred_element_type=jnp.float32) + params["stem_b"]
    mu = tok.mean(-1, keepdims=True)
    var = jnp.square(tok - mu).mean(-1, keepdims=True)
    tok = (tok - mu) * lax.rsqrt(var + _EPS)
    tok = tok * params["stem_ln_g"] + params["stem_ln_b"]
    feat = tok.astype(jnp.bfloat16).astype(jnp.float32).reshape(N, Hs, Ws, dim)

    pad = (k - 1) // 2
    xp = jnp.pad(feat, ((0, 0), (pad, pad), (pad, pad), (0, 0)))
    dw = jnp.zeros_like(feat) + params["dw_b"]
    for i in range(k):
        for j in range(k):
            dw = dw + xp[:, i:i + Hs, j:j + Ws, :] * params["dw_w"][i * k + j]
    t = dw.reshape(-1, dim)
    mu = t.mean(-1, keepdims=True)
    var = jnp.square(t - mu).mean(-1, keepdims=True)
    xn = (t - mu) * lax.rsqrt(var + _EPS)
    xn = xn * params["blk_ln_g"] + params["blk_ln_b"]
    h = jnp.dot(xn.astype(jnp.bfloat16), params["w1"].astype(jnp.bfloat16),
                preferred_element_type=jnp.float32) + params["b1"]
    h = jax.nn.gelu(h, approximate=False)
    y = jnp.dot(h.astype(jnp.bfloat16), params["w2"].astype(jnp.bfloat16),
                preferred_element_type=jnp.float32) + params["b2"]
    out = feat.reshape(-1, dim) + params["ls_gamma"] * y
    return (out.reshape(N, Hs, Ws, dim).transpose(0, 3, 1, 2),)


# --------------------------------- main --------------------------------------

if __name__ == "__main__":
    key = jax.random.PRNGKey(0)
    k_x, k_p = jax.random.split(key)

    x = jax.random.normal(k_x, (2, 3, 16, 16), jnp.float32)   # NCHW like PyTorch
    params = init_params(k_p, c_in=3, dim=128, patch=4, k=7)

    y = jax.jit(convnext_forward)(x, params)
    jax.block_until_ready(y)
    assert y.shape == (2, 128, 4, 4), y.shape

    # Sanity check against the pure-JAX reference (tolerance covers bf16 storage noise).
    y_ref = reference_model(x, params)[0]
    max_err = float(jnp.max(jnp.abs(y - y_ref)))
    assert max_err < 5e-2, f"kernel/reference mismatch: max abs err = {max_err}"

    print("KERNEL_OK")
</pallas_src>

<mosaic_0001>
module attributes {stable_mosaic.version = 11 : i64} {
  func.func @stem_kernel(%arg0: i32, %arg1: memref<32x128xbf16, #tpu.memory_space<vmem>>, %arg2: memref<128x128xbf16, #tpu.memory_space<vmem>>, %arg3: memref<1x128xf32, #tpu.memory_space<vmem>>, %arg4: memref<1x128xf32, #tpu.memory_space<vmem>>, %arg5: memref<1x128xf32, #tpu.memory_space<vmem>>, %arg6: memref<32x128xbf16, #tpu.memory_space<vmem>>) attributes {dimension_semantics = [#tpu.dimension_semantics<parallel>], iteration_bounds = array<i64: 1>, scalar_prefetch = 0 : i64, scratch_operands = 0 : i64, tpu.core_type = #tpu.core_type<tc>, window_params = [{transform_indices = @transform_0, window_bounds = array<i64: 32, 128>}, {pipeline_mode = #tpu.pipeline_mode<synchronous>, transform_indices = @transform_1, window_bounds = array<i64: 128, 128>}, {pipeline_mode = #tpu.pipeline_mode<synchronous>, transform_indices = @transform_2, window_bounds = array<i64: 1, 128>}, {pipeline_mode = #tpu.pipeline_mode<synchronous>, transform_indices = @transform_3, window_bounds = array<i64: 1, 128>}, {pipeline_mode = #tpu.pipeline_mode<synchronous>, transform_indices = @transform_4, window_bounds = array<i64: 1, 128>}, {transform_indices = @transform_5, window_bounds = array<i64: 32, 128>}]} {
    %c0 = arith.constant 0 : index
    %c0_0 = arith.constant 0 : index
    %0 = vector.load %arg1[%c0, %c0_0] : memref<32x128xbf16, #tpu.memory_space<vmem>>, vector<32x128xbf16>
    %c0_1 = arith.constant 0 : index
    %c0_2 = arith.constant 0 : index
    %1 = vector.load %arg2[%c0_1, %c0_2] : memref<128x128xbf16, #tpu.memory_space<vmem>>, vector<128x128xbf16>
    %cst = arith.constant dense<0.000000e+00> : vector<32x128xf32>
    %2 = tpu.matmul %0, %1, %cst {dimension_numbers = #tpu.dot_dimension_numbers<[1], [0], [0], [1], [0, 0, 1, 1], [], []>} : vector<32x128xbf16>, vector<128x128xbf16>, vector<32x128xf32> -> vector<32x128xf32>
    %c0_3 = arith.constant 0 : index
    %c0_4 = arith.constant 0 : index
    %3 = vector.load %arg3[%c0_3, %c0_4] : memref<1x128xf32, #tpu.memory_space<vmem>>, vector<1x128xf32>
    %4 = vector.broadcast %3 : vector<1x128xf32> to vector<32x128xf32>
    %5 = arith.addf %2, %4 : vector<32x128xf32>
    %cst_5 = arith.constant dense<0.000000e+00> : vector<32xf32>
    %6 = vector.multi_reduction <add>, %5, %cst_5 [1] : vector<32x128xf32> to vector<32xf32>
    %7 = vector.shape_cast %6 : vector<32xf32> to vector<32x1xf32>
    %cst_6 = arith.constant 1.280000e+02 : f32
    %8 = vector.broadcast %cst_6 : f32 to vector<32x1xf32>
    %9 = arith.divf %7, %8 : vector<32x1xf32>
    %10 = vector.broadcast %9 : vector<32x1xf32> to vector<32x128xf32>
    %11 = arith.subf %5, %10 : vector<32x128xf32>
    %12 = arith.mulf %11, %11 : vector<32x128xf32>
    %cst_7 = arith.constant dense<0.000000e+00> : vector<32xf32>
    %13 = vector.multi_reduction <add>, %12, %cst_7 [1] : vector<32x128xf32> to vector<32xf32>
    %14 = vector.shape_cast %13 : vector<32xf32> to vector<32x1xf32>
    %cst_8 = arith.constant 1.280000e+02 : f32
    %15 = vector.broadcast %cst_8 : f32 to vector<32x1xf32>
    %16 = arith.divf %14, %15 : vector<32x1xf32>
    %17 = vector.broadcast %9 : vector<32x1xf32> to vector<32x128xf32>
    %18 = arith.subf %5, %17 : vector<32x128xf32>
    %cst_9 = arith.constant 9.99999997E-7 : f32
    %19 = vector.broadcast %cst_9 : f32 to vector<32x1xf32>
    %20 = arith.addf %16, %19 : vector<32x1xf32>
    %21 = math.rsqrt %20 : vector<32x1xf32>
    %22 = vector.broadcast %21 : vector<32x1xf32> to vector<32x128xf32>
    %23 = arith.mulf %18, %22 : vector<32x128xf32>
    %c0_10 = arith.constant 0 : index
    %c0_11 = arith.constant 0 : index
    %24 = vector.load %arg4[%c0_10, %c0_11] : memref<1x128xf32, #tpu.memory_space<vmem>>, vector<1x128xf32>
    %25 = vector.broadcast %24 : vector<1x128xf32> to vector<32x128xf32>
    %26 = arith.mulf %23, %25 : vector<32x128xf32>
    %c0_12 = arith.constant 0 : index
    %c0_13 = arith.constant 0 : index
    %27 = vector.load %arg5[%c0_12, %c0_13] : memref<1x128xf32, #tpu.memory_space<vmem>>, vector<1x128xf32>
    %28 = vector.broadcast %27 : vector<1x128xf32> to vector<32x128xf32>
    %29 = arith.addf %26, %28 : vector<32x128xf32>
    %30 = arith.truncf %29 : vector<32x128xf32> to vector<32x128xbf16>
    %c0_14 = arith.constant 0 : index
    %c0_15 = arith.constant 0 : index
    %31 = vector.load %arg6[%c0_14, %c0_15] : memref<32x128xbf16, #tpu.memory_space<vmem>>, vector<32x128xbf16>
    tpu.vector_store %arg6[%c0_14, %c0_15], %30 {strides = array<i32>} : memref<32x128xbf16, #tpu.memory_space<vmem>>, vector<32x128xbf16>,
    return
  }
  func.func @transform_0(%arg0: i32) -> (i32, i32) {
    %c0_i32 = arith.constant 0 : i32
    %c0_i32_0 = arith.constant 0 : i32
    return %arg0, %c0_i32 : i32, i32
  }
  func.func @transform_1(%arg0: i32) -> (i32, i32) {
    %c0_i32 = arith.constant 0 : i32
    %c0_i32_0 = arith.constant 0 : i32
    %c0_i32_1 = arith.constant 0 : i32
    return %c0_i32, %c0_i32_0 : i32, i32
  }
  func.func @transform_2(%arg0: i32) -> (i32, i32) {
    %c0_i32 = arith.constant 0 : i32
    %c0_i32_0 = arith.constant 0 : i32
    %c0_i32_1 = arith.constant 0 : i32
    return %c0_i32, %c0_i32_0 : i32, i32
  }
  func.func @transform_3(%arg0: i32) -> (i32, i32) {
    %c0_i32 = arith.constant 0 : i32
    %c0_i32_0 = arith.constant 0 : i32
    %c0_i32_1 = arith.constant 0 : i32
    return %c0_i32, %c0_i32_0 : i32, i32
  }
  func.func @transform_4(%arg0: i32) -> (i32, i32) {
    %c0_i32 = arith.constant 0 : i32
    %c0_i32_0 = arith.constant 0 : i32
    %c0_i32_1 = arith.constant 0 : i32
    return %c0_i32, %c0_i32_0 : i32, i32
  }
  func.func @transform_5(%arg0: i32) -> (i32, i32) {
    %c0_i32 = arith.constant 0 : i32
    %c0_i32_0 = arith.constant 0 : i32
    return %arg0, %c0_i32 : i32, i32
  }
}

module attributes {stable_mosaic.version = 11 : i64} {
  func.func @convnext_block_kernel(%arg0: i32, %arg1: memref<16x128xbf16, #tpu.memory_space<vmem>>, %arg2: memref<49x128xf32, #tpu.memory_space<vmem>>, %arg3: memref<1x128xf32, #tpu.memory_space<vmem>>, %arg4: memref<1x128xf32, #tpu.memory_space<vmem>>, %arg5: memref<1x128xf32, #tpu.memory_space<vmem>>, %arg6: memref<128x512xbf16, #tpu.memory_space<vmem>>, %arg7: memref<1x512xf32, #tpu.memory_space<vmem>>, %arg8: memref<512x128xbf16, #tpu.memory_space<vmem>>, %arg9: memref<1x128xf32, #tpu.memory_space<vmem>>, %arg10: memref<1x128xf32, #tpu.memory_space<vmem>>, %arg11: memref<16x128xf32, #tpu.memory_space<vmem>>, %arg12: memref<10x10x128xf32, #tpu.memory_space<vmem>>, %arg13: memref<16x128xf32, #tpu.memory_space<vmem>>) attributes {dimension_semantics = [#tpu.dimension_semantics<parallel>], iteration_bounds = array<i64: 2>, scalar_prefetch = 0 : i64, scratch_operands = 2 : i64, tpu.core_type = #tpu.core_type<tc>, window_params = [{transform_indices = @transform_0, window_bounds = array<i64: 16, 128>}, {pipeline_mode = #tpu.pipeline_mode<synchronous>, transform_indices = @transform_1, window_bounds = array<i64: 49, 128>}, {pipeline_mode = #tpu.pipeline_mode<synchronous>, transform_indices = @transform_2, window_bounds = array<i64: 1, 128>}, {pipeline_mode = #tpu.pipeline_mode<synchronous>, transform_indices = @transform_3, window_bounds = array<i64: 1, 128>}, {pipeline_mode = #tpu.pipeline_mode<synchronous>, transform_indices = @transform_4, window_bounds = array<i64: 1, 128>}, {pipeline_mode = #tpu.pipeline_mode<synchronous>, transform_indices = @transform_5, window_bounds = array<i64: 128, 512>}, {pipeline_mode = #tpu.pipeline_mode<synchronous>, transform_indices = @transform_6, window_bounds = array<i64: 1, 512>}, {pipeline_mode = #tpu.pipeline_mode<synchronous>, transform_indices = @transform_7, window_bounds = array<i64: 512, 128>}, {pipeline_mode = #tpu.pipeline_mode<synchronous>, transform_indices = @transform_8, window_bounds = array<i64: 1, 128>}, {pipeline_mode = #tpu.pipeline_mode<synchronous>, transform_indices = @transform_9, window_bounds = array<i64: 1, 128>}, {transform_indices = @transform_10, window_bounds = array<i64: 16, 128>}]} {
    %cst = arith.constant 0.000000e+00 : f32
    %0 = vector.broadcast %cst : f32 to vector<10x10x128xf32>
    %c0 = arith.constant 0 : index
    %c0_0 = arith.constant 0 : index
    %c0_1 = arith.constant 0 : index
    %1 = vector.load %arg12[%c0, %c0_0, %c0_1] : memref<10x10x128xf32, #tpu.memory_space<vmem>>, vector<10x10x128xf32>
    tpu.vector_store %arg12[%c0, %c0_0, %c0_1], %0 {strides = array<i32>} : memref<10x10x128xf32, #tpu.memory_space<vmem>>, vector<10x10x128xf32>,
    %c0_2 = arith.constant 0 : index
    %c0_3 = arith.constant 0 : index
    %2 = vector.load %arg1[%c0_2, %c0_3] : memref<16x128xbf16, #tpu.memory_space<vmem>>, vector<4x128xbf16>
    %3 = arith.extf %2 : vector<4x128xbf16> to vector<4x128xf32>
    %c3 = arith.constant 3 : index
    %c3_4 = arith.constant 3 : index
    %c0_5 = arith.constant 0 : index
    %4 = vector.load %arg12[%c3, %c3_4, %c0_5] : memref<10x10x128xf32, #tpu.memory_space<vmem>>, vector<1x4x128xf32>
    %5 = vector.shape_cast %4 : vector<1x4x128xf32> to vector<4x128xf32>
    %6 = vector.shape_cast %3 : vector<4x128xf32> to vector<1x4x128xf32>
    tpu.vector_store %arg12[%c3, %c3_4, %c0_5], %6 {strides = array<i32>} : memref<10x10x128xf32, #tpu.memory_space<vmem>>, vector<1x4x128xf32>,
    %c4 = arith.constant 4 : index
    %c0_6 = arith.constant 0 : index
    %7 = vector.load %arg1[%c4, %c0_6] : memref<16x128xbf16, #tpu.memory_space<vmem>>, vector<4x128xbf16>
    %8 = arith.extf %7 : vector<4x128xbf16> to vector<4x128xf32>
    %c4_7 = arith.constant 4 : index
    %c3_8 = arith.constant 3 : index
    %c0_9 = arith.constant 0 : index
    %9 = vector.load %arg12[%c4_7, %c3_8, %c0_9] : memref<10x10x128xf32, #tpu.memory_space<vmem>>, vector<1x4x128xf32>
    %10 = vector.shape_cast %9 : vector<1x4x128xf32> to vector<4x128xf32>
    %11 = vector.shape_cast %8 : vector<4x128xf32> to vector<1x4x128xf32>
    tpu.vector_store %arg12[%c4_7, %c3_8, %c0_9], %11 {strides = array<i32>} : memref<10x10x128xf32, #tpu.memory_space<vmem>>, vector<1x4x128xf32>,
    %c8 = arith.constant 8 : index
    %c0_10 = arith.constant 0 : index
    %12 = vector.load %arg1[%c8, %c0_10] : memref<16x128xbf16, #tpu.memory_space<vmem>>, vector<4x128xbf16>
    %13 = arith.extf %12 : vector<4x128xbf16> to vector<4x128xf32>
    %c5 = arith.constant 5 : index
    %c3_11 = arith.constant 3 : index
    %c0_12 = arith.constant 0 : index
    %14 = vector.load %arg12[%c5, %c3_11, %c0_12] : memref<10x10x128xf32, #tpu.memory_space<vmem>>, vector<1x4x128xf32>
    %15 = vector.shape_cast %14 : vector<1x4x128xf32> to vector<4x128xf32>
    %16 = vector.shape_cast %13 : vector<4x128xf32> to vector<1x4x128xf32>
    tpu.vector_store %arg12[%c5, %c3_11, %c0_12], %16 {strides = array<i32>} : memref<10x10x128xf32, #tpu.memory_space<vmem>>, vector<1x4x128xf32>,
    %c12 = arith.constant 12 : index
    %c0_13 = arith.constant 0 : index
    %17 = vector.load %arg1[%c12, %c0_13] : memref<16x128xbf16, #tpu.memory_space<vmem>>, vector<4x128xbf16>
    %18 = arith.extf %17 : vector<4x128xbf16> to vector<4x128xf32>
    %c6 = arith.constant 6 : index
    %c3_14 = arith.constant 3 : index
    %c0_15 = arith.constant 0 : index
    %19 = vector.load %arg12[%c6, %c3_14, %c0_15] : memref<10x10x128xf32, #tpu.memory_space<vmem>>, vector<1x4x128xf32>
    %20 = vector.shape_cast %19 : vector<1x4x128xf32> to vector<4x128xf32>
    %21 = vector.shape_cast %18 : vector<4x128xf32> to vector<1x4x128xf32>
    tpu.vector_store %arg12[%c6, %c3_14, %c0_15], %21 {strides = array<i32>} : memref<10x10x128xf32, #tpu.memory_space<vmem>>, vector<1x4x128xf32>,
    %c0_16 = arith.constant 0 : index
    %c0_17 = arith.constant 0 : index
    %22 = vector.load %arg3[%c0_16, %c0_17] : memref<1x128xf32, #tpu.memory_space<vmem>>, vector<1x128xf32>
    %cst_18 = arith.constant 0.000000e+00 : f32
    %23 = vector.broadcast %cst_18 : f32 to vector<4x128xf32>
    %24 = vector.broadcast %22 : vector<1x128xf32> to vector<4x128xf32>
    %25 = arith.addf %23, %24 : vector<4x128xf32>
    %c0_19 = arith.constant 0 : index
    %c0_20 = arith.constant 0 : index
    %c0_21 = arith.constant 0 : index
    %26 = vector.load %arg12[%c0_19, %c0_20, %c0_21] : memref<10x10x128xf32, #tpu.memory_space<vmem>>, vector<1x4x128xf32>
    %27 = vector.shape_cast %26 : vector<1x4x128xf32> to vector<4x128xf32>
    %c0_22 = arith.constant 0 : index
    %c0_23 = arith.constant 0 : index
    %28 = vector.load %arg2[%c0_22, %c0_23] : memref<49x128xf32, #tpu.memory_space<vmem>>, vector<1x128xf32>
    %29 = vector.broadcast %28 : vector<1x128xf32> to vector<4x128xf32>
    %30 = arith.mulf %27, %29 : vector<4x128xf32>
    %31 = arith.addf %25, %30 : vector<4x128xf32>
    %c0_24 = arith.constant 0 : index
    %c1 = arith.constant 1 : index
    %c0_25 = arith.constant 0 : index
    %32 = vector.load %arg12[%c0_24, %c1, %c0_25] : memref<10x10x128xf32, #tpu.memory_space<vmem>>, vector<1x4x128xf32>
    %33 = vector.shape_cast %32 : vector<1x4x128xf32> to vector<4x128xf32>
    %c1_26 = arith.constant 1 : index
    %c0_27 = arith.constant 0 : index
    %34 = vector.load %arg2[%c1_26, %c0_27] : memref<49x128xf32, #tpu.memory_space<vmem>>, vector<1x128xf32>
    %35 = vector.broadcast %34 : vector<1x128xf32> to vector<4x128xf32>
    %36 = arith.mulf %33, %35 : vector<4x128xf32>
    %37 = arith.addf %31, %36 : vector<4x128xf32>
    %c0_28 = arith.constant 0 : index
    %c2 = arith.constant 2 : index
    %c0_29 = arith.constant 0 : index
    %38 = vector.load %arg12[%c0_28, %c2, %c0_29] : memref<10x10x128xf32, #tpu.memory_space<vmem>>, vector<1x4x128xf32>
    %39 = vector.shape_cast %38 : vector<1x4x128xf32> to vector<4x128xf32>
    %c2_30 = arith.constant 2 : index
    %c0_31 = arith.constant 0 : index
    %40 = vector.load %arg2[%c2_30, %c0_31] : memref<49x128xf32, #tpu.memory_space<vmem>>, vector<1x128xf32>
    %41 = vector.broadcast %40 : vector<1x128xf32> to vector<4x128xf32>
    %42 = arith.mulf %39, %41 : vector<4x128xf32>
    %43 = arith.addf %37, %42 : vector<4x128xf32>
    %c0_32 = arith.constant 0 : index
    %c3_33 = arith.constant 3 : index
    %c0_34 = arith.constant 0 : index
    %44 = vector.load %arg12[%c0_32, %c3_33, %c0_34] : memref<10x10x128xf32, #tpu.memory_space<vmem>>, vector<1x4x128xf32>
    %45 = vector.shape_cast %44 : vector<1x4x128xf32> to vector<4x128xf32>
    %c3_35 = arith.constant 3 : index
    %c0_36 = arith.constant 0 : index
    %46 = vector.load %arg2[%c3_35, %c0_36] : memref<49x128xf32, #tpu.memory_space<vmem>>, vector<1x128xf32>
    %47 = vector.broadcast %46 : vector<1x128xf32> to vector<4x128xf32>
    %48 = arith.mulf %45, %47 : vector<4x128xf32>
    %49 = arith.addf %43, %48 : vector<4x128xf32>
    %c0_37 = arith.constant 0 : index
    %c4_38 = arith.constant 4 : index
    %c0_39 = arith.constant 0 : index
    %50 = vector.load %arg12[%c0_37, %c4_38, %c0_39] : memref<10x10x128xf32, #tpu.memory_space<vmem>>, vector<1x4x128xf32>
    %51 = vector.shape_cast %50 : vector<1x4x128xf32> to vector<4x128xf32>
    %c4_40 = arith.constant 4 : index
    %c0_41 = arith.constant 0 : index
    %52 = vector.load %arg2[%c4_40, %c0_41] : memref<49x128xf32, #tpu.memory_space<vmem>>, vector<1x128xf32>
    %53 = vector.broadcast %52 : vector<1x128xf32> to vector<4x128xf32>
    %54 = arith.mulf %51, %53 : vector<4x128xf32>
    %55 = arith.addf %49, %54 : vector<4x128xf32>
    %c0_42 = arith.constant 0 : index
    %c5_43 = arith.constant 5 : index
    %c0_44 = arith.constant 0 : index
    %56 = vector.load %arg12[%c0_42, %c5_43, %c0_44] : memref<10x10x128xf32, #tpu.memory_space<vmem>>, vector<1x4x128xf32>
    %57 = vector.shape_cast %56 : vector<1x4x128xf32> to vector<4x128xf32>
    %c5_45 = arith.constant 5 : index
    %c0_46 = arith.constant 0 : index
    %58 = vector.load %arg2[%c5_45, %c0_46] : memref<49x128xf32, #tpu.memory_space<vmem>>, vector<1x128xf32>
    %59 = vector.broadcast %58 : vector<1x128xf32> to vector<4x128xf32>
    %60 = arith.mulf %57, %59 : vector<4x128xf32>
    %61 = arith.addf %55, %60 : vector<4x128xf32>
    %c0_47 = arith.constant 0 : index
    %c6_48 = arith.constant 6 : index
    %c0_49 = arith.constant 0 : index
    %62 = vector.load %arg12[%c0_47, %c6_48, %c0_49] : memref<10x10x128xf32, #tpu.memory_space<vmem>>, vector<1x4x128xf32>
    %63 = vector.shape_cast %62 : vector<1x4x128xf32> to vector<4x128xf32>
    %c6_50 = arith.constant 6 : index
    %c0_51 = arith.constant 0 : index
    %64 = vector.load %arg2[%c6_50, %c0_51] : memref<49x128xf32, #tpu.memory_space<vmem>>, vector<1x128xf32>
    %65 = vector.broadcast %64 : vector<1x128xf32> to vector<4x128xf32>
    %66 = arith.mulf %63, %65 : vector<4x128xf32>
    %67 = arith.addf %61, %66 : vector<4x128xf32>
    %c1_52 = arith.constant 1 : index
    %c0_53 = arith.constant 0 : index
    %c0_54 = arith.constant 0 : index
    %68 = vector.load %arg12[%c1_52, %c0_53, %c0_54] : memref<10x10x128xf32, #tpu.memory_space<vmem>>, vector<1x4x128xf32>
    %69 = vector.shape_cast %68 : vector<1x4x128xf32> to vector<4x128xf32>
    %c7 = arith.constant 7 : index
    %c0_55 = arith.constant 0 : index
    %70 = vector.load %arg2[%c7, %c0_55] : memref<49x128xf32, #tpu.memory_space<vmem>>, vector<1x128xf32>
    %71 = vector.broadcast %70 : vector<1x128xf32> to vector<4x128xf32>
    %72 = arith.mulf %69, %71 : vector<4x128xf32>
    %73 = arith.addf %67, %72 : vector<4x128xf32>
    %c1_56 = arith.constant 1 : index
    %c1_57 = arith.constant 1 : index
    %c0_58 = arith.constant 0 : index
    %74 = vector.load %arg12[%c1_56, %c1_57, %c0_58] : memref<10x10x128xf32, #tpu.memory_space<vmem>>, vector<1x4x128xf32>
    %75 = vector.shape_cast %74 : vector<1x4x128xf32> to vector<4x128xf32>
    %c8_59 = arith.constant 8 : index
    %c0_60 = arith.constant 0 : index
    %76 = vector.load %arg2[%c8_59, %c0_60] : memref<49x128xf32, #tpu.memory_space<vmem>>, vector<1x128xf32>
    %77 = vector.broadcast %76 : vector<1x128xf32> to vector<4x128xf32>
    %78 = arith.mulf %75, %77 : vector<4x128xf32>
    %79 = arith.addf %73, %78 : vector<4x128xf32>
    %c1_61 = arith.constant 1 : index
    %c2_62 = arith.constant 2 : index
    %c0_63 = arith.constant 0 : index
    %80 = vector.load %arg12[%c1_61, %c2_62, %c0_63] : memref<10x10x128xf32, #tpu.memory_space<vmem>>, vector<1x4x128xf32>
    %81 = vector.shape_cast %80 : vector<1x4x128xf32> to vector<4x128xf32>
    %c9 = arith.constant 9 : index
    %c0_64 = arith.constant 0 : index
    %82 = vector.load %arg2[%c9, %c0_64] : memref<49x128xf32, #tpu.memory_space<vmem>>, vector<1x128xf32>
    %83 = vector.broadcast %82 : vector<1x128xf32> to vector<4x128xf32>
    %84 = arith.mulf %81, %83 : vector<4x128xf32>
    %85 = arith.addf %79, %84 : vector<4x128xf32>
    %c1_65 = arith.constant 1 : index
    %c3_66 = arith.constant 3 : index
    %c0_67 = arith.constant 0 : index
    %86 = vector.load %arg12[%c1_65, %c3_66, %c0_67] : memref<10x10x128xf32, #tpu.memory_space<vmem>>, vector<1x4x128xf32>
    %87 = vector.shape_cast %86 : vector<1x4x128xf32> to vector<4x128xf32>
    %c10 = arith.constant 10 : index
    %c0_68 = arith.constant 0 : index
    %88 = vector.load %arg2[%c10, %c0_68] : memref<49x128xf32, #tpu.memory_space<vmem>>, vector<1x128xf32>
    %89 = vector.broadcast %88 : vector<1x128xf32> to vector<4x128xf32>
    %90 = arith.mulf %87, %89 : vector<4x128xf32>
    %91 = arith.addf %85, %90 : vector<4x128xf32>
    %c1_69 = arith.constant 1 : index
    %c4_70 = arith.constant 4 : index
    %c0_71 = arith.constant 0 : index
    %92 = vector.load %arg12[%c1_69, %c4_70, %c0_71] : memref<10x10x128xf32, #tpu.memory_space<vmem>>, vector<1x4x128xf32>
    %93 = vector.shape_cast %92 : vector<1x4x128xf32> to vector<4x128xf32>
    %c11 = arith.constant 11 : index
    %c0_72 = arith.constant 0 : index
    %94 = vector.load %arg2[%c11, %c0_72] : memref<49x128xf32, #tpu.memory_space<vmem>>, vector<1x128xf32>
    %95 = vector.broadcast %94 : vector<1x128xf32> to vector<4x128xf32>
    %96 = arith.mulf %93, %95 : vector<4x128xf32>
    %97 = arith.addf %91, %96 : vector<4x128xf32>
    %c1_73 = arith.constant 1 : index
    %c5_74 = arith.constant 5 : index
    %c0_75 = arith.constant 0 : index
    %98 = vector.load %arg12[%c1_73, %c5_74, %c0_75] : memref<10x10x128xf32, #tpu.memory_space<vmem>>, vector<1x4x128xf32>
    %99 = vector.shape_cast %98 : vector<1x4x128xf32> to vector<4x128xf32>
    %c12_76 = arith.constant 12 : index
    %c0_77 = arith.constant 0 : index
    %100 = vector.load %arg2[%c12_76, %c0_77] : memref<49x128xf32, #tpu.memory_space<vmem>>, vector<1x128xf32>
    %101 = vector.broadcast %100 : vector<1x128xf32> to vector<4x128xf32>
    %102 = arith.mulf %99, %101 : vector<4x128xf32>
    %103 = arith.addf %97, %102 : vector<4x128xf32>
    %c1_78 = arith.constant 1 : index
    %c6_79 = arith.constant 6 : index
    %c0_80 = arith.constant 0 : index
    %104 = vector.load %arg12[%c1_78, %c6_79, %c0_80] : memref<10x10x128xf32, #tpu.memory_space<vmem>>, vector<1x4x128xf32>
    %105 = vector.shape_cast %104 : vector<1x4x128xf32> to vector<4x128xf32>
    %c13 = arith.constant 13 : index
    %c0_81 = arith.constant 0 : index
    %106 = vector.load %arg2[%c13, %c0_81] : memref<49x128xf32, #tpu.memory_space<vmem>>, vector<1x128xf32>
    %107 = vector.broadcast %106 : vector<1x128xf32> to vector<4x128xf32>
    %108 = arith.mulf %105, %107 : vector<4x128xf32>
    %109 = arith.addf %103, %108 : vector<4x128xf32>
    %c2_82 = arith.constant 2 : index
    %c0_83 = arith.constant 0 : index
    %c0_84 = arith.constant 0 : index
    %110 = vector.load %arg12[%c2_82, %c0_83, %c0_84] : memref<10x10x128xf32, #tpu.memory_space<vmem>>, vector<1x4x128xf32>
    %111 = vector.shape_cast %110 : vector<1x4x128xf32> to vector<4x128xf32>
    %c14 = arith.constant 14 : index
    %c0_85 = arith.constant 0 : index
    %112 = vector.load %arg2[%c14, %c0_85] : memref<49x128xf32, #tpu.memory_space<vmem>>, vector<1x128xf32>
    %113 = vector.broadcast %112 : vector<1x128xf32> to vector<4x128xf32>
    %114 = arith.mulf %111, %113 : vector<4x128xf32>
    %115 = arith.addf %109, %114 : vector<4x128xf32>
    %c2_86 = arith.constant 2 : index
    %c1_87 = arith.constant 1 : index
    %c0_88 = arith.constant 0 : index
    %116 = vector.load %arg12[%c2_86, %c1_87, %c0_88] : memref<10x10x128xf32, #tpu.memory_space<vmem>>, vector<1x4x128xf32>
    %117 = vector.shape_cast %116 : vector<1x4x128xf32> to vector<4x128xf32>
    %c15 = arith.constant 15 : index
    %c0_89 = arith.constant 0 : index
    %118 = vector.load %arg2[%c15, %c0_89] : memref<49x128xf32, #tpu.memory_space<vmem>>, vector<1x128xf32>
    %119 = vector.broadcast %118 : vector<1x128xf32> to vector<4x128xf32>
    %120 = arith.mulf %117, %119 : vector<4x128xf32>
    %121 = arith.addf %115, %120 : vector<4x128xf32>
    %c2_90 = arith.constant 2 : index
    %c2_91 = arith.constant 2 : index
    %c0_92 = arith.constant 0 : index
    %122 = vector.load %arg12[%c2_90, %c2_91, %c0_92] : memref<10x10x128xf32, #tpu.memory_space<vmem>>, vector<1x4x128xf32>
    %123 = vector.shape_cast %122 : vector<1x4x128xf32> to vector<4x128xf32>
    %c16 = arith.constant 16 : index
    %c0_93 = arith.constant 0 : index
    %124 = vector.load %arg2[%c16, %c0_93] : memref<49x128xf32, #tpu.memory_space<vmem>>, vector<1x128xf32>
    %125 = vector.broadcast %124 : vector<1x128xf32> to vector<4x128xf32>
    %126 = arith.mulf %123, %125 : vector<4x128xf32>
    %127 = arith.addf %121, %126 : vector<4x128xf32>
    %c2_94 = arith.constant 2 : index
    %c3_95 = arith.constant 3 : index
    %c0_96 = arith.constant 0 : index
    %128 = vector.load %arg12[%c2_94, %c3_95, %c0_96] : memref<10x10x128xf32, #tpu.memory_space<vmem>>, vector<1x4x128xf32>
    %129 = vector.shape_cast %128 : vector<1x4x128xf32> to vector<4x128xf32>
    %c17 = arith.constant 17 : index
    %c0_97 = arith.constant 0 : index
    %130 = vector.load %arg2[%c17, %c0_97] : memref<49x128xf32, #tpu.memory_space<vmem>>, vector<1x128xf32>
    %131 = vector.broadcast %130 : vector<1x128xf32> to vector<4x128xf32>
    %132 = arith.mulf %129, %131 : vector<4x128xf32>
    %133 = arith.addf %127, %132 : vector<4x128xf32>
    %c2_98 = arith.constant 2 : index
    %c4_99 = arith.constant 4 : index
    %c0_100 = arith.constant 0 : index
    %134 = vector.load %arg12[%c2_98, %c4_99, %c0_100] : memref<10x10x128xf32, #tpu.memory_space<vmem>>, vector<1x4x128xf32>
    %135 = vector.shape_cast %134 : vector<1x4x128xf32> to vector<4x128xf32>
    %c18 = arith.constant 18 : index
    %c0_101 = arith.constant 0 : index
    %136 = vector.load %arg2[%c18, %c0_101] : memref<49x128xf32, #tpu.memory_space<vmem>>, vector<1x128xf32>
    %137 = vector.broadcast %136 : vector<1x128xf32> to vector<4x128xf32>
    %138 = arith.mulf %135, %137 : vector<4x128xf32>
    %139 = arith.addf %133, %138 : vector<4x128xf32>
    %c2_102 = arith.constant 2 : index
    %c5_103 = arith.constant 5 : index
    %c0_104 = arith.constant 0 : index
    %140 = vector.load %arg12[%c2_102, %c5_103, %c0_104] : memref<10x10x128xf32, #tpu.memory_space<vmem>>, vector<1x4x128xf32>
    %141 = vector.shape_cast %140 : vector<1x4x128xf32> to vector<4x128xf32>
    %c19 = arith.constant 19 : index
    %c0_105 = arith.constant 0 : index
    %142 = vector.load %arg2[%c19, %c0_105] : memref<49x128xf32, #tpu.memory_space<vmem>>, vector<1x128xf32>
    %143 = vector.broadcast %142 : vector<1x128xf32> to vector<4x128xf32>
    %144 = arith.mulf %141, %143 : vector<4x128xf32>
    %145 = arith.addf %139, %144 : vector<4x128xf32>
    %c2_106 = arith.constant 2 : index
    %c6_107 = arith.constant 6 : index
    %c0_108 = arith.constant 0 : index
    %146 = vector.load %arg12[%c2_106, %c6_107, %c0_108] : memref<10x10x128xf32, #tpu.memory_space<vmem>>, vector<1x4x128xf32>
    %147 = vector.shape_cast %146 : vector<1x4x128xf32> to vector<4x128xf32>
    %c20 = arith.constant 20 : index
    %c0_109 = arith.constant 0 : index
    %148 = vector.load %arg2[%c20, %c0_109] : memref<49x128xf32, #tpu.memory_space<vmem>>, vector<1x128xf32>
    %149 = vector.broadcast %148 : vector<1x128xf32> to vector<4x128xf32>
    %150 = arith.mulf %147, %149 : vector<4x128xf32>
    %151 = arith.addf %145, %150 : vector<4x128xf32>
    %c3_110 = arith.constant 3 : index
    %c0_111 = arith.constant 0 : index
    %c0_112 = arith.constant 0 : index
    %152 = vector.load %arg12[%c3_110, %c0_111, %c0_112] : memref<10x10x128xf32, #tpu.memory_space<vmem>>, vector<1x4x128xf32>
    %153 = vector.shape_cast %152 : vector<1x4x128xf32> to vector<4x128xf32>
    %c21 = arith.constant 21 : index
    %c0_113 = arith.constant 0 : index
    %154 = vector.load %arg2[%c21, %c0_113] : memref<49x128xf32, #tpu.memory_space<vmem>>, vector<1x128xf32>
    %155 = vector.broadcast %154 : vector<1x128xf32> to vector<4x128xf32>
    %156 = arith.mulf %153, %155 : vector<4x128xf32>
    %157 = arith.addf %151, %156 : vector<4x128xf32>
    %c3_114 = arith.constant 3 : index
    %c1_115 = arith.constant 1 : index
    %c0_116 = arith.constant 0 : index
    %158 = vector.load %arg12[%c3_114, %c1_115, %c0_116] : memref<10x10x128xf32, #tpu.memory_space<vmem>>, vector<1x4x128xf32>
    %159 = vector.shape_cast %158 : vector<1x4x128xf32> to vector<4x128xf32>
    %c22 = arith.constant 22 : index
    %c0_117 = arith.constant 0 : index
    %160 = vector.load %arg2[%c22, %c0_117] : memref<49x128xf32, #tpu.memory_space<vmem>>, vector<1x128xf32>
    %161 = vector.broadcast %160 : vector<1x128xf32> to vector<4x128xf32>
    %162 = arith.mulf %159, %161 : vector<4x128xf32>
    %163 = arith.addf %157, %162 : vector<4x128xf32>
    %c3_118 = arith.constant 3 : index
    %c2_119 = arith.constant 2 : index
    %c0_120 = arith.constant 0 : index
    %164 = vector.load %arg12[%c3_118, %c2_119, %c0_120] : memref<10x10x128xf32, #tpu.memory_space<vmem>>, vector<1x4x128xf32>
    %165 = vector.shape_cast %164 : vector<1x4x128xf32> to vector<4x128xf32>
    %c23 = arith.constant 23 : index
    %c0_121 = arith.constant 0 : index
    %166 = vector.load %arg2[%c23, %c0_121] : memref<49x128xf32, #tpu.memory_space<vmem>>, vector<1x128xf32>
    %167 = vector.broadcast %166 : vector<1x128xf32> to vector<4x128xf32>
    %168 = arith.mulf %165, %167 : vector<4x128xf32>
    %169 = arith.addf %163, %168 : vector<4x128xf32>
    %c3_122 = arith.constant 3 : index
    %c3_123 = arith.constant 3 : index
    %c0_124 = arith.constant 0 : index
    %170 = vector.load %arg12[%c3_122, %c3_123, %c0_124] : memref<10x10x128xf32, #tpu.memory_space<vmem>>, vector<1x4x128xf32>
    %171 = vector.shape_cast %170 : vector<1x4x128xf32> to vector<4x128xf32>
    %c24 = arith.constant 24 : index
    %c0_125 = arith.constant 0 : index
    %172 = vector.load %arg2[%c24, %c0_125] : memref<49x128xf32, #tpu.memory_space<vmem>>, vector<1x128xf32>
    %173 = vector.broadcast %172 : vector<1x128xf32> to vector<4x128xf32>
    %174 = arith.mulf %171, %173 : vector<4x128xf32>
    %175 = arith.addf %169, %174 : vector<4x128xf32>
    %c3_126 = arith.constant 3 : index
    %c4_127 = arith.constant 4 : index
    %c0_128 = arith.constant 0 : index
    %176 = vector.load %arg12[%c3_126, %c4_127, %c0_128] : memref<10x10x128xf32, #tpu.memory_space<vmem>>, vector<1x4x128xf32>
    %177 = vector.shape_cast %176 : vector<1x4x128xf32> to vector<4x128xf32>
    %c25 = arith.constant 25 : index
    %c0_129 = arith.constant 0 : index
    %178 = vector.load %arg2[%c25, %c0_129] : memref<49x128xf32, #tpu.memory_space<vmem>>, vector<1x128xf32>
    %179 = vector.broadcast %178 : vector<1x128xf32> to vector<4x128xf32>
    %180 = arith.mulf %177, %179 : vector<4x128xf32>
    %181 = arith.addf %175, %180 : vector<4x128xf32>
    %c3_130 = arith.constant 3 : index
    %c5_131 = arith.constant 5 : index
    %c0_132 = arith.constant 0 : index
    %182 = vector.load %arg12[%c3_130, %c5_131, %c0_132] : memref<10x10x128xf32, #tpu.memory_space<vmem>>, vector<1x4x128xf32>
    %183 = vector.shape_cast %182 : vector<1x4x128xf32> to vector<4x128xf32>
    %c26 = arith.constant 26 : index
    %c0_133 = arith.constant 0 : index
    %184 = vector.load %arg2[%c26, %c0_133] : memref<49x128xf32, #tpu.memory_space<vmem>>, vector<1x128xf32>
    %185 = vector.broadcast %184 : vector<1x128xf32> to vector<4x128xf32>
    %186 = arith.mulf %183, %185 : vector<4x128xf32>
    %187 = arith.addf %181, %186 : vector<4x128xf32>
    %c3_134 = arith.constant 3 : index
    %c6_135 = arith.constant 6 : index
    %c0_136 = arith.constant 0 : index
    %188 = vector.load %arg12[%c3_134, %c6_135, %c0_136] : memref<10x10x128xf32, #tpu.memory_space<vmem>>, vector<1x4x128xf32>
    %189 = vector.shape_cast %188 : vector<1x4x128xf32> to vector<4x128xf32>
    %c27 = arith.constant 27 : index
    %c0_137 = arith.constant 0 : index
    %190 = vector.load %arg2[%c27, %c0_137] : memref<49x128xf32, #tpu.memory_space<vmem>>, vector<1x128xf32>
    %191 = vector.broadcast %190 : vector<1x128xf32> to vector<4x128xf32>
    %192 = arith.mulf %189, %191 : vector<4x128xf32>
    %193 = arith.addf %187, %192 : vector<4x128xf32>
    %c4_138 = arith.constant 4 : index
    %c0_139 = arith.constant 0 : index
    %c0_140 = arith.constant 0 : index
    %194 = vector.load %arg12[%c4_138, %c0_139, %c0_140] : memref<10x10x128xf32, #tpu.memory_space<vmem>>, vector<1x4x128xf32>
    %195 = vector.shape_cast %194 : vector<1x4x128xf32> to vector<4x128xf32>
    %c28 = arith.constant 28 : index
    %c0_141 = arith.constant 0 : index
    %196 = vector.load %arg2[%c28, %c0_141] : memref<49x128xf32, #tpu.memory_space<vmem>>, vector<1x128xf32>
    %197 = vector.broadcast %196 : vector<1x128xf32> to vector<4x128xf32>
    %198 = arith.mulf %195, %197 : vector<4x128xf32>
    %199 = arith.addf %193, %198 : vector<4x128xf32>
    %c4_142 = arith.constant 4 : index
    %c1_143 = arith.constant 1 : index
    %c0_144 = arith.constant 0 : index
    %200 = vector.load %arg12[%c4_142, %c1_143, %c0_144] : memref<10x10x128xf32, #tpu.memory_space<vmem>>, vector<1x4x128xf32>
    %201 = vector.shape_cast %200 : vector<1x4x128xf32> to vector<4x128xf32>
    %c29 = arith.constant 29 : index
    %c0_145 = arith.constant 0 : index
    %202 = vector.load %arg2[%c29, %c0_145] : memref<49x128xf32, #tpu.memory_space<vmem>>, vector<1x128xf32>
    %203 = vector.broadcast %202 : vector<1x128xf32> to vector<4x128xf32>
    %204 = arith.mulf %201, %203 : vector<4x128xf32>
    %205 = arith.addf %199, %204 : vector<4x128xf32>
    %c4_146 = arith.constant 4 : index
    %c2_147 = arith.constant 2 : index
    %c0_148 = arith.constant 0 : index
    %206 = vector.load %arg12[%c4_146, %c2_147, %c0_148] : memref<10x10x128xf32, #tpu.memory_space<vmem>>, vector<1x4x128xf32>
    %207 = vector.shape_cast %206 : vector<1x4x128xf32> to vector<4x128xf32>
    %c30 = arith.constant 30 : index
    %c0_149 = arith.constant 0 : index
    %208 = vector.load %arg2[%c30, %c0_149] : memref<49x128xf32, #tpu.memory_space<vmem>>, vector<1x128xf32>
    %209 = vector.broadcast %208 : vector<1x128xf32> to vector<4x128xf32>
    %210 = arith.mulf %207, %209 : vector<4x128xf32>
    %211 = arith.addf %205, %210 : vector<4x128xf32>
    %c4_150 = arith.constant 4 : index
    %c3_151 = arith.constant 3 : index
    %c0_152 = arith.constant 0 : index
    %212 = vector.load %arg12[%c4_150, %c3_151, %c0_152] : memref<10x10x128xf32, #tpu.memory_space<vmem>>, vector<1x4x128xf32>
    %213 = vector.shape_cast %212 : vector<1x4x128xf32> to vector<4x128xf32>
    %c31 = arith.constant 31 : index
    %c0_153 = arith.constant 0 : index
    %214 = vector.load %arg2[%c31, %c0_153] : memref<49x128xf32, #tpu.memory_space<vmem>>, vector<1x128xf32>
    %215 = vector.broadcast %214 : vector<1x128xf32> to vector<4x128xf32>
    %216 = arith.mulf %213, %215 : vector<4x128xf32>
    %217 = arith.addf %211, %216 : vector<4x128xf32>
    %c4_154 = arith.constant 4 : index
    %c4_155 = arith.constant 4 : index
    %c0_156 = arith.constant 0 : index
    %218 = vector.load %arg12[%c4_154, %c4_155, %c0_156] : memref<10x10x128xf32, #tpu.memory_space<vmem>>, vector<1x4x128xf32>
    %219 = vector.shape_cast %218 : vector<1x4x128xf32> to vector<4x128xf32>
    %c32 = arith.constant 32 : index
    %c0_157 = arith.constant 0 : index
    %220 = vector.load %arg2[%c32, %c0_157] : memref<49x128xf32, #tpu.memory_space<vmem>>, vector<1x128xf32>
    %221 = vector.broadcast %220 : vector<1x128xf32> to vector<4x128xf32>
    %222 = arith.mulf %219, %221 : vector<4x128xf32>
    %223 = arith.addf %217, %222 : vector<4x128xf32>
    %c4_158 = arith.constant 4 : index
    %c5_159 = arith.constant 5 : index
    %c0_160 = arith.constant 0 : index
    %224 = vector.load %arg12[%c4_158, %c5_159, %c0_160] : memref<10x10x128xf32, #tpu.memory_space<vmem>>, vector<1x4x128xf32>
    %225 = vector.shape_cast %224 : vector<1x4x128xf32> to vector<4x128xf32>
    %c33 = arith.constant 33 : index
    %c0_161 = arith.constant 0 : index
    %226 = vector.load %arg2[%c33, %c0_161] : memref<49x128xf32, #tpu.memory_space<vmem>>, vector<1x128xf32>
    %227 = vector.broadcast %226 : vector<1x128xf32> to vector<4x128xf32>
    %228 = arith.mulf %225, %227 : vector<4x128xf32>
    %229 = arith.addf %223, %228 : vector<4x128xf32>
    %c4_162 = arith.constant 4 : index
    %c6_163 = arith.constant 6 : index
    %c0_164 = arith.constant 0 : index
    %230 = vector.load %arg12[%c4_162, %c6_163, %c0_164] : memref<10x10x128xf32, #tpu.memory_space<vmem>>, vector<1x4x128xf32>
    %231 = vector.shape_cast %230 : vector<1x4x128xf32> to vector<4x128xf32>
    %c34 = arith.constant 34 : index
    %c0_165 = arith.constant 0 : index
    %232 = vector.load %arg2[%c34, %c0_165] : memref<49x128xf32, #tpu.memory_space<vmem>>, vector<1x128xf32>
    %233 = vector.broadcast %232 : vector<1x128xf32> to vector<4x128xf32>
    %234 = arith.mulf %231, %233 : vector<4x128xf32>
    %235 = arith.addf %229, %234 : vector<4x128xf32>
    %c5_166 = arith.constant 5 : index
    %c0_167 = arith.constant 0 : index
    %c0_168 = arith.constant 0 : index
    %236 = vector.load %arg12[%c5_166, %c0_167, %c0_168] : memref<10x10x128xf32, #tpu.memory_space<vmem>>, vector<1x4x128xf32>
    %237 = vector.shape_cast %236 : vector<1x4x128xf32> to vector<4x128xf32>
    %c35 = arith.constant 35 : index
    %c0_169 = arith.constant 0 : index
    %238 = vector.load %arg2[%c35, %c0_169] : memref<49x128xf32, #tpu.memory_space<vmem>>, vector<1x128xf32>
    %239 = vector.broadcast %238 : vector<1x128xf32> to vector<4x128xf32>
    %240 = arith.mulf %237, %239 : vector<4x128xf32>
    %241 = arith.addf %235, %240 : vector<4x128xf32>
    %c5_170 = arith.constant 5 : index
    %c1_171 = arith.constant 1 : index
    %c0_172 = arith.constant 0 : index
    %242 = vector.load %arg12[%c5_170, %c1_171, %c0_172] : memref<10x10x128xf32, #tpu.memory_space<vmem>>, vector<1x4x128xf32>
    %243 = vector.shape_cast %242 : vector<1x4x128xf32> to vector<4x128xf32>
    %c36 = arith.constant 36 : index
    %c0_173 = arith.constant 0 : index
    %244 = vector.load %arg2[%c36, %c0_173] : memref<49x128xf32, #tpu.memory_space<vmem>>, vector<1x128xf32>
    %245 = vector.broadcast %244 : vector<1x128xf32> to vector<4x128xf32>
    %246 = arith.mulf %243, %245 : vector<4x128xf32>
    %247 = arith.addf %241, %246 : vector<4x128xf32>
    %c5_174 = arith.constant 5 : index
    %c2_175 = arith.constant 2 : index
    %c0_176 = arith.constant 0 : index
    %248 = vector.load %arg12[%c5_174, %c2_175, %c0_176] : memref<10x10x128xf32, #tpu.memory_space<vmem>>, vector<1x4x128xf32>
    %249 = vector.shape_cast %248 : vector<1x4x128xf32> to vector<4x128xf32>
    %c37 = arith.constant 37 : index
    %c0_177 = arith.constant 0 : index
    %250 = vector.load %arg2[%c37, %c0_177] : memref<49x128xf32, #tpu.memory_space<vmem>>, vector<1x128xf32>
    %251 = vector.broadcast %250 : vector<1x128xf32> to vector<4x128xf32>
    %252 = arith.mulf %249, %251 : vector<4x128xf32>
    %253 = arith.addf %247, %252 : vector<4x128xf32>
    %c5_178 = arith.constant 5 : index
    %c3_179 = arith.constant 3 : index
    %c0_180 = arith.constant 0 : index
    %254 = vector.load %arg12[%c5_178, %c3_179, %c0_180] : memref<10x10x128xf32, #tpu.memory_space<vmem>>, vector<1x4x128xf32>
    %255 = vector.shape_cast %254 : vector<1x4x128xf32> to vector<4x128xf32>
    %c38 = arith.constant 38 : index
    %c0_181 = arith.constant 0 : index
    %256 = vector.load %arg2[%c38, %c0_181] : memref<49x128xf32, #tpu.memory_space<vmem>>, vector<1x128xf32>
    %257 = vector.broadcast %256 : vector<1x128xf32> to vector<4x128xf32>
    %258 = arith.mulf %255, %257 : vector<4x128xf32>
    %259 = arith.addf %253, %258 : vector<4x128xf32>
    %c5_182 = arith.constant 5 : index
    %c4_183 = arith.constant 4 : index
    %c0_184 = arith.constant 0 : index
    %260 = vector.load %arg12[%c5_182, %c4_183, %c0_184] : memref<10x10x128xf32, #tpu.memory_space<vmem>>, vector<1x4x128xf32>
    %261 = vector.shape_cast %260 : vector<1x4x128xf32> to vector<4x128xf32>
    %c39 = arith.constant 39 : index
    %c0_185 = arith.constant 0 : index
    %262 = vector.load %arg2[%c39, %c0_185] : memref<49x128xf32, #tpu.memory_space<vmem>>, vector<1x128xf32>
    %263 = vector.broadcast %262 : vector<1x128xf32> to vector<4x128xf32>
    %264 = arith.mulf %261, %263 : vector<4x128xf32>
    %265 = arith.addf %259, %264 : vector<4x128xf32>
    %c5_186 = arith.constant 5 : index
    %c5_187 = arith.constant 5 : index
    %c0_188 = arith.constant 0 : index
    %266 = vector.load %arg12[%c5_186, %c5_187, %c0_188] : memref<10x10x128xf32, #tpu.memory_space<vmem>>, vector<1x4x128xf32>
    %267 = vector.shape_cast %266 : vector<1x4x128xf32> to vector<4x128xf32>
    %c40 = arith.constant 40 : index
    %c0_189 = arith.constant 0 : index
    %268 = vector.load %arg2[%c40, %c0_189] : memref<49x128xf32, #tpu.memory_space<vmem>>, vector<1x128xf32>
    %269 = vector.broadcast %268 : vector<1x128xf32> to vector<4x128xf32>
    %270 = arith.mulf %267, %269 : vector<4x128xf32>
    %271 = arith.addf %265, %270 : vector<4x128xf32>
    %c5_190 = arith.constant 5 : index
    %c6_191 = arith.constant 6 : index
    %c0_192 = arith.constant 0 : index
    %272 = vector.load %arg12[%c5_190, %c6_191, %c0_192] : memref<10x10x128xf32, #tpu.memory_space<vmem>>, vector<1x4x128xf32>
    %273 = vector.shape_cast %272 : vector<1x4x128xf32> to vector<4x128xf32>
    %c41 = arith.constant 41 : index
    %c0_193 = arith.constant 0 : index
    %274 = vector.load %arg2[%c41, %c0_193] : memref<49x128xf32, #tpu.memory_space<vmem>>, vector<1x128xf32>
    %275 = vector.broadcast %274 : vector<1x128xf32> to vector<4x128xf32>
    %276 = arith.mulf %273, %275 : vector<4x128xf32>
    %277 = arith.addf %271, %276 : vector<4x128xf32>
    %c6_194 = arith.constant 6 : index
    %c0_195 = arith.constant 0 : index
    %c0_196 = arith.constant 0 : index
    %278 = vector.load %arg12[%c6_194, %c0_195, %c0_196] : memref<10x10x128xf32, #tpu.memory_space<vmem>>, vector<1x4x128xf32>
    %279 = vector.shape_cast %278 : vector<1x4x128xf32> to vector<4x128xf32>
    %c42 = arith.constant 42 : index
    %c0_197 = arith.constant 0 : index
    %280 = vector.load %arg2[%c42, %c0_197] : memref<49x128xf32, #tpu.memory_space<vmem>>, vector<1x128xf32>
    %281 = vector.broadcast %280 : vector<1x128xf32> to vector<4x128xf32>
    %282 = arith.mulf %279, %281 : vector<4x128xf32>
    %283 = arith.addf %277, %282 : vector<4x128xf32>
    %c6_198 = arith.constant 6 : index
    %c1_199 = arith.constant 1 : index
    %c0_200 = arith.constant 0 : index
    %284 = vector.load %arg12[%c6_198, %c1_199, %c0_200] : memref<10x10x128xf32, #tpu.memory_space<vmem>>, vector<1x4x128xf32>
    %285 = vector.shape_cast %284 : vector<1x4x128xf32> to vector<4x128xf32>
    %c43 = arith.constant 43 : index
    %c0_201 = arith.constant 0 : index
    %286 = vector.load %arg2[%c43, %c0_201] : memref<49x128xf32, #tpu.memory_space<vmem>>, vector<1x128xf32>
    %287 = vector.broadcast %286 : vector<1x128xf32> to vector<4x128xf32>
    %288 = arith.mulf %285, %287 : vector<4x128xf32>
    %289 = arith.addf %283, %288 : vector<4x128xf32>
    %c6_202 = arith.constant 6 : index
    %c2_203 = arith.constant 2 : index
    %c0_204 = arith.constant 0 : index
    %290 = vector.load %arg12[%c6_202, %c2_203, %c0_204] : memref<10x10x128xf32, #tpu.memory_space<vmem>>, vector<1x4x128xf32>
    %291 = vector.shape_cast %290 : vector<1x4x128xf32> to vector<4x128xf32>
    %c44 = arith.constant 44 : index
    %c0_205 = arith.constant 0 : index
    %292 = vector.load %arg2[%c44, %c0_205] : memref<49x128xf32, #tpu.memory_space<vmem>>, vector<1x128xf32>
    %293 = vector.broadcast %292 : vector<1x128xf32> to vector<4x128xf32>
    %294 = arith.mulf %291, %293 : vector<4x128xf32>
    %295 = arith.addf %289, %294 : vector<4x128xf32>
    %c6_206 = arith.constant 6 : index
    %c3_207 = arith.constant 3 : index
    %c0_208 = arith.constant 0 : index
    %296 = vector.load %arg12[%c6_206, %c3_207, %c0_208] : memref<10x10x128xf32, #tpu.memory_space<vmem>>, vector<1x4x128xf32>
    %297 = vector.shape_cast %296 : vector<1x4x128xf32> to vector<4x128xf32>
    %c45 = arith.constant 45 : index
    %c0_209 = arith.constant 0 : index
    %298 = vector.load %arg2[%c45, %c0_209] : memref<49x128xf32, #tpu.memory_space<vmem>>, vector<1x128xf32>
    %299 = vector.broadcast %298 : vector<1x128xf32> to vector<4x128xf32>
    %300 = arith.mulf %297, %299 : vector<4x128xf32>
    %301 = arith.addf %295, %300 : vector<4x128xf32>
    %c6_210 = arith.constant 6 : index
    %c4_211 = arith.constant 4 : index
    %c0_212 = arith.constant 0 : index
    %302 = vector.load %arg12[%c6_210, %c4_211, %c0_212] : memref<10x10x128xf32, #tpu.memory_space<vmem>>, vector<1x4x128xf32>
    %303 = vector.shape_cast %302 : vector<1x4x128xf32> to vector<4x128xf32>
    %c46 = arith.constant 46 : index
    %c0_213 = arith.constant 0 : index
    %304 = vector.load %arg2[%c46, %c0_213] : memref<49x128xf32, #tpu.memory_space<vmem>>, vector<1x128xf32>
    %305 = vector.broadcast %304 : vector<1x128xf32> to vector<4x128xf32>
    %306 = arith.mulf %303, %305 : vector<4x128xf32>
    %307 = arith.addf %301, %306 : vector<4x128xf32>
    %c6_214 = arith.constant 6 : index
    %c5_215 = arith.constant 5 : index
    %c0_216 = arith.constant 0 : index
    %308 = vector.load %arg12[%c6_214, %c5_215, %c0_216] : memref<10x10x128xf32, #tpu.memory_space<vmem>>, vector<1x4x128xf32>
    %309 = vector.shape_cast %308 : vector<1x4x128xf32> to vector<4x128xf32>
    %c47 = arith.constant 47 : index
    %c0_217 = arith.constant 0 : index
    %310 = vector.load %arg2[%c47, %c0_217] : memref<49x128xf32, #tpu.memory_space<vmem>>, vector<1x128xf32>
    %311 = vector.broadcast %310 : vector<1x128xf32> to vector<4x128xf32>
    %312 = arith.mulf %309, %311 : vector<4x128xf32>
    %313 = arith.addf %307, %312 : vector<4x128xf32>
    %c6_218 = arith.constant 6 : index
    %c6_219 = arith.constant 6 : index
    %c0_220 = arith.constant 0 : index
    %314 = vector.load %arg12[%c6_218, %c6_219, %c0_220] : memref<10x10x128xf32, #tpu.memory_space<vmem>>, vector<1x4x128xf32>
    %315 = vector.shape_cast %314 : vector<1x4x128xf32> to vector<4x128xf32>
    %c48 = arith.constant 48 : index
    %c0_221 = arith.constant 0 : index
    %316 = vector.load %arg2[%c48, %c0_221] : memref<49x128xf32, #tpu.memory_space<vmem>>, vector<1x128xf32>
    %317 = vector.broadcast %316 : vector<1x128xf32> to vector<4x128xf32>
    %318 = arith.mulf %315, %317 : vector<4x128xf32>
    %319 = arith.addf %313, %318 : vector<4x128xf32>
    %c0_222 = arith.constant 0 : index
    %c0_223 = arith.constant 0 : index
    %320 = vector.load %arg13[%c0_222, %c0_223] : memref<16x128xf32, #tpu.memory_space<vmem>>, vector<4x128xf32>
    tpu.vector_store %arg13[%c0_222, %c0_223], %319 {strides = array<i32>} : memref<16x128xf32, #tpu.memory_space<vmem>>, vector<4x128xf32>,
    %cst_224 = arith.constant 0.000000e+00 : f32
    %321 = vector.broadcast %cst_224 : f32 to vector<4x128xf32>
    %322 = vector.broadcast %22 : vector<1x128xf32> to vector<4x128xf32>
    %323 = arith.addf %321, %322 : vector<4x128xf32>
    %c1_225 = arith.constant 1 : index
    %c0_226 = arith.constant 0 : index
    %c0_227 = arith.constant 0 : index
    %324 = vector.load %arg12[%c1_225, %c0_226, %c0_227] : memref<10x10x128xf32, #tpu.memory_space<vmem>>, vector<1x4x128xf32>
    %325 = vector.shape_cast %324 : vector<1x4x128xf32> to vector<4x128xf32>
    %c0_228 = arith.constant 0 : index
    %c0_229 = arith.constant 0 : index
    %326 = vector.load %arg2[%c0_228, %c0_229] : memref<49x128xf32, #tpu.memory_space<vmem>>, vector<1x128xf32>
    %327 = vector.broadcast %326 : vector<1x128xf32> to vector<4x128xf32>
    %328 = arith.mulf %325, %327 : vector<4x128xf32>
    %329 = arith.addf %323, %328 : vector<4x128xf32>
    %c1_230 = arith.constant 1 : index
    %c1_231 = arith.constant 1 : index
    %c0_232 = arith.constant 0 : index
    %330 = vector.load %arg12[%c1_230, %c1_231, %c0_232] : memref<10x10x128xf32, #tpu.memory_space<vmem>>, vector<1x4x128xf32>
    %331 = vector.shape_cast %330 : vector<1x4x128xf32> to vector<4x128xf32>
    %c1_233 = arith.constant 1 : index
    %c0_234 = arith.constant 0 : index
    %332 = vector.load %arg2[%c1_233, %c0_234] : memref<49x128xf32, #tpu.memory_space<vmem>>, vector<1x128xf32>
    %333 = vector.broadcast %332 : vector<1x128xf32> to vector<4x128xf32>
    %334 = arith.mulf %331, %333 : vector<4x128xf32>
    %335 = arith.addf %329, %334 : vector<4x128xf32>
    %c1_235 = arith.constant 1 : index
    %c2_236 = arith.constant 2 : index
    %c0_237 = arith.constant 0 : index
    %336 = vector.load %arg12[%c1_235, %c2_236, %c0_237] : memref<10x10x128xf32, #tpu.memory_space<vmem>>, vector<1x4x128xf32>
    %337 = vector.shape_cast %336 : vector<1x4x128xf32> to vector<4x128xf32>
    %c2_238 = arith.constant 2 : index
    %c0_239 = arith.constant 0 : index
    %338 = vector.load %arg2[%c2_238, %c0_239] : memref<49x128xf32, #tpu.memory_space<vmem>>, vector<1x128xf32>
    %339 = vector.broadcast %338 : vector<1x128xf32> to vector<4x128xf32>
    %340 = arith.mulf %337, %339 : vector<4x128xf32>
    %341 = arith.addf %335, %340 : vector<4x128xf32>
    %c1_240 = arith.constant 1 : index
    %c3_241 = arith.constant 3 : index
    %c0_242 = arith.constant 0 : index
    %342 = vector.load %arg12[%c1_240, %c3_241, %c0_242] : memref<10x10x128xf32, #tpu.memory_space<vmem>>, vector<1x4x128xf32>
    %343 = vector.shape_cast %342 : vector<1x4x128xf32> to vector<4x128xf32>
    %c3_243 = arith.constant 3 : index
    %c0_244 = arith.constant 0 : index
    %344 = vector.load %arg2[%c3_243, %c0_244] : memref<49x128xf32, #tpu.memory_space<vmem>>, vector<1x128xf32>
    %345 = vector.broadcast %344 : vector<1x128xf32> to vector<4x128xf32>
    %346 = arith.mulf %343, %345 : vector<4x128xf32>
    %347 = arith.addf %341, %346 : vector<4x128xf32>
    %c1_245 = arith.constant 1 : index
    %c4_246 = arith.constant 4 : index
    %c0_247 = arith.constant 0 : index
    %348 = vector.load %arg12[%c1_245, %c4_246, %c0_247] : memref<10x10x128xf32, #tpu.memory_space<vmem>>, vector<1x4x128xf32>
    %349 = vector.shape_cast %348 : vector<1x4x128xf32> to vector<4x128xf32>
    %c4_248 = arith.constant 4 : index
    %c0_249 = arith.constant 0 : index
    %350 = vector.load %arg2[%c4_248, %c0_249] : memref<49x128xf32, #tpu.memory_space<vmem>>, vector<1x128xf32>
    %351 = vector.broadcast %350 : vector<1x128xf32> to vector<4x128xf32>
    %352 = arith.mulf %349, %351 : vector<4x128xf32>
    %353 = arith.addf %347, %352 : vector<4x128xf32>
    %c1_250 = arith.constant 1 : index
    %c5_251 = arith.constant 5 : index
    %c0_252 = arith.constant 0 : index
    %354 = vector.load %arg12[%c1_250, %c5_251, %c0_252] : memref<10x10x128xf32, #tpu.memory_space<vmem>>, vector<1x4x128xf32>
    %355 = vector.shape_cast %354 : vector<1x4x128xf32> to vector<4x128xf32>
    %c5_253 = arith.constant 5 : index
    %c0_254 = arith.constant 0 : index
    %356 = vector.load %arg2[%c5_253, %c0_254] : memref<49x128xf32, #tpu.memory_space<vmem>>, vector<1x128xf32>
    %357 = vector.broadcast %356 : vector<1x128xf32> to vector<4x128xf32>
    %358 = arith.mulf %355, %357 : vector<4x128xf32>
    %359 = arith.addf %353, %358 : vector<4x128xf32>
    %c1_255 = arith.constant 1 : index
    %c6_256 = arith.constant 6 : index
    %c0_257 = arith.constant 0 : index
    %360 = vector.load %arg12[%c1_255, %c6_256, %c0_257] : memref<10x10x128xf32, #tpu.memory_space<vmem>>, vector<1x4x128xf32>
    %361 = vector.shape_cast %360 : vector<1x4x128xf32> to vector<4x128xf32>
    %c6_258 = arith.constant 6 : index
    %c0_259 = arith.constant 0 : index
    %362 = vector.load %arg2[%c6_258, %c0_259] : memref<49x128xf32, #tpu.memory_space<vmem>>, vector<1x128xf32>
    %363 = vector.broadcast %362 : vector<1x128xf32> to vector<4x128xf32>
    %364 = arith.mulf %361, %363 : vector<4x128xf32>
    %365 = arith.addf %359, %364 : vector<4x128xf32>
    %c2_260 = arith.constant 2 : index
    %c0_261 = arith.constant 0 : index
    %c0_262 = arith.constant 0 : index
    %366 = vector.load %arg12[%c2_260, %c0_261, %c0_262] : memref<10x10x128xf32, #tpu.memory_space<vmem>>, vector<1x4x128xf32>
    %367 = vector.shape_cast %366 : vector<1x4x128xf32> to vector<4x128xf32>
    %c7_263 = arith.constant 7 : index
    %c0_264 = arith.constant 0 : index
    %368 = vector.load %arg2[%c7_263, %c0_264] : memref<49x128xf32, #tpu.memory_space<vmem>>, vector<1x128xf32>
    %369 = vector.broadcast %368 : vector<1x128xf32> to vector<4x128xf32>
    %370 = arith.mulf %367, %369 : vector<4x128xf32>
    %371 = arith.addf %365, %370 : vector<4x128xf32>
    %c2_265 = arith.constant 2 : index
    %c1_266 = arith.constant 1 : index
    %c0_267 = arith.constant 0 : index
    %372 = vector.load %arg12[%c2_265, %c1_266, %c0_267] : memref<10x10x128xf32, #tpu.memory_space<vmem>>, vector<1x4x128xf32>
    %373 = vector.shape_cast %372 : vector<1x4x128xf32> to vector<4x128xf32>
    %c8_268 = arith.constant 8 : index
    %c0_269 = arith.constant 0 : index
    %374 = vector.load %arg2[%c8_268, %c0_269] : memref<49x128xf32, #tpu.memory_space<vmem>>, vector<1x128xf32>
    %375 = vector.broadcast %374 : vector<1x128xf32> to vector<4x128xf32>
    %376 = arith.mulf %373, %375 : vector<4x128xf32>
    %377 = arith.addf %371, %376 : vector<4x128xf32>
    %c2_270 = arith.constant 2 : index
    %c2_271 = arith.constant 2 : index
    %c0_272 = arith.constant 0 : index
    %378 = vector.load %arg12[%c2_270, %c2_271, %c0_272] : memref<10x10x128xf32, #tpu.memory_space<vmem>>, vector<1x4x128xf32>
    %379 = vector.shape_cast %378 : vector<1x4x128xf32> to vector<4x128xf32>
    %c9_273 = arith.constant 9 : index
    %c0_274 = arith.constant 0 : index
    %380 = vector.load %arg2[%c9_273, %c0_274] : memref<49x128xf32, #tpu.memory_space<vmem>>, vector<1x128xf32>
    %381 = vector.broadcast %380 : vector<1x128xf32> to vector<4x128xf32>
    %382 = arith.mulf %379, %381 : vector<4x128xf32>
    %383 = arith.addf %377, %382 : vector<4x128xf32>
    %c2_275 = arith.constant 2 : index
    %c3_276 = arith.constant 3 : index
    %c0_277 = arith.constant 0 : index
    %384 = vector.load %arg12[%c2_275, %c3_276, %c0_277] : memref<10x10x128xf32, #tpu.memory_space<vmem>>, vector<1x4x128xf32>
    %385 = vector.shape_cast %384 : vector<1x4x128xf32> to vector<4x128xf32>
    %c10_278 = arith.constant 10 : index
    %c0_279 = arith.constant 0 : index
    %386 = vector.load %arg2[%c10_278, %c0_279] : memref<49x128xf32, #tpu.memory_space<vmem>>, vector<1x128xf32>
    %387 = vector.broadcast %386 : vector<1x128xf32> to vector<4x128xf32>
    %388 = arith.mulf %385, %387 : vector<4x128xf32>
    %389 = arith.addf %383, %388 : vector<4x128xf32>
    %c2_280 = arith.constant 2 : index
    %c4_281 = arith.constant 4 : index
    %c0_282 = arith.constant 0 : index
    %390 = vector.load %arg12[%c2_280, %c4_281, %c0_282] : memref<10x10x128xf32, #tpu.memory_space<vmem>>, vector<1x4x128xf32>
    %391 = vector.shape_cast %390 : vector<1x4x128xf32> to vector<4x128xf32>
    %c11_283 = arith.constant 11 : index
    %c0_284 = arith.constant 0 : index
    %392 = vector.load %arg2[%c11_283, %c0_284] : memref<49x128xf32, #tpu.memory_space<vmem>>, vector<1x128xf32>
    %393 = vector.broadcast %392 : vector<1x128xf32> to vector<4x128xf32>
    %394 = arith.mulf %391, %393 : vector<4x128xf32>
    %395 = arith.addf %389, %394 : vector<4x128xf32>
    %c2_285 = arith.constant 2 : index
    %c5_286 = arith.constant 5 : index
    %c0_287 = arith.constant 0 : index
    %396 = vector.load %arg12[%c2_285, %c5_286, %c0_287] : memref<10x10x128xf32, #tpu.memory_space<vmem>>, vector<1x4x128xf32>
    %397 = vector.shape_cast %396 : vector<1x4x128xf32> to vector<4x128xf32>
    %c12_288 = arith.constant 12 : index
    %c0_289 = arith.constant 0 : index
    %398 = vector.load %arg2[%c12_288, %c0_289] : memref<49x128xf32, #tpu.memory_space<vmem>>, vector<1x128xf32>
    %399 = vector.broadcast %398 : vector<1x128xf32> to vector<4x128xf32>
    %400 = arith.mulf %397, %399 : vector<4x128xf32>
    %401 = arith.addf %395, %400 : vector<4x128xf32>
    %c2_290 = arith.constant 2 : index
    %c6_291 = arith.constant 6 : index
    %c0_292 = arith.constant 0 : index
    %402 = vector.load %arg12[%c2_290, %c6_291, %c0_292] : memref<10x10x128xf32, #tpu.memory_space<vmem>>, vector<1x4x128xf32>
    %403 = vector.shape_cast %402 : vector<1x4x128xf32> to vector<4x128xf32>
    %c13_293 = arith.constant 13 : index
    %c0_294 = arith.constant 0 : index
    %404 = vector.load %arg2[%c13_293, %c0_294] : memref<49x128xf32, #tpu.memory_space<vmem>>, vector<1x128xf32>
    %405 = vector.broadcast %404 : vector<1x128xf32> to vector<4x128xf32>
    %406 = arith.mulf %403, %405 : vector<4x128xf32>
    %407 = arith.addf %401, %406 : vector<4x128xf32>
    %c3_295 = arith.constant 3 : index
    %c0_296 = arith.constant 0 : index
    %c0_297 = arith.constant 0 : index
    %408 = vector.load %arg12[%c3_295, %c0_296, %c0_297] : memref<10x10x128xf32, #tpu.memory_space<vmem>>, vector<1x4x128xf32>
    %409 = vector.shape_cast %408 : vector<1x4x128xf32> to vector<4x128xf32>
    %c14_298 = arith.constant 14 : index
    %c0_299 = arith.constant 0 : index
    %410 = vector.load %arg2[%c14_298, %c0_299] : memref<49x128xf32, #tpu.memory_space<vmem>>, vector<1x128xf32>
    %411 = vector.broadcast %410 : vector<1x128xf32> to vector<4x128xf32>
    %412 = arith.mulf %409, %411 : vector<4x128xf32>
    %413 = arith.addf %407, %412 : vector<4x128xf32>
    %c3_300 = arith.constant 3 : index
    %c1_301 = arith.constant 1 : index
    %c0_302 = arith.constant 0 : index
    %414 = vector.load %arg12[%c3_300, %c1_301, %c0_302] : memref<10x10x128xf32, #tpu.memory_space<vmem>>, vector<1x4x128xf32>
    %415 = vector.shape_cast %414 : vector<1x4x128xf32> to vector<4x128xf32>
    %c15_303 = arith.constant 15 : index
    %c0_304 = arith.constant 0 : index
    %416 = vector.load %arg2[%c15_303, %c0_304] : memref<49x128xf32, #tpu.memory_space<vmem>>, vector<1x128xf32>
    %417 = vector.broadcast %416 : vector<1x128xf32> to vector<4x128xf32>
    %418 = arith.mulf %415, %417 : vector<4x128xf32>
    %419 = arith.addf %413, %418 : vector<4x128xf32>
    %c3_305 = arith.constant 3 : index
    %c2_306 = arith.constant 2 : index
    %c0_307 = arith.constant 0 : index
    %420 = vector.load %arg12[%c3_305, %c2_306, %c0_307] : memref<10x10x128xf32, #tpu.memory_space<vmem>>, vector<1x4x128xf32>
    %421 = vector.shape_cast %420 : vector<1x4x128xf32> to vector<4x128xf32>
    %c16_308 = arith.constant 16 : index
    %c0_309 = arith.constant 0 : index
    %422 = vector.load %arg2[%c16_308, %c0_309] : memref<49x128xf32, #tpu.memory_space<vmem>>, vector<1x128xf32>
    %423 = vector.broadcast %422 : vector<1x128xf32> to vector<4x128xf32>
    %424 = arith.mulf %421, %423 : vector<4x128xf32>
    %425 = arith.addf %419, %424 : vector<4x128xf32>
    %c3_310 = arith.constant 3 : index
    %c3_311 = arith.constant 3 : index
    %c0_312 = arith.constant 0 : index
    %426 = vector.load %arg12[%c3_310, %c3_311, %c0_312] : memref<10x10x128xf32, #tpu.memory_space<vmem>>, vector<1x4x128xf32>
    %427 = vector.shape_cast %426 : vector<1x4x128xf32> to vector<4x128xf32>
    %c17_313 = arith.constant 17 : index
    %c0_314 = arith.constant 0 : index
    %428 = vector.load %arg2[%c17_313, %c0_314] : memref<49x128xf32, #tpu.memory_space<vmem>>, vector<1x128xf32>
    %429 = vector.broadcast %428 : vector<1x128xf32> to vector<4x128xf32>
    %430 = arith.mulf %427, %429 : vector<4x128xf32>
    %431 = arith.addf %425, %430 : vector<4x128xf32>
    %c3_315 = arith.constant 3 : index
    %c4_316 = arith.constant 4 : index
    %c0_317 = arith.constant 0 : index
    %432 = vector.load %arg12[%c3_315, %c4_316, %c0_317] : memref<10x10x128xf32, #tpu.memory_space<vmem>>, vector<1x4x128xf32>
    %433 = vector.shape_cast %432 : vector<1x4x128xf32> to vector<4x128xf32>
    %c18_318 = arith.constant 18 : index
    %c0_319 = arith.constant 0 : index
    %434 = vector.load %arg2[%c18_318, %c0_319] : memref<49x128xf32, #tpu.memory_space<vmem>>, vector<1x128xf32>
    %435 = vector.broadcast %434 : vector<1x128xf32> to vector<4x128xf32>
    %436 = arith.mulf %433, %435 : vector<4x128xf32>
    %437 = arith.addf %431, %436 : vector<4x128xf32>
    %c3_320 = arith.constant 3 : index
    %c5_321 = arith.constant 5 : index
    %c0_322 = arith.constant 0 : index
    %438 = vector.load %arg12[%c3_320, %c5_321, %c0_322] : memref<10x10x128xf32, #tpu.memory_space<vmem>>, vector<1x4x128xf32>
    %439 = vector.shape_cast %438 : vector<1x4x128xf32> to vector<4x128xf32>
    %c19_323 = arith.constant 19 : index
    %c0_324 = arith.constant 0 : index
    %440 = vector.load %arg2[%c19_323, %c0_324] : memref<49x128xf32, #tpu.memory_space<vmem>>, vector<1x128xf32>
    %441 = vector.broadcast %440 : vector<1x128xf32> to vector<4x128xf32>
    %442 = arith.mulf %439, %441 : vector<4x128xf32>
    %443 = arith.addf %437, %442 : vector<4x128xf32>
    %c3_325 = arith.constant 3 : index
    %c6_326 = arith.constant 6 : index
    %c0_327 = arith.constant 0 : index
    %444 = vector.load %arg12[%c3_325, %c6_326, %c0_327] : memref<10x10x128xf32, #tpu.memory_space<vmem>>, vector<1x4x128xf32>
    %445 = vector.shape_cast %444 : vector<1x4x128xf32> to vector<4x128xf32>
    %c20_328 = arith.constant 20 : index
    %c0_329 = arith.constant 0 : index
    %446 = vector.load %arg2[%c20_328, %c0_329] : memref<49x128xf32, #tpu.memory_space<vmem>>, vector<1x128xf32>
    %447 = vector.broadcast %446 : vector<1x128xf32> to vector<4x128xf32>
    %448 = arith.mulf %445, %447 : vector<4x128xf32>
    %449 = arith.addf %443, %448 : vector<4x128xf32>
    %c4_330 = arith.constant 4 : index
    %c0_331 = arith.constant 0 : index
    %c0_332 = arith.constant 0 : index
    %450 = vector.load %arg12[%c4_330, %c0_331, %c0_332] : memref<10x10x128xf32, #tpu.memory_space<vmem>>, vector<1x4x128xf32>
    %451 = vector.shape_cast %450 : vector<1x4x128xf32> to vector<4x128xf32>
    %c21_333 = arith.constant 21 : index
    %c0_334 = arith.constant 0 : index
    %452 = vector.load %arg2[%c21_333, %c0_334] : memref<49x128xf32, #tpu.memory_space<vmem>>, vector<1x128xf32>
    %453 = vector.broadcast %452 : vector<1x128xf32> to vector<4x128xf32>
    %454 = arith.mulf %451, %453 : vector<4x128xf32>
    %455 = arith.addf %449, %454 : vector<4x128xf32>
    %c4_335 = arith.constant 4 : index
    %c1_336 = arith.constant 1 : index
    %c0_337 = arith.constant 0 : index
    %456 = vector.load %arg12[%c4_335, %c1_336, %c0_337] : memref<10x10x128xf32, #tpu.memory_space<vmem>>, vector<1x4x128xf32>
    %457 = vector.shape_cast %456 : vector<1x4x128xf32> to vector<4x128xf32>
    %c22_338 = arith.constant 22 : index
    %c0_339 = arith.constant 0 : index
    %458 = vector.load %arg2[%c22_338, %c0_339] : memref<49x128xf32, #tpu.memory_space<vmem>>, vector<1x128xf32>
    %459 = vector.broadcast %458 : vector<1x128xf32> to vector<4x128xf32>
    %460 = arith.mulf %457, %459 : vector<4x128xf32>
    %461 = arith.addf %455, %460 : vector<4x128xf32>
    %c4_340 = arith.constant 4 : index
    %c2_341 = arith.constant 2 : index
    %c0_342 = arith.constant 0 : index
    %462 = vector.load %arg12[%c4_340, %c2_341, %c0_342] : memref<10x10x128xf32, #tpu.memory_space<vmem>>, vector<1x4x128xf32>
    %463 = vector.shape_cast %462 : vector<1x4x128xf32> to vector<4x128xf32>
    %c23_343 = arith.constant 23 : index
    %c0_344 = arith.constant 0 : index
    %464 = vector.load %arg2[%c23_343, %c0_344] : memref<49x128xf32, #tpu.memory_space<vmem>>, vector<1x128xf32>
    %465 = vector.broadcast %464 : vector<1x128xf32> to vector<4x128xf32>
    %466 = arith.mulf %463, %465 : vector<4x128xf32>
    %467 = arith.addf %461, %466 : vector<4x128xf32>
    %c4_345 = arith.constant 4 : index
    %c3_346 = arith.constant 3 : index
    %c0_347 = arith.constant 0 : index
    %468 = vector.load %arg12[%c4_345, %c3_346, %c0_347] : memref<10x10x128xf32, #tpu.memory_space<vmem>>, vector<1x4x128xf32>
    %469 = vector.shape_cast %468 : vector<1x4x128xf32> to vector<4x128xf32>
    %c24_348 = arith.constant 24 : index
    %c0_349 = arith.constant 0 : index
    %470 = vector.load %arg2[%c24_348, %c0_349] : memref<49x128xf32, #tpu.memory_space<vmem>>, vector<1x128xf32>
    %471 = vector.broadcast %470 : vector<1x128xf32> to vector<4x128xf32>
    %472 = arith.mulf %469, %471 : vector<4x128xf32>
    %473 = arith.addf %467, %472 : vector<4x128xf32>
    %c4_350 = arith.constant 4 : index
    %c4_351 = arith.constant 4 : index
    %c0_352 = arith.constant 0 : index
    %474 = vector.load %arg12[%c4_350, %c4_351, %c0_352] : memref<10x10x128xf32, #tpu.memory_space<vmem>>, vector<1x4x128xf32>
    %475 = vector.shape_cast %474 : vector<1x4x128xf32> to vector<4x128xf32>
    %c25_353 = arith.constant 25 : index
    %c0_354 = arith.constant 0 : index
    %476 = vector.load %arg2[%c25_353, %c0_354] : memref<49x128xf32, #tpu.memory_space<vmem>>, vector<1x128xf32>
    %477 = vector.broadcast %476 : vector<1x128xf32> to vector<4x128xf32>
    %478 = arith.mulf %475, %477 : vector<4x128xf32>
    %479 = arith.addf %473, %478 : vector<4x128xf32>
    %c4_355 = arith.constant 4 : index
    %c5_356 = arith.constant 5 : index
    %c0_357 = arith.constant 0 : index
    %480 = vector.load %arg12[%c4_355, %c5_356, %c0_357] : memref<10x10x128xf32, #tpu.memory_space<vmem>>, vector<1x4x128xf32>
    %481 = vector.shape_cast %480 : vector<1x4x128xf32> to vector<4x128xf32>
    %c26_358 = arith.constant 26 : index
    %c0_359 = arith.constant 0 : index
    %482 = vector.load %arg2[%c26_358, %c0_359] : memref<49x128xf32, #tpu.memory_space<vmem>>, vector<1x128xf32>
    %483 = vector.broadcast %482 : vector<1x128xf32> to vector<4x128xf32>
    %484 = arith.mulf %481, %483 : vector<4x128xf32>
    %485 = arith.addf %479, %484 : vector<4x128xf32>
    %c4_360 = arith.constant 4 : index
    %c6_361 = arith.constant 6 : index
    %c0_362 = arith.constant 0 : index
    %486 = vector.load %arg12[%c4_360, %c6_361, %c0_362] : memref<10x10x128xf32, #tpu.memory_space<vmem>>, vector<1x4x128xf32>
    %487 = vector.shape_cast %486 : vector<1x4x128xf32> to vector<4x128xf32>
    %c27_363 = arith.constant 27 : index
    %c0_364 = arith.constant 0 : index
    %488 = vector.load %arg2[%c27_363, %c0_364] : memref<49x128xf32, #tpu.memory_space<vmem>>, vector<1x128xf32>
    %489 = vector.broadcast %488 : vector<1x128xf32> to vector<4x128xf32>
    %490 = arith.mulf %487, %489 : vector<4x128xf32>
    %491 = arith.addf %485, %490 : vector<4x128xf32>
    %c5_365 = arith.constant 5 : index
    %c0_366 = arith.constant 0 : index
    %c0_367 = arith.constant 0 : index
    %492 = vector.load %arg12[%c5_365, %c0_366, %c0_367] : memref<10x10x128xf32, #tpu.memory_space<vmem>>, vector<1x4x128xf32>
    %493 = vector.shape_cast %492 : vector<1x4x128xf32> to vector<4x128xf32>
    %c28_368 = arith.constant 28 : index
    %c0_369 = arith.constant 0 : index
    %494 = vector.load %arg2[%c28_368, %c0_369] : memref<49x128xf32, #tpu.memory_space<vmem>>, vector<1x128xf32>
    %495 = vector.broadcast %494 : vector<1x128xf32> to vector<4x128xf32>
    %496 = arith.mulf %493, %495 : vector<4x128xf32>
    %497 = arith.addf %491, %496 : vector<4x128xf32>
    %c5_370 = arith.constant 5 : index
    %c1_371 = arith.constant 1 : index
    %c0_372 = arith.constant 0 : index
    %498 = vector.load %arg12[%c5_370, %c1_371, %c0_372] : memref<10x10x128xf32, #tpu.memory_space<vmem>>, vector<1x4x128xf32>
    %499 = vector.shape_cast %498 : vector<1x4x128xf32> to vector<4x128xf32>
    %c29_373 = arith.constant 29 : index
    %c0_374 = arith.constant 0 : index
    %500 = vector.load %arg2[%c29_373, %c0_374] : memref<49x128xf32, #tpu.memory_space<vmem>>, vector<1x128xf32>
    %501 = vector.broadcast %500 : vector<1x128xf32> to vector<4x128xf32>
    %502 = arith.mulf %499, %501 : vector<4x128xf32>
    %503 = arith.addf %497, %502 : vector<4x128xf32>
    %c5_375 = arith.constant 5 : index
    %c2_376 = arith.constant 2 : index
    %c0_377 = arith.constant 0 : index
    %504 = vector.load %arg12[%c5_375, %c2_376, %c0_377] : memref<10x10x128xf32, #tpu.memory_space<vmem>>, vector<1x4x128xf32>
    %505 = vector.shape_cast %504 : vector<1x4x128xf32> to vector<4x128xf32>
    %c30_378 = arith.constant 30 : index
    %c0_379 = arith.constant 0 : index
    %506 = vector.load %arg2[%c30_378, %c0_379] : memref<49x128xf32, #tpu.memory_space<vmem>>, vector<1x128xf32>
    %507 = vector.broadcast %506 : vector<1x128xf32> to vector<4x128xf32>
    %508 = arith.mulf %505, %507 : vector<4x128xf32>
    %509 = arith.addf %503, %508 : vector<4x128xf32>
    %c5_380 = arith.constant 5 : index
    %c3_381 = arith.constant 3 : index
    %c0_382 = arith.constant 0 : index
    %510 = vector.load %arg12[%c5_380, %c3_381, %c0_382] : memref<10x10x128xf32, #tpu.memory_space<vmem>>, vector<1x4x128xf32>
    %511 = vector.shape_cast %510 : vector<1x4x128xf32> to vector<4x128xf32>
    %c31_383 = arith.constant 31 : index
    %c0_384 = arith.constant 0 : index
    %512 = vector.load %arg2[%c31_383, %c0_384] : memref<49x128xf32, #tpu.memory_space<vmem>>, vector<1x128xf32>
    %513 = vector.broadcast %512 : vector<1x128xf32> to vector<4x128xf32>
    %514 = arith.mulf %511, %513 : vector<4x128xf32>
    %515 = arith.addf %509, %514 : vector<4x128xf32>
    %c5_385 = arith.constant 5 : index
    %c4_386 = arith.constant 4 : index
    %c0_387 = arith.constant 0 : index
    %516 = vector.load %arg12[%c5_385, %c4_386, %c0_387] : memref<10x10x128xf32, #tpu.memory_space<vmem>>, vector<1x4x128xf32>
    %517 = vector.shape_cast %516 : vector<1x4x128xf32> to vector<4x128xf32>
    %c32_388 = arith.constant 32 : index
    %c0_389 = arith.constant 0 : index
    %518 = vector.load %arg2[%c32_388, %c0_389] : memref<49x128xf32, #tpu.memory_space<vmem>>, vector<1x128xf32>
    %519 = vector.broadcast %518 : vector<1x128xf32> to vector<4x128xf32>
    %520 = arith.mulf %517, %519 : vector<4x128xf32>
    %521 = arith.addf %515, %520 : vector<4x128xf32>
    %c5_390 = arith.constant 5 : index
    %c5_391 = arith.constant 5 : index
    %c0_392 = arith.constant 0 : index
    %522 = vector.load %arg12[%c5_390, %c5_391, %c0_392] : memref<10x10x128xf32, #tpu.memory_space<vmem>>, vector<1x4x128xf32>
    %523 = vector.shape_cast %522 : vector<1x4x128xf32> to vector<4x128xf32>
    %c33_393 = arith.constant 33 : index
    %c0_394 = arith.constant 0 : index
    %524 = vector.load %arg2[%c33_393, %c0_394] : memref<49x128xf32, #tpu.memory_space<vmem>>, vector<1x128xf32>
    %525 = vector.broadcast %524 : vector<1x128xf32> to vector<4x128xf32>
    %526 = arith.mulf %523, %525 : vector<4x128xf32>
    %527 = arith.addf %521, %526 : vector<4x128xf32>
    %c5_395 = arith.constant 5 : index
    %c6_396 = arith.constant 6 : index
    %c0_397 = arith.constant 0 : index
    %528 = vector.load %arg12[%c5_395, %c6_396, %c0_397] : memref<10x10x128xf32, #tpu.memory_space<vmem>>, vector<1x4x128xf32>
    %529 = vector.shape_cast %528 : vector<1x4x128xf32> to vector<4x128xf32>
    %c34_398 = arith.constant 34 : index
    %c0_399 = arith.constant 0 : index
    %530 = vector.load %arg2[%c34_398, %c0_399] : memref<49x128xf32, #tpu.memory_space<vmem>>, vector<1x128xf32>
    %531 = vector.broadcast %530 : vector<1x128xf32> to vector<4x128xf32>
    %532 = arith.mulf %529, %531 : vector<4x128xf32>
    %533 = arith.addf %527, %532 : vector<4x128xf32>
    %c6_400 = arith.constant 6 : index
    %c0_401 = arith.constant 0 : index
    %c0_402 = arith.constant 0 : index
    %534 = vector.load %arg12[%c6_400, %c0_401, %c0_402] : memref<10x10x128xf32, #tpu.memory_space<vmem>>, vector<1x4x128xf32>
    %535 = vector.shape_cast %534 : vector<1x4x128xf32> to vector<4x128xf32>
    %c35_403 = arith.constant 35 : index
    %c0_404 = arith.constant 0 : index
    %536 = vector.load %arg2[%c35_403, %c0_404] : memref<49x128xf32, #tpu.memory_space<vmem>>, vector<1x128xf32>
    %537 = vector.broadcast %536 : vector<1x128xf32> to vector<4x128xf32>
    %538 = arith.mulf %535, %537 : vector<4x128xf32>
    %539 = arith.addf %533, %538 : vector<4x128xf32>
    %c6_405 = arith.constant 6 : index
    %c1_406 = arith.constant 1 : index
    %c0_407 = arith.constant 0 : index
    %540 = vector.load %arg12[%c6_405, %c1_406, %c0_407] : memref<10x10x128xf32, #tpu.memory_space<vmem>>, vector<1x4x128xf32>
    %541 = vector.shape_cast %540 : vector<1x4x128xf32> to vector<4x128xf32>
    %c36_408 = arith.constant 36 : index
    %c0_409 = arith.constant 0 : index
    %542 = vector.load %arg2[%c36_408, %c0_409] : memref<49x128xf32, #tpu.memory_space<vmem>>, vector<1x128xf32>
    %543 = vector.broadcast %542 : vector<1x128xf32> to vector<4x128xf32>
    %544 = arith.mulf %541, %543 : vector<4x128xf32>
    %545 = arith.addf %539, %544 : vector<4x128xf32>
    %c6_410 = arith.constant 6 : index
    %c2_411 = arith.constant 2 : index
    %c0_412 = arith.constant 0 : index
    %546 = vector.load %arg12[%c6_410, %c2_411, %c0_412] : memref<10x10x128xf32, #tpu.memory_space<vmem>>, vector<1x4x128xf32>
    %547 = vector.shape_cast %546 : vector<1x4x128xf32> to vector<4x128xf32>
    %c37_413 = arith.constant 37 : index
    %c0_414 = arith.constant 0 : index
    %548 = vector.load %arg2[%c37_413, %c0_414] : memref<49x128xf32, #tpu.memory_space<vmem>>, vector<1x128xf32>
    %549 = vector.broadcast %548 : vector<1x128xf32> to vector<4x128xf32>
    %550 = arith.mulf %547, %549 : vector<4x128xf32>
    %551 = arith.addf %545, %550 : vector<4x128xf32>
    %c6_415 = arith.constant 6 : index
    %c3_416 = arith.constant 3 : index
    %c0_417 = arith.constant 0 : index
    %552 = vector.load %arg12[%c6_415, %c3_416, %c0_417] : memref<10x10x128xf32, #tpu.memory_space<vmem>>, vector<1x4x128xf32>
    %553 = vector.shape_cast %552 : vector<1x4x128xf32> to vector<4x128xf32>
    %c38_418 = arith.constant 38 : index
    %c0_419 = arith.constant 0 : index
    %554 = vector.load %arg2[%c38_418, %c0_419] : memref<49x128xf32, #tpu.memory_space<vmem>>, vector<1x128xf32>
    %555 = vector.broadcast %554 : vector<1x128xf32> to vector<4x128xf32>
    %556 = arith.mulf %553, %555 : vector<4x128xf32>
    %557 = arith.addf %551, %556 : vector<4x128xf32>
    %c6_420 = arith.constant 6 : index
    %c4_421 = arith.constant 4 : index
    %c0_422 = arith.constant 0 : index
    %558 = vector.load %arg12[%c6_420, %c4_421, %c0_422] : memref<10x10x128xf32, #tpu.memory_space<vmem>>, vector<1x4x128xf32>
    %559 = vector.shape_cast %558 : vector<1x4x128xf32> to vector<4x128xf32>
    %c39_423 = arith.constant 39 : index
    %c0_424 = arith.constant 0 : index
    %560 = vector.load %arg2[%c39_423, %c0_424] : memref<49x128xf32, #tpu.memory_space<vmem>>, vector<1x128xf32>
    %561 = vector.broadcast %560 : vector<1x128xf32> to vector<4x128xf32>
    %562 = arith.mulf %559, %561 : vector<4x128xf32>
    %563 = arith.addf %557, %562 : vector<4x128xf32>
    %c6_425 = arith.constant 6 : index
    %c5_426 = arith.constant 5 : index
    %c0_427 = arith.constant 0 : index
    %564 = vector.load %arg12[%c6_425, %c5_426, %c0_427] : memref<10x10x128xf32, #tpu.memory_space<vmem>>, vector<1x4x128xf32>
    %565 = vector.shape_cast %564 : vector<1x4x128xf32> to vector<4x128xf32>
    %c40_428 = arith.constant 40 : index
    %c0_429 = arith.constant 0 : index
    %566 = vector.load %arg2[%c40_428, %c0_429] : memref<49x128xf32, #tpu.memory_space<vmem>>, vector<1x128xf32>
    %567 = vector.broadcast %566 : vector<1x128xf32> to vector<4x128xf32>
    %568 = arith.mulf %565, %567 : vector<4x128xf32>
    %569 = arith.addf %563, %568 : vector<4x128xf32>
    %c6_430 = arith.constant 6 : index
    %c6_431 = arith.constant 6 : index
    %c0_432 = arith.constant 0 : index
    %570 = vector.load %arg12[%c6_430, %c6_431, %c0_432] : memref<10x10x128xf32, #tpu.memory_space<vmem>>, vector<1x4x128xf32>
    %571 = vector.shape_cast %570 : vector<1x4x128xf32> to vector<4x128xf32>
    %c41_433 = arith.constant 41 : index
    %c0_434 = arith.constant 0 : index
    %572 = vector.load %arg2[%c41_433, %c0_434] : memref<49x128xf32, #tpu.memory_space<vmem>>, vector<1x128xf32>
    %573 = vector.broadcast %572 : vector<1x128xf32> to vector<4x128xf32>
    %574 = arith.mulf %571, %573 : vector<4x128xf32>
    %575 = arith.addf %569, %574 : vector<4x128xf32>
    %c7_435 = arith.constant 7 : index
    %c0_436 = arith.constant 0 : index
    %c0_437 = arith.constant 0 : index
    %576 = vector.load %arg12[%c7_435, %c0_436, %c0_437] : memref<10x10x128xf32, #tpu.memory_space<vmem>>, vector<1x4x128xf32>
    %577 = vector.shape_cast %576 : vector<1x4x128xf32> to vector<4x128xf32>
    %c42_438 = arith.constant 42 : index
    %c0_439 = arith.constant 0 : index
    %578 = vector.load %arg2[%c42_438, %c0_439] : memref<49x128xf32, #tpu.memory_space<vmem>>, vector<1x128xf32>
    %579 = vector.broadcast %578 : vector<1x128xf32> to vector<4x128xf32>
    %580 = arith.mulf %577, %579 : vector<4x128xf32>
    %581 = arith.addf %575, %580 : vector<4x128xf32>
    %c7_440 = arith.constant 7 : index
    %c1_441 = arith.constant 1 : index
    %c0_442 = arith.constant 0 : index
    %582 = vector.load %arg12[%c7_440, %c1_441, %c0_442] : memref<10x10x128xf32, #tpu.memory_space<vmem>>, vector<1x4x128xf32>
    %583 = vector.shape_cast %582 : vector<1x4x128xf32> to vector<4x128xf32>
    %c43_443 = arith.constant 43 : index
    %c0_444 = arith.constant 0 : index
    %584 = vector.load %arg2[%c43_443, %c0_444] : memref<49x128xf32, #tpu.memory_space<vmem>>, vector<1x128xf32>
    %585 = vector.broadcast %584 : vector<1x128xf32> to vector<4x128xf32>
    %586 = arith.mulf %583, %585 : vector<4x128xf32>
    %587 = arith.addf %581, %586 : vector<4x128xf32>
    %c7_445 = arith.constant 7 : index
    %c2_446 = arith.constant 2 : index
    %c0_447 = arith.constant 0 : index
    %588 = vector.load %arg12[%c7_445, %c2_446, %c0_447] : memref<10x10x128xf32, #tpu.memory_space<vmem>>, vector<1x4x128xf32>
    %589 = vector.shape_cast %588 : vector<1x4x128xf32> to vector<4x128xf32>
    %c44_448 = arith.constant 44 : index
    %c0_449 = arith.constant 0 : index
    %590 = vector.load %arg2[%c44_448, %c0_449] : memref<49x128xf32, #tpu.memory_space<vmem>>, vector<1x128xf32>
    %591 = vector.broadcast %590 : vector<1x128xf32> to vector<4x128xf32>
    %592 = arith.mulf %589, %591 : vector<4x128xf32>
    %593 = arith.addf %587, %592 : vector<4x128xf32>
    %c7_450 = arith.constant 7 : index
    %c3_451 = arith.constant 3 : index
    %c0_452 = arith.constant 0 : index
    %594 = vector.load %arg12[%c7_450, %c3_451, %c0_452] : memref<10x10x128xf32, #tpu.memory_space<vmem>>, vector<1x4x128xf32>
    %595 = vector.shape_cast %594 : vector<1x4x128xf32> to vector<4x128xf32>
    %c45_453 = arith.constant 45 : index
    %c0_454 = arith.constant 0 : index
    %596 = vector.load %arg2[%c45_453, %c0_454] : memref<49x128xf32, #tpu.memory_space<vmem>>, vector<1x128xf32>
    %597 = vector.broadcast %596 : vector<1x128xf32> to vector<4x128xf32>
    %598 = arith.mulf %595, %597 : vector<4x128xf32>
    %599 = arith.addf %593, %598 : vector<4x128xf32>
    %c7_455 = arith.constant 7 : index
    %c4_456 = arith.constant 4 : index
    %c0_457 = arith.constant 0 : index
    %600 = vector.load %arg12[%c7_455, %c4_456, %c0_457] : memref<10x10x128xf32, #tpu.memory_space<vmem>>, vector<1x4x128xf32>
    %601 = vector.shape_cast %600 : vector<1x4x128xf32> to vector<4x128xf32>
    %c46_458 = arith.constant 46 : index
    %c0_459 = arith.constant 0 : index
    %602 = vector.load %arg2[%c46_458, %c0_459] : memref<49x128xf32, #tpu.memory_space<vmem>>, vector<1x128xf32>
    %603 = vector.broadcast %602 : vector<1x128xf32> to vector<4x128xf32>
    %604 = arith.mulf %601, %603 : vector<4x128xf32>
    %605 = arith.addf %599, %604 : vector<4x128xf32>
    %c7_460 = arith.constant 7 : index
    %c5_461 = arith.constant 5 : index
    %c0_462 = arith.constant 0 : index
    %606 = vector.load %arg12[%c7_460, %c5_461, %c0_462] : memref<10x10x128xf32, #tpu.memory_space<vmem>>, vector<1x4x128xf32>
    %607 = vector.shape_cast %606 : vector<1x4x128xf32> to vector<4x128xf32>
    %c47_463 = arith.constant 47 : index
    %c0_464 = arith.constant 0 : index
    %608 = vector.load %arg2[%c47_463, %c0_464] : memref<49x128xf32, #tpu.memory_space<vmem>>, vector<1x128xf32>
    %609 = vector.broadcast %608 : vector<1x128xf32> to vector<4x128xf32>
    %610 = arith.mulf %607, %609 : vector<4x128xf32>
    %611 = arith.addf %605, %610 : vector<4x128xf32>
    %c7_465 = arith.constant 7 : index
    %c6_466 = arith.constant 6 : index
    %c0_467 = arith.constant 0 : index
    %612 = vector.load %arg12[%c7_465, %c6_466, %c0_467] : memref<10x10x128xf32, #tpu.memory_space<vmem>>, vector<1x4x128xf32>
    %613 = vector.shape_cast %612 : vector<1x4x128xf32> to vector<4x128xf32>
    %c48_468 = arith.constant 48 : index
    %c0_469 = arith.constant 0 : index
    %614 = vector.load %arg2[%c48_468, %c0_469] : memref<49x128xf32, #tpu.memory_space<vmem>>, vector<1x128xf32>
    %615 = vector.broadcast %614 : vector<1x128xf32> to vector<4x128xf32>
    %616 = arith.mulf %613, %615 : vector<4x128xf32>
    %617 = arith.addf %611, %616 : vector<4x128xf32>
    %c4_470 = arith.constant 4 : index
    %c0_471 = arith.constant 0 : index
    %618 = vector.load %arg13[%c4_470, %c0_471] : memref<16x128xf32, #tpu.memory_space<vmem>>, vector<4x128xf32>
    tpu.vector_store %arg13[%c4_470, %c0_471], %617 {strides = array<i32>} : memref<16x128xf32, #tpu.memory_space<vmem>>, vector<4x128xf32>,
    %cst_472 = arith.constant 0.000000e+00 : f32
    %619 = vector.broadcast %cst_472 : f32 to vector<4x128xf32>
    %620 = vector.broadcast %22 : vector<1x128xf32> to vector<4x128xf32>
    %621 = arith.addf %619, %620 : vector<4x128xf32>
    %c2_473 = arith.constant 2 : index
    %c0_474 = arith.constant 0 : index
    %c0_475 = arith.constant 0 : index
    %622 = vector.load %arg12[%c2_473, %c0_474, %c0_475] : memref<10x10x128xf32, #tpu.memory_space<vmem>>, vector<1x4x128xf32>
    %623 = vector.shape_cast %622 : vector<1x4x128xf32> to vector<4x128xf32>
    %c0_476 = arith.constant 0 : index
    %c0_477 = arith.constant 0 : index
    %624 = vector.load %arg2[%c0_476, %c0_477] : memref<49x128xf32, #tpu.memory_space<vmem>>, vector<1x128xf32>
    %625 = vector.broadcast %624 : vector<1x128xf32> to vector<4x128xf32>
    %626 = arith.mulf %623, %625 : vector<4x128xf32>
    %627 = arith.addf %621, %626 : vector<4x128xf32>
    %c2_478 = arith.constant 2 : index
    %c1_479 = arith.constant 1 : index
    %c0_480 = arith.constant 0 : index
    %628 = vector.load %arg12[%c2_478, %c1_479, %c0_480] : memref<10x10x128xf32, #tpu.memory_space<vmem>>, vector<1x4x128xf32>
    %629 = vector.shape_cast %628 : vector<1x4x128xf32> to vector<4x128xf32>
    %c1_481 = arith.constant 1 : index
    %c0_482 = arith.constant 0 : index
    %630 = vector.load %arg2[%c1_481, %c0_482] : memref<49x128xf32, #tpu.memory_space<vmem>>, vector<1x128xf32>
    %631 = vector.broadcast %630 : vector<1x128xf32> to vector<4x128xf32>
    %632 = arith.mulf %629, %631 : vector<4x128xf32>
    %633 = arith.addf %627, %632 : vector<4x128xf32>
    %c2_483 = arith.constant 2 : index
    %c2_484 = arith.constant 2 : index
    %c0_485 = arith.constant 0 : index
    %634 = vector.load %arg12[%c2_483, %c2_484, %c0_485] : memref<10x10x128xf32, #tpu.memory_space<vmem>>, vector<1x4x128xf32>
    %635 = vector.shape_cast %634 : vector<1x4x128xf32> to vector<4x128xf32>
    %c2_486 = arith.constant 2 : index
    %c0_487 = arith.constant 0 : index
    %636 = vector.load %arg2[%c2_486, %c0_487] : memref<49x128xf32, #tpu.memory_space<vmem>>, vector<1x128xf32>
    %637 = vector.broadcast %636 : vector<1x128xf32> to vector<4x128xf32>
    %638 = arith.mulf %635, %637 : vector<4x128xf32>
    %639 = arith.addf %633, %638 : vector<4x128xf32>
    %c2_488 = arith.constant 2 : index
    %c3_489 = arith.constant 3 : index
    %c0_490 = arith.constant 0 : index
    %640 = vector.load %arg12[%c2_488, %c3_489, %c0_490] : memref<10x10x128xf32, #tpu.memory_space<vmem>>, vector<1x4x128xf32>
    %641 = vector.shape_cast %640 : vector<1x4x128xf32> to vector<4x128xf32>
    %c3_491 = arith.constant 3 : index
    %c0_492 = arith.constant 0 : index
    %642 = vector.load %arg2[%c3_491, %c0_492] : memref<49x128xf32, #tpu.memory_space<vmem>>, vector<1x128xf32>
    %643 = vector.broadcast %642 : vector<1x128xf32> to vector<4x128xf32>
    %644 = arith.mulf %641, %643 : vector<4x128xf32>
    %645 = arith.addf %639, %644 : vector<4x128xf32>
    %c2_493 = arith.constant 2 : index
    %c4_494 = arith.constant 4 : index
    %c0_495 = arith.constant 0 : index
    %646 = vector.load %arg12[%c2_493, %c4_494, %c0_495] : memref<10x10x128xf32, #tpu.memory_space<vmem>>, vector<1x4x128xf32>
    %647 = vector.shape_cast %646 : vector<1x4x128xf32> to vector<4x128xf32>
    %c4_496 = arith.constant 4 : index
    %c0_497 = arith.constant 0 : index
    %648 = vector.load %arg2[%c4_496, %c0_497] : memref<49x128xf32, #tpu.memory_space<vmem>>, vector<1x128xf32>
    %649 = vector.broadcast %648 : vector<1x128xf32> to vector<4x128xf32>
    %650 = arith.mulf %647, %649 : vector<4x128xf32>
    %651 = arith.addf %645, %650 : vector<4x128xf32>
    %c2_498 = arith.constant 2 : index
    %c5_499 = arith.constant 5 : index
    %c0_500 = arith.constant 0 : index
    %652 = vector.load %arg12[%c2_498, %c5_499, %c0_500] : memref<10x10x128xf32, #tpu.memory_space<vmem>>, vector<1x4x128xf32>
    %653 = vector.shape_cast %652 : vector<1x4x128xf32> to vector<4x128xf32>
    %c5_501 = arith.constant 5 : index
    %c0_502 = arith.constant 0 : index
    %654 = vector.load %arg2[%c5_501, %c0_502] : memref<49x128xf32, #tpu.memory_space<vmem>>, vector<1x128xf32>
    %655 = vector.broadcast %654 : vector<1x128xf32> to vector<4x128xf32>
    %656 = arith.mulf %653, %655 : vector<4x128xf32>
    %657 = arith.addf %651, %656 : vector<4x128xf32>
    %c2_503 = arith.constant 2 : index
    %c6_504 = arith.constant 6 : index
    %c0_505 = arith.constant 0 : index
    %658 = vector.load %arg12[%c2_503, %c6_504, %c0_505] : memref<10x10x128xf32, #tpu.memory_space<vmem>>, vector<1x4x128xf32>
    %659 = vector.shape_cast %658 : vector<1x4x128xf32> to vector<4x128xf32>
    %c6_506 = arith.constant 6 : index
    %c0_507 = arith.constant 0 : index
    %660 = vector.load %arg2[%c6_506, %c0_507] : memref<49x128xf32, #tpu.memory_space<vmem>>, vector<1x128xf32>
    %661 = vector.broadcast %660 : vector<1x128xf32> to vector<4x128xf32>
    %662 = arith.mulf %659, %661 : vector<4x128xf32>
    %663 = arith.addf %657, %662 : vector<4x128xf32>
    %c3_508 = arith.constant 3 : index
    %c0_509 = arith.constant 0 : index
    %c0_510 = arith.constant 0 : index
    %664 = vector.load %arg12[%c3_508, %c0_509, %c0_510] : memref<10x10x128xf32, #tpu.memory_space<vmem>>, vector<1x4x128xf32>
    %665 = vector.shape_cast %664 : vector<1x4x128xf32> to vector<4x128xf32>
    %c7_511 = arith.constant 7 : index
    %c0_512 = arith.constant 0 : index
    %666 = vector.load %arg2[%c7_511, %c0_512] : memref<49x128xf32, #tpu.memory_space<vmem>>, vector<1x128xf32>
    %667 = vector.broadcast %666 : vector<1x128xf32> to vector<4x128xf32>
    %668 = arith.mulf %665, %667 : vector<4x128xf32>
    %669 = arith.addf %663, %668 : vector<4x128xf32>
    %c3_513 = arith.constant 3 : index
    %c1_514 = arith.constant 1 : index
    %c0_515 = arith.constant 0 : index
    %670 = vector.load %arg12[%c3_513, %c1_514, %c0_515] : memref<10x10x128xf32, #tpu.memory_space<vmem>>, vector<1x4x128xf32>
    %671 = vector.shape_cast %670 : vector<1x4x128xf32> to vector<4x128xf32>
    %c8_516 = arith.constant 8 : index
    %c0_517 = arith.constant 0 : index
    %672 = vector.load %arg2[%c8_516, %c0_517] : memref<49x128xf32, #tpu.memory_space<vmem>>, vector<1x128xf32>
    %673 = vector.broadcast %672 : vector<1x128xf32> to vector<4x128xf32>
    %674 = arith.mulf %671, %673 : vector<4x128xf32>
    %675 = arith.addf %669, %674 : vector<4x128xf32>
    %c3_518 = arith.constant 3 : index
    %c2_519 = arith.constant 2 : index
    %c0_520 = arith.constant 0 : index
    %676 = vector.load %arg12[%c3_518, %c2_519, %c0_520] : memref<10x10x128xf32, #tpu.memory_space<vmem>>, vector<1x4x128xf32>
    %677 = vector.shape_cast %676 : vector<1x4x128xf32> to vector<4x128xf32>
    %c9_521 = arith.constant 9 : index
    %c0_522 = arith.constant 0 : index
    %678 = vector.load %arg2[%c9_521, %c0_522] : memref<49x128xf32, #tpu.memory_space<vmem>>, vector<1x128xf32>
    %679 = vector.broadcast %678 : vector<1x128xf32> to vector<4x128xf32>
    %680 = arith.mulf %677, %679 : vector<4x128xf32>
    %681 = arith.addf %675, %680 : vector<4x128xf32>
    %c3_523 = arith.constant 3 : index
    %c3_524 = arith.constant 3 : index
    %c0_525 = arith.constant 0 : index
    %682 = vector.load %arg12[%c3_523, %c3_524, %c0_525] : memref<10x10x128xf32, #tpu.memory_space<vmem>>, vector<1x4x128xf32>
    %683 = vector.shape_cast %682 : vector<1x4x128xf32> to vector<4x128xf32>
    %c10_526 = arith.constant 10 : index
    %c0_527 = arith.constant 0 : index
    %684 = vector.load %arg2[%c10_526, %c0_527] : memref<49x128xf32, #tpu.memory_space<vmem>>, vector<1x128xf32>
    %685 = vector.broadcast %684 : vector<1x128xf32> to vector<4x128xf32>
    %686 = arith.mulf %683, %685 : vector<4x128xf32>
    %687 = arith.addf %681, %686 : vector<4x128xf32>
    %c3_528 = arith.constant 3 : index
    %c4_529 = arith.constant 4 : index
    %c0_530 = arith.constant 0 : index
    %688 = vector.load %arg12[%c3_528, %c4_529, %c0_530] : memref<10x10x128xf32, #tpu.memory_space<vmem>>, vector<1x4x128xf32>
    %689 = vector.shape_cast %688 : vector<1x4x128xf32> to vector<4x128xf32>
    %c11_531 = arith.constant 11 : index
    %c0_532 = arith.constant 0 : index
    %690 = vector.load %arg2[%c11_531, %c0_532] : memref<49x128xf32, #tpu.memory_space<vmem>>, vector<1x128xf32>
    %691 = vector.broadcast %690 : vector<1x128xf32> to vector<4x128xf32>
    %692 = arith.mulf %689, %691 : vector<4x128xf32>
    %693 = arith.addf %687, %692 : vector<4x128xf32>
    %c3_533 = arith.constant 3 : index
    %c5_534 = arith.constant 5 : index
    %c0_535 = arith.constant 0 : index
    %694 = vector.load %arg12[%c3_533, %c5_534, %c0_535] : memref<10x10x128xf32, #tpu.memory_space<vmem>>, vector<1x4x128xf32>
    %695 = vector.shape_cast %694 : vector<1x4x128xf32> to vector<4x128xf32>
    %c12_536 = arith.constant 12 : index
    %c0_537 = arith.constant 0 : index
    %696 = vector.load %arg2[%c12_536, %c0_537] : memref<49x128xf32, #tpu.memory_space<vmem>>, vector<1x128xf32>
    %697 = vector.broadcast %696 : vector<1x128xf32> to vector<4x128xf32>
    %698 = arith.mulf %695, %697 : vector<4x128xf32>
    %699 = arith.addf %693, %698 : vector<4x128xf32>
    %c3_538 = arith.constant 3 : index
    %c6_539 = arith.constant 6 : index
    %c0_540 = arith.constant 0 : index
    %700 = vector.load %arg12[%c3_538, %c6_539, %c0_540] : memref<10x10x128xf32, #tpu.memory_space<vmem>>, vector<1x4x128xf32>
    %701 = vector.shape_cast %700 : vector<1x4x128xf32> to vector<4x128xf32>
    %c13_541 = arith.constant 13 : index
    %c0_542 = arith.constant 0 : index
    %702 = vector.load %arg2[%c13_541, %c0_542] : memref<49x128xf32, #tpu.memory_space<vmem>>, vector<1x128xf32>
    %703 = vector.broadcast %702 : vector<1x128xf32> to vector<4x128xf32>
    %704 = arith.mulf %701, %703 : vector<4x128xf32>
    %705 = arith.addf %699, %704 : vector<4x128xf32>
    %c4_543 = arith.constant 4 : index
    %c0_544 = arith.constant 0 : index
    %c0_545 = arith.constant 0 : index
    %706 = vector.load %arg12[%c4_543, %c0_544, %c0_545] : memref<10x10x128xf32, #tpu.memory_space<vmem>>, vector<1x4x128xf32>
    %707 = vector.shape_cast %706 : vector<1x4x128xf32> to vector<4x128xf32>
    %c14_546 = arith.constant 14 : index
    %c0_547 = arith.constant 0 : index
    %708 = vector.load %arg2[%c14_546, %c0_547] : memref<49x128xf32, #tpu.memory_space<vmem>>, vector<1x128xf32>
    %709 = vector.broadcast %708 : vector<1x128xf32> to vector<4x128xf32>
    %710 = arith.mulf %707, %709 : vector<4x128xf32>
    %711 = arith.addf %705, %710 : vector<4x128xf32>
    %c4_548 = arith.constant 4 : index
    %c1_549 = arith.constant 1 : index
    %c0_550 = arith.constant 0 : index
    %712 = vector.load %arg12[%c4_548, %c1_549, %c0_550] : memref<10x10x128xf32, #tpu.memory_space<vmem>>, vector<1x4x128xf32>
    %713 = vector.shape_cast %712 : vector<1x4x128xf32> to vector<4x128xf32>
    %c15_551 = arith.constant 15 : index
    %c0_552 = arith.constant 0 : index
    %714 = vector.load %arg2[%c15_551, %c0_552] : memref<49x128xf32, #tpu.memory_space<vmem>>, vector<1x128xf32>
    %715 = vector.broadcast %714 : vector<1x128xf32> to vector<4x128xf32>
    %716 = arith.mulf %713, %715 : vector<4x128xf32>
    %717 = arith.addf %711, %716 : vector<4x128xf32>
    %c4_553 = arith.constant 4 : index
    %c2_554 = arith.constant 2 : index
    %c0_555 = arith.constant 0 : index
    %718 = vector.load %arg12[%c4_553, %c2_554, %c0_555] : memref<10x10x128xf32, #tpu.memory_space<vmem>>, vector<1x4x128xf32>
    %719 = vector.shape_cast %718 : vector<1x4x128xf32> to vector<4x128xf32>
    %c16_556 = arith.constant 16 : index
    %c0_557 = arith.constant 0 : index
    %720 = vector.load %arg2[%c16_556, %c0_557] : memref<49x128xf32, #tpu.memory_space<vmem>>, vector<1x128xf32>
    %721 = vector.broadcast %720 : vector<1x128xf32> to vector<4x128xf32>
    %722 = arith.mulf %719, %721 : vector<4x128xf32>
    %723 = arith.addf %717, %722 : vector<4x128xf32>
    %c4_558 = arith.constant 4 : index
    %c3_559 = arith.constant 3 : index
    %c0_560 = arith.constant 0 : index
    %724 = vector.load %arg12[%c4_558, %c3_559, %c0_560] : memref<10x10x128xf32, #tpu.memory_space<vmem>>, vector<1x4x128xf32>
    %725 = vector.shape_cast %724 : vector<1x4x128xf32> to vector<4x128xf32>
    %c17_561 = arith.constant 17 : index
    %c0_562 = arith.constant 0 : index
    %726 = vector.load %arg2[%c17_561, %c0_562] : memref<49x128xf32, #tpu.memory_space<vmem>>, vector<1x128xf32>
    %727 = vector.broadcast %726 : vector<1x128xf32> to vector<4x128xf32>
    %728 = arith.mulf %725, %727 : vector<4x128xf32>
    %729 = arith.addf %723, %728 : vector<4x128xf32>
    %c4_563 = arith.constant 4 : index
    %c4_564 = arith.constant 4 : index
    %c0_565 = arith.constant 0 : index
    %730 = vector.load %arg12[%c4_563, %c4_564, %c0_565] : memref<10x10x128xf32, #tpu.memory_space<vmem>>, vector<1x4x128xf32>
    %731 = vector.shape_cast %730 : vector<1x4x128xf32> to vector<4x128xf32>
    %c18_566 = arith.constant 18 : index
    %c0_567 = arith.constant 0 : index
    %732 = vector.load %arg2[%c18_566, %c0_567] : memref<49x128xf32, #tpu.memory_space<vmem>>, vector<1x128xf32>
    %733 = vector.broadcast %732 : vector<1x128xf32> to vector<4x128xf32>
    %734 = arith.mulf %731, %733 : vector<4x128xf32>
    %735 = arith.addf %729, %734 : vector<4x128xf32>
    %c4_568 = arith.constant 4 : index
    %c5_569 = arith.constant 5 : index
    %c0_570 = arith.constant 0 : index
    %736 = vector.load %arg12[%c4_568, %c5_569, %c0_570] : memref<10x10x128xf32, #tpu.memory_space<vmem>>, vector<1x4x128xf32>
    %737 = vector.shape_cast %736 : vector<1x4x128xf32> to vector<4x128xf32>
    %c19_571 = arith.constant 19 : index
    %c0_572 = arith.constant 0 : index
    %738 = vector.load %arg2[%c19_571, %c0_572] : memref<49x128xf32, #tpu.memory_space<vmem>>, vector<1x128xf32>
    %739 = vector.broadcast %738 : vector<1x128xf32> to vector<4x128xf32>
    %740 = arith.mulf %737, %739 : vector<4x128xf32>
    %741 = arith.addf %735, %740 : vector<4x128xf32>
    %c4_573 = arith.constant 4 : index
    %c6_574 = arith.constant 6 : index
    %c0_575 = arith.constant 0 : index
    %742 = vector.load %arg12[%c4_573, %c6_574, %c0_575] : memref<10x10x128xf32, #tpu.memory_space<vmem>>, vector<1x4x128xf32>
    %743 = vector.shape_cast %742 : vector<1x4x128xf32> to vector<4x128xf32>
    %c20_576 = arith.constant 20 : index
    %c0_577 = arith.constant 0 : index
    %744 = vector.load %arg2[%c20_576, %c0_577] : memref<49x128xf32, #tpu.memory_space<vmem>>, vector<1x128xf32>
    %745 = vector.broadcast %744 : vector<1x128xf32> to vector<4x128xf32>
    %746 = arith.mulf %743, %745 : vector<4x128xf32>
    %747 = arith.addf %741, %746 : vector<4x128xf32>
    %c5_578 = arith.constant 5 : index
    %c0_579 = arith.constant 0 : index
    %c0_580 = arith.constant 0 : index
    %748 = vector.load %arg12[%c5_578, %c0_579, %c0_580] : memref<10x10x128xf32, #tpu.memory_space<vmem>>, vector<1x4x128xf32>
    %749 = vector.shape_cast %748 : vector<1x4x128xf32> to vector<4x128xf32>
    %c21_581 = arith.constant 21 : index
    %c0_582 = arith.constant 0 : index
    %750 = vector.load %arg2[%c21_581, %c0_582] : memref<49x128xf32, #tpu.memory_space<vmem>>, vector<1x128xf32>
    %751 = vector.broadcast %750 : vector<1x128xf32> to vector<4x128xf32>
    %752 = arith.mulf %749, %751 : vector<4x128xf32>
    %753 = arith.addf %747, %752 : vector<4x128xf32>
    %c5_583 = arith.constant 5 : index
    %c1_584 = arith.constant 1 : index
    %c0_585 = arith.constant 0 : index
    %754 = vector.load %arg12[%c5_583, %c1_584, %c0_585] : memref<10x10x128xf32, #tpu.memory_space<vmem>>, vector<1x4x128xf32>
    %755 = vector.shape_cast %754 : vector<1x4x128xf32> to vector<4x128xf32>
    %c22_586 = arith.constant 22 : index
    %c0_587 = arith.constant 0 : index
    %756 = vector.load %arg2[%c22_586, %c0_587] : memref<49x128xf32, #tpu.memory_space<vmem>>, vector<1x128xf32>
    %757 = vector.broadcast %756 : vector<1x128xf32> to vector<4x128xf32>
    %758 = arith.mulf %755, %757 : vector<4x128xf32>
    %759 = arith.addf %753, %758 : vector<4x128xf32>
    %c5_588 = arith.constant 5 : index
    %c2_589 = arith.constant 2 : index
    %c0_590 = arith.constant 0 : index
    %760 = vector.load %arg12[%c5_588, %c2_589, %c0_590] : memref<10x10x128xf32, #tpu.memory_space<vmem>>, vector<1x4x128xf32>
    %761 = vector.shape_cast %760 : vector<1x4x128xf32> to vector<4x128xf32>
    %c23_591 = arith.constant 23 : index
    %c0_592 = arith.constant 0 : index
    %762 = vector.load %arg2[%c23_591, %c0_592] : memref<49x128xf32, #tpu.memory_space<vmem>>, vector<1x128xf32>
    %763 = vector.broadcast %762 : vector<1x128xf32> to vector<4x128xf32>
    %764 = arith.mulf %761, %763 : vector<4x128xf32>
    %765 = arith.addf %759, %764 : vector<4x128xf32>
    %c5_593 = arith.constant 5 : index
    %c3_594 = arith.constant 3 : index
    %c0_595 = arith.constant 0 : index
    %766 = vector.load %arg12[%c5_593, %c3_594, %c0_595] : memref<10x10x128xf32, #tpu.memory_space<vmem>>, vector<1x4x128xf32>
    %767 = vector.shape_cast %766 : vector<1x4x128xf32> to vector<4x128xf32>
    %c24_596 = arith.constant 24 : index
    %c0_597 = arith.constant 0 : index
    %768 = vector.load %arg2[%c24_596, %c0_597] : memref<49x128xf32, #tpu.memory_space<vmem>>, vector<1x128xf32>
    %769 = vector.broadcast %768 : vector<1x128xf32> to vector<4x128xf32>
    %770 = arith.mulf %767, %769 : vector<4x128xf32>
    %771 = arith.addf %765, %770 : vector<4x128xf32>
    %c5_598 = arith.constant 5 : index
    %c4_599 = arith.constant 4 : index
    %c0_600 = arith.constant 0 : index
    %772 = vector.load %arg12[%c5_598, %c4_599, %c0_600] : memref<10x10x128xf32, #tpu.memory_space<vmem>>, vector<1x4x128xf32>
    %773 = vector.shape_cast %772 : vector<1x4x128xf32> to vector<4x128xf32>
    %c25_601 = arith.constant 25 : index
    %c0_602 = arith.constant 0 : index
    %774 = vector.load %arg2[%c25_601, %c0_602] : memref<49x128xf32, #tpu.memory_space<vmem>>, vector<1x128xf32>
    %775 = vector.broadcast %774 : vector<1x128xf32> to vector<4x128xf32>
    %776 = arith.mulf %773, %775 : vector<4x128xf32>
    %777 = arith.addf %771, %776 : vector<4x128xf32>
    %c5_603 = arith.constant 5 : index
    %c5_604 = arith.constant 5 : index
    %c0_605 = arith.constant 0 : index
    %778 = vector.load %arg12[%c5_603, %c5_604, %c0_605] : memref<10x10x128xf32, #tpu.memory_space<vmem>>, vector<1x4x128xf32>
    %779 = vector.shape_cast %778 : vector<1x4x128xf32> to vector<4x128xf32>
    %c26_606 = arith.constant 26 : index
    %c0_607 = arith.constant 0 : index
    %780 = vector.load %arg2[%c26_606, %c0_607] : memref<49x128xf32, #tpu.memory_space<vmem>>, vector<1x128xf32>
    %781 = vector.broadcast %780 : vector<1x128xf32> to vector<4x128xf32>
    %782 = arith.mulf %779, %781 : vector<4x128xf32>
    %783 = arith.addf %777, %782 : vector<4x128xf32>
    %c5_608 = arith.constant 5 : index
    %c6_609 = arith.constant 6 : index
    %c0_610 = arith.constant 0 : index
    %784 = vector.load %arg12[%c5_608, %c6_609, %c0_610] : memref<10x10x128xf32, #tpu.memory_space<vmem>>, vector<1x4x128xf32>
    %785 = vector.shape_cast %784 : vector<1x4x128xf32> to vector<4x128xf32>
    %c27_611 = arith.constant 27 : index
    %c0_612 = arith.constant 0 : index
    %786 = vector.load %arg2[%c27_611, %c0_612] : memref<49x128xf32, #tpu.memory_space<vmem>>, vector<1x128xf32>
    %787 = vector.broadcast %786 : vector<1x128xf32> to vector<4x128xf32>
    %788 = arith.mulf %785, %787 : vector<4x128xf32>
    %789 = arith.addf %783, %788 : vector<4x128xf32>
    %c6_613 = arith.constant 6 : index
    %c0_614 = arith.constant 0 : index
    %c0_615 = arith.constant 0 : index
    %790 = vector.load %arg12[%c6_613, %c0_614, %c0_615] : memref<10x10x128xf32, #tpu.memory_space<vmem>>, vector<1x4x128xf32>
    %791 = vector.shape_cast %790 : vector<1x4x128xf32> to vector<4x128xf32>
    %c28_616 = arith.constant 28 : index
    %c0_617 = arith.constant 0 : index
    %792 = vector.load %arg2[%c28_616, %c0_617] : memref<49x128xf32, #tpu.memory_space<vmem>>, vector<1x128xf32>
    %793 = vector.broadcast %792 : vector<1x128xf32> to vector<4x128xf32>
    %794 = arith.mulf %791, %793 : vector<4x128xf32>
    %795 = arith.addf %789, %794 : vector<4x128xf32>
    %c6_618 = arith.constant 6 : index
    %c1_619 = arith.constant 1 : index
    %c0_620 = arith.constant 0 : index
    %796 = vector.load %arg12[%c6_618, %c1_619, %c0_620] : memref<10x10x128xf32, #tpu.memory_space<vmem>>, vector<1x4x128xf32>
    %797 = vector.shape_cast %796 : vector<1x4x128xf32> to vector<4x128xf32>
    %c29_621 = arith.constant 29 : index
    %c0_622 = arith.constant 0 : index
    %798 = vector.load %arg2[%c29_621, %c0_622] : memref<49x128xf32, #tpu.memory_space<vmem>>, vector<1x128xf32>
    %799 = vector.broadcast %798 : vector<1x128xf32> to vector<4x128xf32>
    %800 = arith.mulf %797, %799 : vector<4x128xf32>
    %801 = arith.addf %795, %800 : vector<4x128xf32>
    %c6_623 = arith.constant 6 : index
    %c2_624 = arith.constant 2 : index
    %c0_625 = arith.constant 0 : index
    %802 = vector.load %arg12[%c6_623, %c2_624, %c0_625] : memref<10x10x128xf32, #tpu.memory_space<vmem>>, vector<1x4x128xf32>
    %803 = vector.shape_cast %802 : vector<1x4x128xf32> to vector<4x128xf32>
    %c30_626 = arith.constant 30 : index
    %c0_627 = arith.constant 0 : index
    %804 = vector.load %arg2[%c30_626, %c0_627] : memref<49x128xf32, #tpu.memory_space<vmem>>, vector<1x128xf32>
    %805 = vector.broadcast %804 : vector<1x128xf32> to vector<4x128xf32>
    %806 = arith.mulf %803, %805 : vector<4x128xf32>
    %807 = arith.addf %801, %806 : vector<4x128xf32>
    %c6_628 = arith.constant 6 : index
    %c3_629 = arith.constant 3 : index
    %c0_630 = arith.constant 0 : index
    %808 = vector.load %arg12[%c6_628, %c3_629, %c0_630] : memref<10x10x128xf32, #tpu.memory_space<vmem>>, vector<1x4x128xf32>
    %809 = vector.shape_cast %808 : vector<1x4x128xf32> to vector<4x128xf32>
    %c31_631 = arith.constant 31 : index
    %c0_632 = arith.constant 0 : index
    %810 = vector.load %arg2[%c31_631, %c0_632] : memref<49x128xf32, #tpu.memory_space<vmem>>, vector<1x128xf32>
    %811 = vector.broadcast %810 : vector<1x128xf32> to vector<4x128xf32>
    %812 = arith.mulf %809, %811 : vector<4x128xf32>
    %813 = arith.addf %807, %812 : vector<4x128xf32>
    %c6_633 = arith.constant 6 : index
    %c4_634 = arith.constant 4 : index
    %c0_635 = arith.constant 0 : index
    %814 = vector.load %arg12[%c6_633, %c4_634, %c0_635] : memref<10x10x128xf32, #tpu.memory_space<vmem>>, vector<1x4x128xf32>
    %815 = vector.shape_cast %814 : vector<1x4x128xf32> to vector<4x128xf32>
    %c32_636 = arith.constant 32 : index
    %c0_637 = arith.constant 0 : index
    %816 = vector.load %arg2[%c32_636, %c0_637] : memref<49x128xf32, #tpu.memory_space<vmem>>, vector<1x128xf32>
    %817 = vector.broadcast %816 : vector<1x128xf32> to vector<4x128xf32>
    %818 = arith.mulf %815, %817 : vector<4x128xf32>
    %819 = arith.addf %813, %818 : vector<4x128xf32>
    %c6_638 = arith.constant 6 : index
    %c5_639 = arith.constant 5 : index
    %c0_640 = arith.constant 0 : index
    %820 = vector.load %arg12[%c6_638, %c5_639, %c0_640] : memref<10x10x128xf32, #tpu.memory_space<vmem>>, vector<1x4x128xf32>
    %821 = vector.shape_cast %820 : vector<1x4x128xf32> to vector<4x128xf32>
    %c33_641 = arith.constant 33 : index
    %c0_642 = arith.constant 0 : index
    %822 = vector.load %arg2[%c33_641, %c0_642] : memref<49x128xf32, #tpu.memory_space<vmem>>, vector<1x128xf32>
    %823 = vector.broadcast %822 : vector<1x128xf32> to vector<4x128xf32>
    %824 = arith.mulf %821, %823 : vector<4x128xf32>
    %825 = arith.addf %819, %824 : vector<4x128xf32>
    %c6_643 = arith.constant 6 : index
    %c6_644 = arith.constant 6 : index
    %c0_645 = arith.constant 0 : index
    %826 = vector.load %arg12[%c6_643, %c6_644, %c0_645] : memref<10x10x128xf32, #tpu.memory_space<vmem>>, vector<1x4x128xf32>
    %827 = vector.shape_cast %826 : vector<1x4x128xf32> to vector<4x128xf32>
    %c34_646 = arith.constant 34 : index
    %c0_647 = arith.constant 0 : index
    %828 = vector.load %arg2[%c34_646, %c0_647] : memref<49x128xf32, #tpu.memory_space<vmem>>, vector<1x128xf32>
    %829 = vector.broadcast %828 : vector<1x128xf32> to vector<4x128xf32>
    %830 = arith.mulf %827, %829 : vector<4x128xf32>
    %831 = arith.addf %825, %830 : vector<4x128xf32>
    %c7_648 = arith.constant 7 : index
    %c0_649 = arith.constant 0 : index
    %c0_650 = arith.constant 0 : index
    %832 = vector.load %arg12[%c7_648, %c0_649, %c0_650] : memref<10x10x128xf32, #tpu.memory_space<vmem>>, vector<1x4x128xf32>
    %833 = vector.shape_cast %832 : vector<1x4x128xf32> to vector<4x128xf32>
    %c35_651 = arith.constant 35 : index
    %c0_652 = arith.constant 0 : index
    %834 = vector.load %arg2[%c35_651, %c0_652] : memref<49x128xf32, #tpu.memory_space<vmem>>, vector<1x128xf32>
    %835 = vector.broadcast %834 : vector<1x128xf32> to vector<4x128xf32>
    %836 = arith.mulf %833, %835 : vector<4x128xf32>
    %837 = arith.addf %831, %836 : vector<4x128xf32>
    %c7_653 = arith.constant 7 : index
    %c1_654 = arith.constant 1 : index
    %c0_655 = arith.constant 0 : index
    %838 = vector.load %arg12[%c7_653, %c1_654, %c0_655] : memref<10x10x128xf32, #tpu.memory_space<vmem>>, vector<1x4x128xf32>
    %839 = vector.shape_cast %838 : vector<1x4x128xf32> to vector<4x128xf32>
    %c36_656 = arith.constant 36 : index
    %c0_657 = arith.constant 0 : index
    %840 = vector.load %arg2[%c36_656, %c0_657] : memref<49x128xf32, #tpu.memory_space<vmem>>, vector<1x128xf32>
    %841 = vector.broadcast %840 : vector<1x128xf32> to vector<4x128xf32>
    %842 = arith.mulf %839, %841 : vector<4x128xf32>
    %843 = arith.addf %837, %842 : vector<4x128xf32>
    %c7_658 = arith.constant 7 : index
    %c2_659 = arith.constant 2 : index
    %c0_660 = arith.constant 0 : index
    %844 = vector.load %arg12[%c7_658, %c2_659, %c0_660] : memref<10x10x128xf32, #tpu.memory_space<vmem>>, vector<1x4x128xf32>
    %845 = vector.shape_cast %844 : vector<1x4x128xf32> to vector<4x128xf32>
    %c37_661 = arith.constant 37 : index
    %c0_662 = arith.constant 0 : index
    %846 = vector.load %arg2[%c37_661, %c0_662] : memref<49x128xf32, #tpu.memory_space<vmem>>, vector<1x128xf32>
    %847 = vector.broadcast %846 : vector<1x128xf32> to vector<4x128xf32>
    %848 = arith.mulf %845, %847 : vector<4x128xf32>
    %849 = arith.addf %843, %848 : vector<4x128xf32>
    %c7_663 = arith.constant 7 : index
    %c3_664 = arith.constant 3 : index
    %c0_665 = arith.constant 0 : index
    %850 = vector.load %arg12[%c7_663, %c3_664, %c0_665] : memref<10x10x128xf32, #tpu.memory_space<vmem>>, vector<1x4x128xf32>
    %851 = vector.shape_cast %850 : vector<1x4x128xf32> to vector<4x128xf32>
    %c38_666 = arith.constant 38 : index
    %c0_667 = arith.constant 0 : index
    %852 = vector.load %arg2[%c38_666, %c0_667] : memref<49x128xf32, #tpu.memory_space<vmem>>, vector<1x128xf32>
    %853 = vector.broadcast %852 : vector<1x128xf32> to vector<4x128xf32>
    %854 = arith.mulf %851, %853 : vector<4x128xf32>
    %855 = arith.addf %849, %854 : vector<4x128xf32>
    %c7_668 = arith.constant 7 : index
    %c4_669 = arith.constant 4 : index
    %c0_670 = arith.constant 0 : index
    %856 = vector.load %arg12[%c7_668, %c4_669, %c0_670] : memref<10x10x128xf32, #tpu.memory_space<vmem>>, vector<1x4x128xf32>
    %857 = vector.shape_cast %856 : vector<1x4x128xf32> to vector<4x128xf32>
    %c39_671 = arith.constant 39 : index
    %c0_672 = arith.constant 0 : index
    %858 = vector.load %arg2[%c39_671, %c0_672] : memref<49x128xf32, #tpu.memory_space<vmem>>, vector<1x128xf32>
    %859 = vector.broadcast %858 : vector<1x128xf32> to vector<4x128xf32>
    %860 = arith.mulf %857, %859 : vector<4x128xf32>
    %861 = arith.addf %855, %860 : vector<4x128xf32>
    %c7_673 = arith.constant 7 : index
    %c5_674 = arith.constant 5 : index
    %c0_675 = arith.constant 0 : index
    %862 = vector.load %arg12[%c7_673, %c5_674, %c0_675] : memref<10x10x128xf32, #tpu.memory_space<vmem>>, vector<1x4x128xf32>
    %863 = vector.shape_cast %862 : vector<1x4x128xf32> to vector<4x128xf32>
    %c40_676 = arith.constant 40 : index
    %c0_677 = arith.constant 0 : index
    %864 = vector.load %arg2[%c40_676, %c0_677] : memref<49x128xf32, #tpu.memory_space<vmem>>, vector<1x128xf32>
    %865 = vector.broadcast %864 : vector<1x128xf32> to vector<4x128xf32>
    %866 = arith.mulf %863, %865 : vector<4x128xf32>
    %867 = arith.addf %861, %866 : vector<4x128xf32>
    %c7_678 = arith.constant 7 : index
    %c6_679 = arith.constant 6 : index
    %c0_680 = arith.constant 0 : index
    %868 = vector.load %arg12[%c7_678, %c6_679, %c0_680] : memref<10x10x128xf32, #tpu.memory_space<vmem>>, vector<1x4x128xf32>
    %869 = vector.shape_cast %868 : vector<1x4x128xf32> to vector<4x128xf32>
    %c41_681 = arith.constant 41 : index
    %c0_682 = arith.constant 0 : index
    %870 = vector.load %arg2[%c41_681, %c0_682] : memref<49x128xf32, #tpu.memory_space<vmem>>, vector<1x128xf32>
    %871 = vector.broadcast %870 : vector<1x128xf32> to vector<4x128xf32>
    %872 = arith.mulf %869, %871 : vector<4x128xf32>
    %873 = arith.addf %867, %872 : vector<4x128xf32>
    %c8_683 = arith.constant 8 : index
    %c0_684 = arith.constant 0 : index
    %c0_685 = arith.constant 0 : index
    %874 = vector.load %arg12[%c8_683, %c0_684, %c0_685] : memref<10x10x128xf32, #tpu.memory_space<vmem>>, vector<1x4x128xf32>
    %875 = vector.shape_cast %874 : vector<1x4x128xf32> to vector<4x128xf32>
    %c42_686 = arith.constant 42 : index
    %c0_687 = arith.constant 0 : index
    %876 = vector.load %arg2[%c42_686, %c0_687] : memref<49x128xf32, #tpu.memory_space<vmem>>, vector<1x128xf32>
    %877 = vector.broadcast %876 : vector<1x128xf32> to vector<4x128xf32>
    %878 = arith.mulf %875, %877 : vector<4x128xf32>
    %879 = arith.addf %873, %878 : vector<4x128xf32>
    %c8_688 = arith.constant 8 : index
    %c1_689 = arith.constant 1 : index
    %c0_690 = arith.constant 0 : index
    %880 = vector.load %arg12[%c8_688, %c1_689, %c0_690] : memref<10x10x128xf32, #tpu.memory_space<vmem>>, vector<1x4x128xf32>
    %881 = vector.shape_cast %880 : vector<1x4x128xf32> to vector<4x128xf32>
    %c43_691 = arith.constant 43 : index
    %c0_692 = arith.constant 0 : index
    %882 = vector.load %arg2[%c43_691, %c0_692] : memref<49x128xf32, #tpu.memory_space<vmem>>, vector<1x128xf32>
    %883 = vector.broadcast %882 : vector<1x128xf32> to vector<4x128xf32>
    %884 = arith.mulf %881, %883 : vector<4x128xf32>
    %885 = arith.addf %879, %884 : vector<4x128xf32>
    %c8_693 = arith.constant 8 : index
    %c2_694 = arith.constant 2 : index
    %c0_695 = arith.constant 0 : index
    %886 = vector.load %arg12[%c8_693, %c2_694, %c0_695] : memref<10x10x128xf32, #tpu.memory_space<vmem>>, vector<1x4x128xf32>
    %887 = vector.shape_cast %886 : vector<1x4x128xf32> to vector<4x128xf32>
    %c44_696 = arith.constant 44 : index
    %c0_697 = arith.constant 0 : index
    %888 = vector.load %arg2[%c44_696, %c0_697] : memref<49x128xf32, #tpu.memory_space<vmem>>, vector<1x128xf32>
    %889 = vector.broadcast %888 : vector<1x128xf32> to vector<4x128xf32>
    %890 = arith.mulf %887, %889 : vector<4x128xf32>
    %891 = arith.addf %885, %890 : vector<4x128xf32>
    %c8_698 = arith.constant 8 : index
    %c3_699 = arith.constant 3 : index
    %c0_700 = arith.constant 0 : index
    %892 = vector.load %arg12[%c8_698, %c3_699, %c0_700] : memref<10x10x128xf32, #tpu.memory_space<vmem>>, vector<1x4x128xf32>
    %893 = vector.shape_cast %892 : vector<1x4x128xf32> to vector<4x128xf32>
    %c45_701 = arith.constant 45 : index
    %c0_702 = arith.constant 0 : index
    %894 = vector.load %arg2[%c45_701, %c0_702] : memref<49x128xf32, #tpu.memory_space<vmem>>, vector<1x128xf32>
    %895 = vector.broadcast %894 : vector<1x128xf32> to vector<4x128xf32>
    %896 = arith.mulf %893, %895 : vector<4x128xf32>
    %897 = arith.addf %891, %896 : vector<4x128xf32>
    %c8_703 = arith.constant 8 : index
    %c4_704 = arith.constant 4 : index
    %c0_705 = arith.constant 0 : index
    %898 = vector.load %arg12[%c8_703, %c4_704, %c0_705] : memref<10x10x128xf32, #tpu.memory_space<vmem>>, vector<1x4x128xf32>
    %899 = vector.shape_cast %898 : vector<1x4x128xf32> to vector<4x128xf32>
    %c46_706 = arith.constant 46 : index
    %c0_707 = arith.constant 0 : index
    %900 = vector.load %arg2[%c46_706, %c0_707] : memref<49x128xf32, #tpu.memory_space<vmem>>, vector<1x128xf32>
    %901 = vector.broadcast %900 : vector<1x128xf32> to vector<4x128xf32>
    %902 = arith.mulf %899, %901 : vector<4x128xf32>
    %903 = arith.addf %897, %902 : vector<4x128xf32>
    %c8_708 = arith.constant 8 : index
    %c5_709 = arith.constant 5 : index
    %c0_710 = arith.constant 0 : index
    %904 = vector.load %arg12[%c8_708, %c5_709, %c0_710] : memref<10x10x128xf32, #tpu.memory_space<vmem>>, vector<1x4x128xf32>
    %905 = vector.shape_cast %904 : vector<1x4x128xf32> to vector<4x128xf32>
    %c47_711 = arith.constant 47 : index
    %c0_712 = arith.constant 0 : index
    %906 = vector.load %arg2[%c47_711, %c0_712] : memref<49x128xf32, #tpu.memory_space<vmem>>, vector<1x128xf32>
    %907 = vector.broadcast %906 : vector<1x128xf32> to vector<4x128xf32>
    %908 = arith.mulf %905, %907 : vector<4x128xf32>
    %909 = arith.addf %903, %908 : vector<4x128xf32>
    %c8_713 = arith.constant 8 : index
    %c6_714 = arith.constant 6 : index
    %c0_715 = arith.constant 0 : index
    %910 = vector.load %arg12[%c8_713, %c6_714, %c0_715] : memref<10x10x128xf32, #tpu.memory_space<vmem>>, vector<1x4x128xf32>
    %911 = vector.shape_cast %910 : vector<1x4x128xf32> to vector<4x128xf32>
    %c48_716 = arith.constant 48 : index
    %c0_717 = arith.constant 0 : index
    %912 = vector.load %arg2[%c48_716, %c0_717] : memref<49x128xf32, #tpu.memory_space<vmem>>, vector<1x128xf32>
    %913 = vector.broadcast %912 : vector<1x128xf32> to vector<4x128xf32>
    %914 = arith.mulf %911, %913 : vector<4x128xf32>
    %915 = arith.addf %909, %914 : vector<4x128xf32>
    %c8_718 = arith.constant 8 : index
    %c0_719 = arith.constant 0 : index
    %916 = vector.load %arg13[%c8_718, %c0_719] : memref<16x128xf32, #tpu.memory_space<vmem>>, vector<4x128xf32>
    tpu.vector_store %arg13[%c8_718, %c0_719], %915 {strides = array<i32>} : memref<16x128xf32, #tpu.memory_space<vmem>>, vector<4x128xf32>,
    %cst_720 = arith.constant 0.000000e+00 : f32
    %917 = vector.broadcast %cst_720 : f32 to vector<4x128xf32>
    %918 = vector.broadcast %22 : vector<1x128xf32> to vector<4x128xf32>
    %919 = arith.addf %917, %918 : vector<4x128xf32>
    %c3_721 = arith.constant 3 : index
    %c0_722 = arith.constant 0 : index
    %c0_723 = arith.constant 0 : index
    %920 = vector.load %arg12[%c3_721, %c0_722, %c0_723] : memref<10x10x128xf32, #tpu.memory_space<vmem>>, vector<1x4x128xf32>
    %921 = vector.shape_cast %920 : vector<1x4x128xf32> to vector<4x128xf32>
    %c0_724 = arith.constant 0 : index
    %c0_725 = arith.constant 0 : index
    %922 = vector.load %arg2[%c0_724, %c0_725] : memref<49x128xf32, #tpu.memory_space<vmem>>, vector<1x128xf32>
    %923 = vector.broadcast %922 : vector<1x128xf32> to vector<4x128xf32>
    %924 = arith.mulf %921, %923 : vector<4x128xf32>
    %925 = arith.addf %919, %924 : vector<4x128xf32>
    %c3_726 = arith.constant 3 : index
    %c1_727 = arith.constant 1 : index
    %c0_728 = arith.constant 0 : index
    %926 = vector.load %arg12[%c3_726, %c1_727, %c0_728] : memref<10x10x128xf32, #tpu.memory_space<vmem>>, vector<1x4x128xf32>
    %927 = vector.shape_cast %926 : vector<1x4x128xf32> to vector<4x128xf32>
    %c1_729 = arith.constant 1 : index
    %c0_730 = arith.constant 0 : index
    %928 = vector.load %arg2[%c1_729, %c0_730] : memref<49x128xf32, #tpu.memory_space<vmem>>, vector<1x128xf32>
    %929 = vector.broadcast %928 : vector<1x128xf32> to vector<4x128xf32>
    %930 = arith.mulf %927, %929 : vector<4x128xf32>
    %931 = arith.addf %925, %930 : vector<4x128xf32>
    %c3_731 = arith.constant 3 : index
    %c2_732 = arith.constant 2 : index
    %c0_733 = arith.constant 0 : index
    %932 = vector.load %arg12[%c3_731, %c2_732, %c0_733] : memref<10x10x128xf32, #tpu.memory_space<vmem>>, vector<1x4x128xf32>
    %933 = vector.shape_cast %932 : vector<1x4x128xf32> to vector<4x128xf32>
    %c2_734 = arith.constant 2 : index
    %c0_735 = arith.constant 0 : index
    %934 = vector.load %arg2[%c2_734, %c0_735] : memref<49x128xf32, #tpu.memory_space<vmem>>, vector<1x128xf32>
    %935 = vector.broadcast %934 : vector<1x128xf32> to vector<4x128xf32>
    %936 = arith.mulf %933, %935 : vector<4x128xf32>
    %937 = arith.addf %931, %936 : vector<4x128xf32>
    %c3_736 = arith.constant 3 : index
    %c3_737 = arith.constant 3 : index
    %c0_738 = arith.constant 0 : index
    %938 = vector.load %arg12[%c3_736, %c3_737, %c0_738] : memref<10x10x128xf32, #tpu.memory_space<vmem>>, vector<1x4x128xf32>
    %939 = vector.shape_cast %938 : vector<1x4x128xf32> to vector<4x128xf32>
    %c3_739 = arith.constant 3 : index
    %c0_740 = arith.constant 0 : index
    %940 = vector.load %arg2[%c3_739, %c0_740] : memref<49x128xf32, #tpu.memory_space<vmem>>, vector<1x128xf32>
    %941 = vector.broadcast %940 : vector<1x128xf32> to vector<4x128xf32>
    %942 = arith.mulf %939, %941 : vector<4x128xf32>
    %943 = arith.addf %937, %942 : vector<4x128xf32>
    %c3_741 = arith.constant 3 : index
    %c4_742 = arith.constant 4 : index
    %c0_743 = arith.constant 0 : index
    %944 = vector.load %arg12[%c3_741, %c4_742, %c0_743] : memref<10x10x128xf32, #tpu.memory_space<vmem>>, vector<1x4x128xf32>
    %945 = vector.shape_cast %944 : vector<1x4x128xf32> to vector<4x128xf32>
    %c4_744 = arith.constant 4 : index
    %c0_745 = arith.constant 0 : index
    %946 = vector.load %arg2[%c4_744, %c0_745] : memref<49x128xf32, #tpu.memory_space<vmem>>, vector<1x128xf32>
    %947 = vector.broadcast %946 : vector<1x128xf32> to vector<4x128xf32>
    %948 = arith.mulf %945, %947 : vector<4x128xf32>
    %949 = arith.addf %943, %948 : vector<4x128xf32>
    %c3_746 = arith.constant 3 : index
    %c5_747 = arith.constant 5 : index
    %c0_748 = arith.constant 0 : index
    %950 = vector.load %arg12[%c3_746, %c5_747, %c0_748] : memref<10x10x128xf32, #tpu.memory_space<vmem>>, vector<1x4x128xf32>
    %951 = vector.shape_cast %950 : vector<1x4x128xf32> to vector<4x128xf32>
    %c5_749 = arith.constant 5 : index
    %c0_750 = arith.constant 0 : index
    %952 = vector.load %arg2[%c5_749, %c0_750] : memref<49x128xf32, #tpu.memory_space<vmem>>, vector<1x128xf32>
    %953 = vector.broadcast %952 : vector<1x128xf32> to vector<4x128xf32>
    %954 = arith.mulf %951, %953 : vector<4x128xf32>
    %955 = arith.addf %949, %954 : vector<4x128xf32>
    %c3_751 = arith.constant 3 : index
    %c6_752 = arith.constant 6 : index
    %c0_753 = arith.constant 0 : index
    %956 = vector.load %arg12[%c3_751, %c6_752, %c0_753] : memref<10x10x128xf32, #tpu.memory_space<vmem>>, vector<1x4x128xf32>
    %957 = vector.shape_cast %956 : vector<1x4x128xf32> to vector<4x128xf32>
    %c6_754 = arith.constant 6 : index
    %c0_755 = arith.constant 0 : index
    %958 = vector.load %arg2[%c6_754, %c0_755] : memref<49x128xf32, #tpu.memory_space<vmem>>, vector<1x128xf32>
    %959 = vector.broadcast %958 : vector<1x128xf32> to vector<4x128xf32>
    %960 = arith.mulf %957, %959 : vector<4x128xf32>
    %961 = arith.addf %955, %960 : vector<4x128xf32>
    %c4_756 = arith.constant 4 : index
    %c0_757 = arith.constant 0 : index
    %c0_758 = arith.constant 0 : index
    %962 = vector.load %arg12[%c4_756, %c0_757, %c0_758] : memref<10x10x128xf32, #tpu.memory_space<vmem>>, vector<1x4x128xf32>
    %963 = vector.shape_cast %962 : vector<1x4x128xf32> to vector<4x128xf32>
    %c7_759 = arith.constant 7 : index
    %c0_760 = arith.constant 0 : index
    %964 = vector.load %arg2[%c7_759, %c0_760] : memref<49x128xf32, #tpu.memory_space<vmem>>, vector<1x128xf32>
    %965 = vector.broadcast %964 : vector<1x128xf32> to vector<4x128xf32>
    %966 = arith.mulf %963, %965 : vector<4x128xf32>
    %967 = arith.addf %961, %966 : vector<4x128xf32>
    %c4_761 = arith.constant 4 : index
    %c1_762 = arith.constant 1 : index
    %c0_763 = arith.constant 0 : index
    %968 = vector.load %arg12[%c4_761, %c1_762, %c0_763] : memref<10x10x128xf32, #tpu.memory_space<vmem>>, vector<1x4x128xf32>
    %969 = vector.shape_cast %968 : vector<1x4x128xf32> to vector<4x128xf32>
    %c8_764 = arith.constant 8 : index
    %c0_765 = arith.constant 0 : index
    %970 = vector.load %arg2[%c8_764, %c0_765] : memref<49x128xf32, #tpu.memory_space<vmem>>, vector<1x128xf32>
    %971 = vector.broadcast %970 : vector<1x128xf32> to vector<4x128xf32>
    %972 = arith.mulf %969, %971 : vector<4x128xf32>
    %973 = arith.addf %967, %972 : vector<4x128xf32>
    %c4_766 = arith.constant 4 : index
    %c2_767 = arith.constant 2 : index
    %c0_768 = arith.constant 0 : index
    %974 = vector.load %arg12[%c4_766, %c2_767, %c0_768] : memref<10x10x128xf32, #tpu.memory_space<vmem>>, vector<1x4x128xf32>
    %975 = vector.shape_cast %974 : vector<1x4x128xf32> to vector<4x128xf32>
    %c9_769 = arith.constant 9 : index
    %c0_770 = arith.constant 0 : index
    %976 = vector.load %arg2[%c9_769, %c0_770] : memref<49x128xf32, #tpu.memory_space<vmem>>, vector<1x128xf32>
    %977 = vector.broadcast %976 : vector<1x128xf32> to vector<4x128xf32>
    %978 = arith.mulf %975, %977 : vector<4x128xf32>
    %979 = arith.addf %973, %978 : vector<4x128xf32>
    %c4_771 = arith.constant 4 : index
    %c3_772 = arith.constant 3 : index
    %c0_773 = arith.constant 0 : index
    %980 = vector.load %arg12[%c4_771, %c3_772, %c0_773] : memref<10x10x128xf32, #tpu.memory_space<vmem>>, vector<1x4x128xf32>
    %981 = vector.shape_cast %980 : vector<1x4x128xf32> to vector<4x128xf32>
    %c10_774 = arith.constant 10 : index
    %c0_775 = arith.constant 0 : index
    %982 = vector.load %arg2[%c10_774, %c0_775] : memref<49x128xf32, #tpu.memory_space<vmem>>, vector<1x128xf32>
    %983 = vector.broadcast %982 : vector<1x128xf32> to vector<4x128xf32>
    %984 = arith.mulf %981, %983 : vector<4x128xf32>
    %985 = arith.addf %979, %984 : vector<4x128xf32>
    %c4_776 = arith.constant 4 : index
    %c4_777 = arith.constant 4 : index
    %c0_778 = arith.constant 0 : index
    %986 = vector.load %arg12[%c4_776, %c4_777, %c0_778] : memref<10x10x128xf32, #tpu.memory_space<vmem>>, vector<1x4x128xf32>
    %987 = vector.shape_cast %986 : vector<1x4x128xf32> to vector<4x128xf32>
    %c11_779 = arith.constant 11 : index
    %c0_780 = arith.constant 0 : index
    %988 = vector.load %arg2[%c11_779, %c0_780] : memref<49x128xf32, #tpu.memory_space<vmem>>, vector<1x128xf32>
    %989 = vector.broadcast %988 : vector<1x128xf32> to vector<4x128xf32>
    %990 = arith.mulf %987, %989 : vector<4x128xf32>
    %991 = arith.addf %985, %990 : vector<4x128xf32>
    %c4_781 = arith.constant 4 : index
    %c5_782 = arith.constant 5 : index
    %c0_783 = arith.constant 0 : index
    %992 = vector.load %arg12[%c4_781, %c5_782, %c0_783] : memref<10x10x128xf32, #tpu.memory_space<vmem>>, vector<1x4x128xf32>
    %993 = vector.shape_cast %992 : vector<1x4x128xf32> to vector<4x128xf32>
    %c12_784 = arith.constant 12 : index
    %c0_785 = arith.constant 0 : index
    %994 = vector.load %arg2[%c12_784, %c0_785] : memref<49x128xf32, #tpu.memory_space<vmem>>, vector<1x128xf32>
    %995 = vector.broadcast %994 : vector<1x128xf32> to vector<4x128xf32>
    %996 = arith.mulf %993, %995 : vector<4x128xf32>
    %997 = arith.addf %991, %996 : vector<4x128xf32>
    %c4_786 = arith.constant 4 : index
    %c6_787 = arith.constant 6 : index
    %c0_788 = arith.constant 0 : index
    %998 = vector.load %arg12[%c4_786, %c6_787, %c0_788] : memref<10x10x128xf32, #tpu.memory_space<vmem>>, vector<1x4x128xf32>
    %999 = vector.shape_cast %998 : vector<1x4x128xf32> to vector<4x128xf32>
    %c13_789 = arith.constant 13 : index
    %c0_790 = arith.constant 0 : index
    %1000 = vector.load %arg2[%c13_789, %c0_790] : memref<49x128xf32, #tpu.memory_space<vmem>>, vector<1x128xf32>
    %1001 = vector.broadcast %1000 : vector<1x128xf32> to vector<4x128xf32>
    %1002 = arith.mulf %999, %1001 : vector<4x128xf32>
    %1003 = arith.addf %997, %1002 : vector<4x128xf32>
    %c5_791 = arith.constant 5 : index
    %c0_792 = arith.constant 0 : index
    %c0_793 = arith.constant 0 : index
    %1004 = vector.load %arg12[%c5_791, %c0_792, %c0_793] : memref<10x10x128xf32, #tpu.memory_space<vmem>>, vector<1x4x128xf32>
    %1005 = vector.shape_cast %1004 : vector<1x4x128xf32> to vector<4x128xf32>
    %c14_794 = arith.constant 14 : index
    %c0_795 = arith.constant 0 : index
    %1006 = vector.load %arg2[%c14_794, %c0_795] : memref<49x128xf32, #tpu.memory_space<vmem>>, vector<1x128xf32>
    %1007 = vector.broadcast %1006 : vector<1x128xf32> to vector<4x128xf32>
    %1008 = arith.mulf %1005, %1007 : vector<4x128xf32>
    %1009 = arith.addf %1003, %1008 : vector<4x128xf32>
    %c5_796 = arith.constant 5 : index
    %c1_797 = arith.constant 1 : index
    %c0_798 = arith.constant 0 : index
    %1010 = vector.load %arg12[%c5_796, %c1_797, %c0_798] : memref<10x10x128xf32, #tpu.memory_space<vmem>>, vector<1x4x128xf32>
    %1011 = vector.shape_cast %1010 : vector<1x4x128xf32> to vector<4x128xf32>
    %c15_799 = arith.constant 15 : index
    %c0_800 = arith.constant 0 : index
    %1012 = vector.load %arg2[%c15_799, %c0_800] : memref<49x128xf32, #tpu.memory_space<vmem>>, vector<1x128xf32>
    %1013 = vector.broadcast %1012 : vector<1x128xf32> to vector<4x128xf32>
    %1014 = arith.mulf %1011, %1013 : vector<4x128xf32>
    %1015 = arith.addf %1009, %1014 : vector<4x128xf32>
    %c5_801 = arith.constant 5 : index
    %c2_802 = arith.constant 2 : index
    %c0_803 = arith.constant 0 : index
    %1016 = vector.load %arg12[%c5_801, %c2_802, %c0_803] : memref<10x10x128xf32, #tpu.memory_space<vmem>>, vector<1x4x128xf32>
    %1017 = vector.shape_cast %1016 : vector<1x4x128xf32> to vector<4x128xf32>
    %c16_804 = arith.constant 16 : index
    %c0_805 = arith.constant 0 : index
    %1018 = vector.load %arg2[%c16_804, %c0_805] : memref<49x128xf32, #tpu.memory_space<vmem>>, vector<1x128xf32>
    %1019 = vector.broadcast %1018 : vector<1x128xf32> to vector<4x128xf32>
    %1020 = arith.mulf %1017, %1019 : vector<4x128xf32>
    %1021 = arith.addf %1015, %1020 : vector<4x128xf32>
    %c5_806 = arith.constant 5 : index
    %c3_807 = arith.constant 3 : index
    %c0_808 = arith.constant 0 : index
    %1022 = vector.load %arg12[%c5_806, %c3_807, %c0_808] : memref<10x10x128xf32, #tpu.memory_space<vmem>>, vector<1x4x128xf32>
    %1023 = vector.shape_cast %1022 : vector<1x4x128xf32> to vector<4x128xf32>
    %c17_809 = arith.constant 17 : index
    %c0_810 = arith.constant 0 : index
    %1024 = vector.load %arg2[%c17_809, %c0_810] : memref<49x128xf32, #tpu.memory_space<vmem>>, vector<1x128xf32>
    %1025 = vector.broadcast %1024 : vector<1x128xf32> to vector<4x128xf32>
    %1026 = arith.mulf %1023, %1025 : vector<4x128xf32>
    %1027 = arith.addf %1021, %1026 : vector<4x128xf32>
    %c5_811 = arith.constant 5 : index
    %c4_812 = arith.constant 4 : index
    %c0_813 = arith.constant 0 : index
    %1028 = vector.load %arg12[%c5_811, %c4_812, %c0_813] : memref<10x10x128xf32, #tpu.memory_space<vmem>>, vector<1x4x128xf32>
    %1029 = vector.shape_cast %1028 : vector<1x4x128xf32> to vector<4x128xf32>
    %c18_814 = arith.constant 18 : index
    %c0_815 = arith.constant 0 : index
    %1030 = vector.load %arg2[%c18_814, %c0_815] : memref<49x128xf32, #tpu.memory_space<vmem>>, vector<1x128xf32>
    %1031 = vector.broadcast %1030 : vector<1x128xf32> to vector<4x128xf32>
    %1032 = arith.mulf %1029, %1031 : vector<4x128xf32>
    %1033 = arith.addf %1027, %1032 : vector<4x128xf32>
    %c5_816 = arith.constant 5 : index
    %c5_817 = arith.constant 5 : index
    %c0_818 = arith.constant 0 : index
    %1034 = vector.load %arg12[%c5_816, %c5_817, %c0_818] : memref<10x10x128xf32, #tpu.memory_space<vmem>>, vector<1x4x128xf32>
    %1035 = vector.shape_cast %1034 : vector<1x4x128xf32> to vector<4x128xf32>
    %c19_819 = arith.constant 19 : index
    %c0_820 = arith.constant 0 : index
    %1036 = vector.load %arg2[%c19_819, %c0_820] : memref<49x128xf32, #tpu.memory_space<vmem>>, vector<1x128xf32>
    %1037 = vector.broadcast %1036 : vector<1x128xf32> to vector<4x128xf32>
    %1038 = arith.mulf %1035, %1037 : vector<4x128xf32>
    %1039 = arith.addf %1033, %1038 : vector<4x128xf32>
    %c5_821 = arith.constant 5 : index
    %c6_822 = arith.constant 6 : index
    %c0_823 = arith.constant 0 : index
    %1040 = vector.load %arg12[%c5_821, %c6_822, %c0_823] : memref<10x10x128xf32, #tpu.memory_space<vmem>>, vector<1x4x128xf32>
    %1041 = vector.shape_cast %1040 : vector<1x4x128xf32> to vector<4x128xf32>
    %c20_824 = arith.constant 20 : index
    %c0_825 = arith.constant 0 : index
    %1042 = vector.load %arg2[%c20_824, %c0_825] : memref<49x128xf32, #tpu.memory_space<vmem>>, vector<1x128xf32>
    %1043 = vector.broadcast %1042 : vector<1x128xf32> to vector<4x128xf32>
    %1044 = arith.mulf %1041, %1043 : vector<4x128xf32>
    %1045 = arith.addf %1039, %1044 : vector<4x128xf32>
    %c6_826 = arith.constant 6 : index
    %c0_827 = arith.constant 0 : index
    %c0_828 = arith.constant 0 : index
    %1046 = vector.load %arg12[%c6_826, %c0_827, %c0_828] : memref<10x10x128xf32, #tpu.memory_space<vmem>>, vector<1x4x128xf32>
    %1047 = vector.shape_cast %1046 : vector<1x4x128xf32> to vector<4x128xf32>
    %c21_829 = arith.constant 21 : index
    %c0_830 = arith.constant 0 : index
    %1048 = vector.load %arg2[%c21_829, %c0_830] : memref<49x128xf32, #tpu.memory_space<vmem>>, vector<1x128xf32>
    %1049 = vector.broadcast %1048 : vector<1x128xf32> to vector<4x128xf32>
    %1050 = arith.mulf %1047, %1049 : vector<4x128xf32>
    %1051 = arith.addf %1045, %1050 : vector<4x128xf32>
    %c6_831 = arith.constant 6 : index
    %c1_832 = arith.constant 1 : index
    %c0_833 = arith.constant 0 : index
    %1052 = vector.load %arg12[%c6_831, %c1_832, %c0_833] : memref<10x10x128xf32, #tpu.memory_space<vmem>>, vector<1x4x128xf32>
    %1053 = vector.shape_cast %1052 : vector<1x4x128xf32> to vector<4x128xf32>
    %c22_834 = arith.constant 22 : index
    %c0_835 = arith.constant 0 : index
    %1054 = vector.load %arg2[%c22_834, %c0_835] : memref<49x128xf32, #tpu.memory_space<vmem>>, vector<1x128xf32>
    %1055 = vector.broadcast %1054 : vector<1x128xf32> to vector<4x128xf32>
    %1056 = arith.mulf %1053, %1055 : vector<4x128xf32>
    %1057 = arith.addf %1051, %1056 : vector<4x128xf32>
    %c6_836 = arith.constant 6 : index
    %c2_837 = arith.constant 2 : index
    %c0_838 = arith.constant 0 : index
    %1058 = vector.load %arg12[%c6_836, %c2_837, %c0_838] : memref<10x10x128xf32, #tpu.memory_space<vmem>>, vector<1x4x128xf32>
    %1059 = vector.shape_cast %1058 : vector<1x4x128xf32> to vector<4x128xf32>
    %c23_839 = arith.constant 23 : index
    %c0_840 = arith.constant 0 : index
    %1060 = vector.load %arg2[%c23_839, %c0_840] : memref<49x128xf32, #tpu.memory_space<vmem>>, vector<1x128xf32>
    %1061 = vector.broadcast %1060 : vector<1x128xf32> to vector<4x128xf32>
    %1062 = arith.mulf %1059, %1061 : vector<4x128xf32>
    %1063 = arith.addf %1057, %1062 : vector<4x128xf32>
    %c6_841 = arith.constant 6 : index
    %c3_842 = arith.constant 3 : index
    %c0_843 = arith.constant 0 : index
    %1064 = vector.load %arg12[%c6_841, %c3_842, %c0_843] : memref<10x10x128xf32, #tpu.memory_space<vmem>>, vector<1x4x128xf32>
    %1065 = vector.shape_cast %1064 : vector<1x4x128xf32> to vector<4x128xf32>
    %c24_844 = arith.constant 24 : index
    %c0_845 = arith.constant 0 : index
    %1066 = vector.load %arg2[%c24_844, %c0_845] : memref<49x128xf32, #tpu.memory_space<vmem>>, vector<1x128xf32>
    %1067 = vector.broadcast %1066 : vector<1x128xf32> to vector<4x128xf32>
    %1068 = arith.mulf %1065, %1067 : vector<4x128xf32>
    %1069 = arith.addf %1063, %1068 : vector<4x128xf32>
    %c6_846 = arith.constant 6 : index
    %c4_847 = arith.constant 4 : index
    %c0_848 = arith.constant 0 : index
    %1070 = vector.load %arg12[%c6_846, %c4_847, %c0_848] : memref<10x10x128xf32, #tpu.memory_space<vmem>>, vector<1x4x128xf32>
    %1071 = vector.shape_cast %1070 : vector<1x4x128xf32> to vector<4x128xf32>
    %c25_849 = arith.constant 25 : index
    %c0_850 = arith.constant 0 : index
    %1072 = vector.load %arg2[%c25_849, %c0_850] : memref<49x128xf32, #tpu.memory_space<vmem>>, vector<1x128xf32>
    %1073 = vector.broadcast %1072 : vector<1x128xf32> to vector<4x128xf32>
    %1074 = arith.mulf %1071, %1073 : vector<4x128xf32>
    %1075 = arith.addf %1069, %1074 : vector<4x128xf32>
    %c6_851 = arith.constant 6 : index
    %c5_852 = arith.constant 5 : index
    %c0_853 = arith.constant 0 : index
    %1076 = vector.load %arg12[%c6_851, %c5_852, %c0_853] : memref<10x10x128xf32, #tpu.memory_space<vmem>>, vector<1x4x128xf32>
    %1077 = vector.shape_cast %1076 : vector<1x4x128xf32> to vector<4x128xf32>
    %c26_854 = arith.constant 26 : index
    %c0_855 = arith.constant 0 : index
    %1078 = vector.load %arg2[%c26_854, %c0_855] : memref<49x128xf32, #tpu.memory_space<vmem>>, vector<1x128xf32>
    %1079 = vector.broadcast %1078 : vector<1x128xf32> to vector<4x128xf32>
    %1080 = arith.mulf %1077, %1079 : vector<4x128xf32>
    %1081 = arith.addf %1075, %1080 : vector<4x128xf32>
    %c6_856 = arith.constant 6 : index
    %c6_857 = arith.constant 6 : index
    %c0_858 = arith.constant 0 : index
    %1082 = vector.load %arg12[%c6_856, %c6_857, %c0_858] : memref<10x10x128xf32, #tpu.memory_space<vmem>>, vector<1x4x128xf32>
    %1083 = vector.shape_cast %1082 : vector<1x4x128xf32> to vector<4x128xf32>
    %c27_859 = arith.constant 27 : index
    %c0_860 = arith.constant 0 : index
    %1084 = vector.load %arg2[%c27_859, %c0_860] : memref<49x128xf32, #tpu.memory_space<vmem>>, vector<1x128xf32>
    %1085 = vector.broadcast %1084 : vector<1x128xf32> to vector<4x128xf32>
    %1086 = arith.mulf %1083, %1085 : vector<4x128xf32>
    %1087 = arith.addf %1081, %1086 : vector<4x128xf32>
    %c7_861 = arith.constant 7 : index
    %c0_862 = arith.constant 0 : index
    %c0_863 = arith.constant 0 : index
    %1088 = vector.load %arg12[%c7_861, %c0_862, %c0_863] : memref<10x10x128xf32, #tpu.memory_space<vmem>>, vector<1x4x128xf32>
    %1089 = vector.shape_cast %1088 : vector<1x4x128xf32> to vector<4x128xf32>
    %c28_864 = arith.constant 28 : index
    %c0_865 = arith.constant 0 : index
    %1090 = vector.load %arg2[%c28_864, %c0_865] : memref<49x128xf32, #tpu.memory_space<vmem>>, vector<1x128xf32>
    %1091 = vector.broadcast %1090 : vector<1x128xf32> to vector<4x128xf32>
    %1092 = arith.mulf %1089, %1091 : vector<4x128xf32>
    %1093 = arith.addf %1087, %1092 : vector<4x128xf32>
    %c7_866 = arith.constant 7 : index
    %c1_867 = arith.constant 1 : index
    %c0_868 = arith.constant 0 : index
    %1094 = vector.load %arg12[%c7_866, %c1_867, %c0_868] : memref<10x10x128xf32, #tpu.memory_space<vmem>>, vector<1x4x128xf32>
    %1095 = vector.shape_cast %1094 : vector<1x4x128xf32> to vector<4x128xf32>
    %c29_869 = arith.constant 29 : index
    %c0_870 = arith.constant 0 : index
    %1096 = vector.load %arg2[%c29_869, %c0_870] : memref<49x128xf32, #tpu.memory_space<vmem>>, vector<1x128xf32>
    %1097 = vector.broadcast %1096 : vector<1x128xf32> to vector<4x128xf32>
    %1098 = arith.mulf %1095, %1097 : vector<4x128xf32>
    %1099 = arith.addf %1093, %1098 : vector<4x128xf32>
    %c7_871 = arith.constant 7 : index
    %c2_872 = arith.constant 2 : index
    %c0_873 = arith.constant 0 : index
    %1100 = vector.load %arg12[%c7_871, %c2_872, %c0_873] : memref<10x10x128xf32, #tpu.memory_space<vmem>>, vector<1x4x128xf32>
    %1101 = vector.shape_cast %1100 : vector<1x4x128xf32> to vector<4x128xf32>
    %c30_874 = arith.constant 30 : index
    %c0_875 = arith.constant 0 : index
    %1102 = vector.load %arg2[%c30_874, %c0_875] : memref<49x128xf32, #tpu.memory_space<vmem>>, vector<1x128xf32>
    %1103 = vector.broadcast %1102 : vector<1x128xf32> to vector<4x128xf32>
    %1104 = arith.mulf %1101, %1103 : vector<4x128xf32>
    %1105 = arith.addf %1099, %1104 : vector<4x128xf32>
    %c7_876 = arith.constant 7 : index
    %c3_877 = arith.constant 3 : index
    %c0_878 = arith.constant 0 : index
    %1106 = vector.load %arg12[%c7_876, %c3_877, %c0_878] : memref<10x10x128xf32, #tpu.memory_space<vmem>>, vector<1x4x128xf32>
    %1107 = vector.shape_cast %1106 : vector<1x4x128xf32> to vector<4x128xf32>
    %c31_879 = arith.constant 31 : index
    %c0_880 = arith.constant 0 : index
    %1108 = vector.load %arg2[%c31_879, %c0_880] : memref<49x128xf32, #tpu.memory_space<vmem>>, vector<1x128xf32>
    %1109 = vector.broadcast %1108 : vector<1x128xf32> to vector<4x128xf32>
    %1110 = arith.mulf %1107, %1109 : vector<4x128xf32>
    %1111 = arith.addf %1105, %1110 : vector<4x128xf32>
    %c7_881 = arith.constant 7 : index
    %c4_882 = arith.constant 4 : index
    %c0_883 = arith.constant 0 : index
    %1112 = vector.load %arg12[%c7_881, %c4_882, %c0_883] : memref<10x10x128xf32, #tpu.memory_space<vmem>>, vector<1x4x128xf32>
    %1113 = vector.shape_cast %1112 : vector<1x4x128xf32> to vector<4x128xf32>
    %c32_884 = arith.constant 32 : index
    %c0_885 = arith.constant 0 : index
    %1114 = vector.load %arg2[%c32_884, %c0_885] : memref<49x128xf32, #tpu.memory_space<vmem>>, vector<1x128xf32>
    %1115 = vector.broadcast %1114 : vector<1x128xf32> to vector<4x128xf32>
    %1116 = arith.mulf %1113, %1115 : vector<4x128xf32>
    %1117 = arith.addf %1111, %1116 : vector<4x128xf32>
    %c7_886 = arith.constant 7 : index
    %c5_887 = arith.constant 5 : index
    %c0_888 = arith.constant 0 : index
    %1118 = vector.load %arg12[%c7_886, %c5_887, %c0_888] : memref<10x10x128xf32, #tpu.memory_space<vmem>>, vector<1x4x128xf32>
    %1119 = vector.shape_cast %1118 : vector<1x4x128xf32> to vector<4x128xf32>
    %c33_889 = arith.constant 33 : index
    %c0_890 = arith.constant 0 : index
    %1120 = vector.load %arg2[%c33_889, %c0_890] : memref<49x128xf32, #tpu.memory_space<vmem>>, vector<1x128xf32>
    %1121 = vector.broadcast %1120 : vector<1x128xf32> to vector<4x128xf32>
    %1122 = arith.mulf %1119, %1121 : vector<4x128xf32>
    %1123 = arith.addf %1117, %1122 : vector<4x128xf32>
    %c7_891 = arith.constant 7 : index
    %c6_892 = arith.constant 6 : index
    %c0_893 = arith.constant 0 : index
    %1124 = vector.load %arg12[%c7_891, %c6_892, %c0_893] : memref<10x10x128xf32, #tpu.memory_space<vmem>>, vector<1x4x128xf32>
    %1125 = vector.shape_cast %1124 : vector<1x4x128xf32> to vector<4x128xf32>
    %c34_894 = arith.constant 34 : index
    %c0_895 = arith.constant 0 : index
    %1126 = vector.load %arg2[%c34_894, %c0_895] : memref<49x128xf32, #tpu.memory_space<vmem>>, vector<1x128xf32>
    %1127 = vector.broadcast %1126 : vector<1x128xf32> to vector<4x128xf32>
    %1128 = arith.mulf %1125, %1127 : vector<4x128xf32>
    %1129 = arith.addf %1123, %1128 : vector<4x128xf32>
    %c8_896 = arith.constant 8 : index
    %c0_897 = arith.constant 0 : index
    %c0_898 = arith.constant 0 : index
    %1130 = vector.load %arg12[%c8_896, %c0_897, %c0_898] : memref<10x10x128xf32, #tpu.memory_space<vmem>>, vector<1x4x128xf32>
    %1131 = vector.shape_cast %1130 : vector<1x4x128xf32> to vector<4x128xf32>
    %c35_899 = arith.constant 35 : index
    %c0_900 = arith.constant 0 : index
    %1132 = vector.load %arg2[%c35_899, %c0_900] : memref<49x128xf32, #tpu.memory_space<vmem>>, vector<1x128xf32>
    %1133 = vector.broadcast %1132 : vector<1x128xf32> to vector<4x128xf32>
    %1134 = arith.mulf %1131, %1133 : vector<4x128xf32>
    %1135 = arith.addf %1129, %1134 : vector<4x128xf32>
    %c8_901 = arith.constant 8 : index
    %c1_902 = arith.constant 1 : index
    %c0_903 = arith.constant 0 : index
    %1136 = vector.load %arg12[%c8_901, %c1_902, %c0_903] : memref<10x10x128xf32, #tpu.memory_space<vmem>>, vector<1x4x128xf32>
    %1137 = vector.shape_cast %1136 : vector<1x4x128xf32> to vector<4x128xf32>
    %c36_904 = arith.constant 36 : index
    %c0_905 = arith.constant 0 : index
    %1138 = vector.load %arg2[%c36_904, %c0_905] : memref<49x128xf32, #tpu.memory_space<vmem>>, vector<1x128xf32>
    %1139 = vector.broadcast %1138 : vector<1x128xf32> to vector<4x128xf32>
    %1140 = arith.mulf %1137, %1139 : vector<4x128xf32>
    %1141 = arith.addf %1135, %1140 : vector<4x128xf32>
    %c8_906 = arith.constant 8 : index
    %c2_907 = arith.constant 2 : index
    %c0_908 = arith.constant 0 : index
    %1142 = vector.load %arg12[%c8_906, %c2_907, %c0_908] : memref<10x10x128xf32, #tpu.memory_space<vmem>>, vector<1x4x128xf32>
    %1143 = vector.shape_cast %1142 : vector<1x4x128xf32> to vector<4x128xf32>
    %c37_909 = arith.constant 37 : index
    %c0_910 = arith.constant 0 : index
    %1144 = vector.load %arg2[%c37_909, %c0_910] : memref<49x128xf32, #tpu.memory_space<vmem>>, vector<1x128xf32>
    %1145 = vector.broadcast %1144 : vector<1x128xf32> to vector<4x128xf32>
    %1146 = arith.mulf %1143, %1145 : vector<4x128xf32>
    %1147 = arith.addf %1141, %1146 : vector<4x128xf32>
    %c8_911 = arith.constant 8 : index
    %c3_912 = arith.constant 3 : index
    %c0_913 = arith.constant 0 : index
    %1148 = vector.load %arg12[%c8_911, %c3_912, %c0_913] : memref<10x10x128xf32, #tpu.memory_space<vmem>>, vector<1x4x128xf32>
    %1149 = vector.shape_cast %1148 : vector<1x4x128xf32> to vector<4x128xf32>
    %c38_914 = arith.constant 38 : index
    %c0_915 = arith.constant 0 : index
    %1150 = vector.load %arg2[%c38_914, %c0_915] : memref<49x128xf32, #tpu.memory_space<vmem>>, vector<1x128xf32>
    %1151 = vector.broadcast %1150 : vector<1x128xf32> to vector<4x128xf32>
    %1152 = arith.mulf %1149, %1151 : vector<4x128xf32>
    %1153 = arith.addf %1147, %1152 : vector<4x128xf32>
    %c8_916 = arith.constant 8 : index
    %c4_917 = arith.constant 4 : index
    %c0_918 = arith.constant 0 : index
    %1154 = vector.load %arg12[%c8_916, %c4_917, %c0_918] : memref<10x10x128xf32, #tpu.memory_space<vmem>>, vector<1x4x128xf32>
    %1155 = vector.shape_cast %1154 : vector<1x4x128xf32> to vector<4x128xf32>
    %c39_919 = arith.constant 39 : index
    %c0_920 = arith.constant 0 : index
    %1156 = vector.load %arg2[%c39_919, %c0_920] : memref<49x128xf32, #tpu.memory_space<vmem>>, vector<1x128xf32>
    %1157 = vector.broadcast %1156 : vector<1x128xf32> to vector<4x128xf32>
    %1158 = arith.mulf %1155, %1157 : vector<4x128xf32>
    %1159 = arith.addf %1153, %1158 : vector<4x128xf32>
    %c8_921 = arith.constant 8 : index
    %c5_922 = arith.constant 5 : index
    %c0_923 = arith.constant 0 : index
    %1160 = vector.load %arg12[%c8_921, %c5_922, %c0_923] : memref<10x10x128xf32, #tpu.memory_space<vmem>>, vector<1x4x128xf32>
    %1161 = vector.shape_cast %1160 : vector<1x4x128xf32> to vector<4x128xf32>
    %c40_924 = arith.constant 40 : index
    %c0_925 = arith.constant 0 : index
    %1162 = vector.load %arg2[%c40_924, %c0_925] : memref<49x128xf32, #tpu.memory_space<vmem>>, vector<1x128xf32>
    %1163 = vector.broadcast %1162 : vector<1x128xf32> to vector<4x128xf32>
    %1164 = arith.mulf %1161, %1163 : vector<4x128xf32>
    %1165 = arith.addf %1159, %1164 : vector<4x128xf32>
    %c8_926 = arith.constant 8 : index
    %c6_927 = arith.constant 6 : index
    %c0_928 = arith.constant 0 : index
    %1166 = vector.load %arg12[%c8_926, %c6_927, %c0_928] : memref<10x10x128xf32, #tpu.memory_space<vmem>>, vector<1x4x128xf32>
    %1167 = vector.shape_cast %1166 : vector<1x4x128xf32> to vector<4x128xf32>
    %c41_929 = arith.constant 41 : index
    %c0_930 = arith.constant 0 : index
    %1168 = vector.load %arg2[%c41_929, %c0_930] : memref<49x128xf32, #tpu.memory_space<vmem>>, vector<1x128xf32>
    %1169 = vector.broadcast %1168 : vector<1x128xf32> to vector<4x128xf32>
    %1170 = arith.mulf %1167, %1169 : vector<4x128xf32>
    %1171 = arith.addf %1165, %1170 : vector<4x128xf32>
    %c9_931 = arith.constant 9 : index
    %c0_932 = arith.constant 0 : index
    %c0_933 = arith.constant 0 : index
    %1172 = vector.load %arg12[%c9_931, %c0_932, %c0_933] : memref<10x10x128xf32, #tpu.memory_space<vmem>>, vector<1x4x128xf32>
    %1173 = vector.shape_cast %1172 : vector<1x4x128xf32> to vector<4x128xf32>
    %c42_934 = arith.constant 42 : index
    %c0_935 = arith.constant 0 : index
    %1174 = vector.load %arg2[%c42_934, %c0_935] : memref<49x128xf32, #tpu.memory_space<vmem>>, vector<1x128xf32>
    %1175 = vector.broadcast %1174 : vector<1x128xf32> to vector<4x128xf32>
    %1176 = arith.mulf %1173, %1175 : vector<4x128xf32>
    %1177 = arith.addf %1171, %1176 : vector<4x128xf32>
    %c9_936 = arith.constant 9 : index
    %c1_937 = arith.constant 1 : index
    %c0_938 = arith.constant 0 : index
    %1178 = vector.load %arg12[%c9_936, %c1_937, %c0_938] : memref<10x10x128xf32, #tpu.memory_space<vmem>>, vector<1x4x128xf32>
    %1179 = vector.shape_cast %1178 : vector<1x4x128xf32> to vector<4x128xf32>
    %c43_939 = arith.constant 43 : index
    %c0_940 = arith.constant 0 : index
    %1180 = vector.load %arg2[%c43_939, %c0_940] : memref<49x128xf32, #tpu.memory_space<vmem>>, vector<1x128xf32>
    %1181 = vector.broadcast %1180 : vector<1x128xf32> to vector<4x128xf32>
    %1182 = arith.mulf %1179, %1181 : vector<4x128xf32>
    %1183 = arith.addf %1177, %1182 : vector<4x128xf32>
    %c9_941 = arith.constant 9 : index
    %c2_942 = arith.constant 2 : index
    %c0_943 = arith.constant 0 : index
    %1184 = vector.load %arg12[%c9_941, %c2_942, %c0_943] : memref<10x10x128xf32, #tpu.memory_space<vmem>>, vector<1x4x128xf32>
    %1185 = vector.shape_cast %1184 : vector<1x4x128xf32> to vector<4x128xf32>
    %c44_944 = arith.constant 44 : index
    %c0_945 = arith.constant 0 : index
    %1186 = vector.load %arg2[%c44_944, %c0_945] : memref<49x128xf32, #tpu.memory_space<vmem>>, vector<1x128xf32>
    %1187 = vector.broadcast %1186 : vector<1x128xf32> to vector<4x128xf32>
    %1188 = arith.mulf %1185, %1187 : vector<4x128xf32>
    %1189 = arith.addf %1183, %1188 : vector<4x128xf32>
    %c9_946 = arith.constant 9 : index
    %c3_947 = arith.constant 3 : index
    %c0_948 = arith.constant 0 : index
    %1190 = vector.load %arg12[%c9_946, %c3_947, %c0_948] : memref<10x10x128xf32, #tpu.memory_space<vmem>>, vector<1x4x128xf32>
    %1191 = vector.shape_cast %1190 : vector<1x4x128xf32> to vector<4x128xf32>
    %c45_949 = arith.constant 45 : index
    %c0_950 = arith.constant 0 : index
    %1192 = vector.load %arg2[%c45_949, %c0_950] : memref<49x128xf32, #tpu.memory_space<vmem>>, vector<1x128xf32>
    %1193 = vector.broadcast %1192 : vector<1x128xf32> to vector<4x128xf32>
    %1194 = arith.mulf %1191, %1193 : vector<4x128xf32>
    %1195 = arith.addf %1189, %1194 : vector<4x128xf32>
    %c9_951 = arith.constant 9 : index
    %c4_952 = arith.constant 4 : index
    %c0_953 = arith.constant 0 : index
    %1196 = vector.load %arg12[%c9_951, %c4_952, %c0_953] : memref<10x10x128xf32, #tpu.memory_space<vmem>>, vector<1x4x128xf32>
    %1197 = vector.shape_cast %1196 : vector<1x4x128xf32> to vector<4x128xf32>
    %c46_954 = arith.constant 46 : index
    %c0_955 = arith.constant 0 : index
    %1198 = vector.load %arg2[%c46_954, %c0_955] : memref<49x128xf32, #tpu.memory_space<vmem>>, vector<1x128xf32>
    %1199 = vector.broadcast %1198 : vector<1x128xf32> to vector<4x128xf32>
    %1200 = arith.mulf %1197, %1199 : vector<4x128xf32>
    %1201 = arith.addf %1195, %1200 : vector<4x128xf32>
    %c9_956 = arith.constant 9 : index
    %c5_957 = arith.constant 5 : index
    %c0_958 = arith.constant 0 : index
    %1202 = vector.load %arg12[%c9_956, %c5_957, %c0_958] : memref<10x10x128xf32, #tpu.memory_space<vmem>>, vector<1x4x128xf32>
    %1203 = vector.shape_cast %1202 : vector<1x4x128xf32> to vector<4x128xf32>
    %c47_959 = arith.constant 47 : index
    %c0_960 = arith.constant 0 : index
    %1204 = vector.load %arg2[%c47_959, %c0_960] : memref<49x128xf32, #tpu.memory_space<vmem>>, vector<1x128xf32>
    %1205 = vector.broadcast %1204 : vector<1x128xf32> to vector<4x128xf32>
    %1206 = arith.mulf %1203, %1205 : vector<4x128xf32>
    %1207 = arith.addf %1201, %1206 : vector<4x128xf32>
    %c9_961 = arith.constant 9 : index
    %c6_962 = arith.constant 6 : index
    %c0_963 = arith.constant 0 : index
    %1208 = vector.load %arg12[%c9_961, %c6_962, %c0_963] : memref<10x10x128xf32, #tpu.memory_space<vmem>>, vector<1x4x128xf32>
    %1209 = vector.shape_cast %1208 : vector<1x4x128xf32> to vector<4x128xf32>
    %c48_964 = arith.constant 48 : index
    %c0_965 = arith.constant 0 : index
    %1210 = vector.load %arg2[%c48_964, %c0_965] : memref<49x128xf32, #tpu.memory_space<vmem>>, vector<1x128xf32>
    %1211 = vector.broadcast %1210 : vector<1x128xf32> to vector<4x128xf32>
    %1212 = arith.mulf %1209, %1211 : vector<4x128xf32>
    %1213 = arith.addf %1207, %1212 : vector<4x128xf32>
    %c12_966 = arith.constant 12 : index
    %c0_967 = arith.constant 0 : index
    %1214 = vector.load %arg13[%c12_966, %c0_967] : memref<16x128xf32, #tpu.memory_space<vmem>>, vector<4x128xf32>
    tpu.vector_store %arg13[%c12_966, %c0_967], %1213 {strides = array<i32>} : memref<16x128xf32, #tpu.memory_space<vmem>>, vector<4x128xf32>,
    %c0_968 = arith.constant 0 : index
    %c0_969 = arith.constant 0 : index
    %1215 = vector.load %arg13[%c0_968, %c0_969] : memref<16x128xf32, #tpu.memory_space<vmem>>, vector<16x128xf32>
    %cst_970 = arith.constant dense<0.000000e+00> : vector<16xf32>
    %1216 = vector.multi_reduction <add>, %1215, %cst_970 [1] : vector<16x128xf32> to vector<16xf32>
    %1217 = vector.shape_cast %1216 : vector<16xf32> to vector<16x1xf32>
    %cst_971 = arith.constant 1.280000e+02 : f32
    %1218 = vector.broadcast %cst_971 : f32 to vector<16x1xf32>
    %1219 = arith.divf %1217, %1218 : vector<16x1xf32>
    %1220 = vector.broadcast %1219 : vector<16x1xf32> to vector<16x128xf32>
    %1221 = arith.subf %1215, %1220 : vector<16x128xf32>
    %1222 = arith.mulf %1221, %1221 : vector<16x128xf32>
    %cst_972 = arith.constant dense<0.000000e+00> : vector<16xf32>
    %1223 = vector.multi_reduction <add>, %1222, %cst_972 [1] : vector<16x128xf32> to vector<16xf32>
    %1224 = vector.shape_cast %1223 : vector<16xf32> to vector<16x1xf32>
    %cst_973 = arith.constant 1.280000e+02 : f32
    %1225 = vector.broadcast %cst_973 : f32 to vector<16x1xf32>
    %1226 = arith.divf %1224, %1225 : vector<16x1xf32>
    %1227 = vector.broadcast %1219 : vector<16x1xf32> to vector<16x128xf32>
    %1228 = arith.subf %1215, %1227 : vector<16x128xf32>
    %cst_974 = arith.constant 9.99999997E-7 : f32
    %1229 = vector.broadcast %cst_974 : f32 to vector<16x1xf32>
    %1230 = arith.addf %1226, %1229 : vector<16x1xf32>
    %1231 = math.rsqrt %1230 : vector<16x1xf32>
    %1232 = vector.broadcast %1231 : vector<16x1xf32> to vector<16x128xf32>
    %1233 = arith.mulf %1228, %1232 : vector<16x128xf32>
    %c0_975 = arith.constant 0 : index
    %c0_976 = arith.constant 0 : index
    %1234 = vector.load %arg4[%c0_975, %c0_976] : memref<1x128xf32, #tpu.memory_space<vmem>>, vector<1x128xf32>
    %1235 = vector.broadcast %1234 : vector<1x128xf32> to vector<16x128xf32>
    %1236 = arith.mulf %1233, %1235 : vector<16x128xf32>
    %c0_977 = arith.constant 0 : index
    %c0_978 = arith.constant 0 : index
    %1237 = vector.load %arg5[%c0_977, %c0_978] : memref<1x128xf32, #tpu.memory_space<vmem>>, vector<1x128xf32>
    %1238 = vector.broadcast %1237 : vector<1x128xf32> to vector<16x128xf32>
    %1239 = arith.addf %1236, %1238 : vector<16x128xf32>
    %1240 = arith.truncf %1239 : vector<16x128xf32> to vector<16x128xbf16>
    %c0_979 = arith.constant 0 : index
    %c0_980 = arith.constant 0 : index
    %1241 = vector.load %arg6[%c0_979, %c0_980] : memref<128x512xbf16, #tpu.memory_space<vmem>>, vector<128x512xbf16>
    %cst_981 = arith.constant dense<0.000000e+00> : vector<16x512xf32>
    %1242 = tpu.matmul %1240, %1241, %cst_981 {dimension_numbers = #tpu.dot_dimension_numbers<[1], [0], [0], [1], [0, 0, 1, 1], [], []>} : vector<16x128xbf16>, vector<128x512xbf16>, vector<16x512xf32> -> vector<16x512xf32>
    %c0_982 = arith.constant 0 : index
    %c0_983 = arith.constant 0 : index
    %1243 = vector.load %arg7[%c0_982, %c0_983] : memref<1x512xf32, #tpu.memory_space<vmem>>, vector<1x512xf32>
    %1244 = vector.broadcast %1243 : vector<1x512xf32> to vector<16x512xf32>
    %1245 = arith.addf %1242, %1244 : vector<16x512xf32>
    %cst_984 = arith.constant 5.000000e-01 : f32
    %1246 = vector.broadcast %cst_984 : f32 to vector<16x512xf32>
    %1247 = arith.mulf %1246, %1245 : vector<16x512xf32>
    %cst_985 = arith.constant 0.707106769 : f32
    %1248 = vector.broadcast %cst_985 : f32 to vector<16x512xf32>
    %1249 = arith.mulf %1245, %1248 : vector<16x512xf32>
    %1250 = math.absf %1249 : vector<16x512xf32>
    %cst_986 = arith.constant 0.327591091 : f32
    %1251 = vector.broadcast %cst_986 : f32 to vector<16x512xf32>
    %1252 = arith.mulf %1251, %1250 : vector<16x512xf32>
    %cst_987 = arith.constant 1.000000e+00 : f32
    %1253 = vector.broadcast %cst_987 : f32 to vector<16x512xf32>
    %1254 = arith.addf %1253, %1252 : vector<16x512xf32>
    %cst_988 = arith.constant 1.000000e+00 : f32
    %1255 = vector.broadcast %cst_988 : f32 to vector<16x512xf32>
    %1256 = arith.divf %1255, %1254 : vector<16x512xf32>
    %cst_989 = arith.constant 1.06140542 : f32
    %1257 = vector.broadcast %cst_989 : f32 to vector<16x512xf32>
    %1258 = arith.mulf %1257, %1256 : vector<16x512xf32>
    %cst_990 = arith.constant -1.45315206 : f32
    %1259 = vector.broadcast %cst_990 : f32 to vector<16x512xf32>
    %1260 = arith.addf %1258, %1259 : vector<16x512xf32>
    %1261 = arith.mulf %1260, %1256 : vector<16x512xf32>
    %cst_991 = arith.constant 1.42141378 : f32
    %1262 = vector.broadcast %cst_991 : f32 to vector<16x512xf32>
    %1263 = arith.addf %1261, %1262 : vector<16x512xf32>
    %1264 = arith.mulf %1263, %1256 : vector<16x512xf32>
    %cst_992 = arith.constant -0.284496725 : f32
    %1265 = vector.broadcast %cst_992 : f32 to vector<16x512xf32>
    %1266 = arith.addf %1264, %1265 : vector<16x512xf32>
    %1267 = arith.mulf %1266, %1256 : vector<16x512xf32>
    %cst_993 = arith.constant 0.254829586 : f32
    %1268 = vector.broadcast %cst_993 : f32 to vector<16x512xf32>
    %1269 = arith.addf %1267, %1268 : vector<16x512xf32>
    %1270 = arith.mulf %1269, %1256 : vector<16x512xf32>
    %cst_994 = arith.constant 0.000000e+00 : f32
    %1271 = vector.broadcast %cst_994 : f32 to vector<16x512xf32>
    %1272 = arith.subf %1271, %1250 : vector<16x512xf32>
    %1273 = arith.mulf %1272, %1250 : vector<16x512xf32>
    %1274 = math.exp %1273 : vector<16x512xf32>
    %1275 = arith.mulf %1270, %1274 : vector<16x512xf32>
    %cst_995 = arith.constant 1.000000e+00 : f32
    %1276 = vector.broadcast %cst_995 : f32 to vector<16x512xf32>
    %1277 = arith.subf %1276, %1275 : vector<16x512xf32>
    %cst_996 = arith.constant 0.000000e+00 : f32
    %1278 = vector.broadcast %cst_996 : f32 to vector<16x512xf32>
    %1279 = arith.cmpf oge, %1249, %1278 : vector<16x512xf32>
    %cst_997 = arith.constant 0.000000e+00 : f32
    %1280 = vector.broadcast %cst_997 : f32 to vector<16x512xf32>
    %1281 = arith.subf %1280, %1277 : vector<16x512xf32>
    %1282 = arith.select %1279, %1277, %1281 : vector<16x512xi1>, vector<16x512xf32>
    %cst_998 = arith.constant 1.000000e+00 : f32
    %1283 = vector.broadcast %cst_998 : f32 to vector<16x512xf32>
    %1284 = arith.addf %1283, %1282 : vector<16x512xf32>
    %1285 = arith.mulf %1247, %1284 : vector<16x512xf32>
    %1286 = arith.truncf %1285 : vector<16x512xf32> to vector<16x512xbf16>
    %c0_999 = arith.constant 0 : index
    %c0_1000 = arith.constant 0 : index
    %1287 = vector.load %arg8[%c0_999, %c0_1000] : memref<512x128xbf16, #tpu.memory_space<vmem>>, vector<512x128xbf16>
    %cst_1001 = arith.constant dense<0.000000e+00> : vector<16x128xf32>
    %1288 = tpu.matmul %1286, %1287, %cst_1001 {dimension_numbers = #tpu.dot_dimension_numbers<[1], [0], [0], [1], [0, 0, 1, 1], [], []>} : vector<16x512xbf16>, vector<512x128xbf16>, vector<16x128xf32> -> vector<16x128xf32>
    %c0_1002 = arith.constant 0 : index
    %c0_1003 = arith.constant 0 : index
    %1289 = vector.load %arg9[%c0_1002, %c0_1003] : memref<1x128xf32, #tpu.memory_space<vmem>>, vector<1x128xf32>
    %1290 = vector.broadcast %1289 : vector<1x128xf32> to vector<16x128xf32>
    %1291 = arith.addf %1288, %1290 : vector<16x128xf32>
    %c0_1004 = arith.constant 0 : index
    %c0_1005 = arith.constant 0 : index
    %1292 = vector.load %arg1[%c0_1004, %c0_1005] : memref<16x128xbf16, #tpu.memory_space<vmem>>, vector<16x128xbf16>
    %1293 = arith.extf %1292 : vector<16x128xbf16> to vector<16x128xf32>
    %c0_1006 = arith.constant 0 : index
    %c0_1007 = arith.constant 0 : index
    %1294 = vector.load %arg10[%c0_1006, %c0_1007] : memref<1x128xf32, #tpu.memory_space<vmem>>, vector<1x128xf32>
    %1295 = vector.broadcast %1294 : vector<1x128xf32> to vector<16x128xf32>
    %1296 = arith.mulf %1295, %1291 : vector<16x128xf32>
    %1297 = arith.addf %1293, %1296 : vector<16x128xf32>
    %c0_1008 = arith.constant 0 : index
    %c0_1009 = arith.constant 0 : index
    %1298 = vector.load %arg11[%c0_1008, %c0_1009] : memref<16x128xf32, #tpu.memory_space<vmem>>, vector<16x128xf32>
    tpu.vector_store %arg11[%c0_1008, %c0_1009], %1297 {strides = array<i32>} : memref<16x128xf32, #tpu.memory_space<vmem>>, vector<16x128xf32>,
    return
  }
  func.func @transform_0(%arg0: i32) -> (i32, i32) {
    %c0_i32 = arith.constant 0 : i32
    %c0_i32_0 = arith.constant 0 : i32
    return %arg0, %c0_i32 : i32, i32
  }
  func.func @transform_1(%arg0: i32) -> (i32, i32) {
    %c0_i32 = arith.constant 0 : i32
    %c0_i32_0 = arith.constant 0 : i32
    %c0_i32_1 = arith.constant 0 : i32
    return %c0_i32, %c0_i32_0 : i32, i32
  }
  func.func @transform_2(%arg0: i32) -> (i32, i32) {
    %c0_i32 = arith.constant 0 : i32
    %c0_i32_0 = arith.constant 0 : i32
    %c0_i32_1 = arith.constant 0 : i32
    return %c0_i32, %c0_i32_0 : i32, i32
  }
  func.func @transform_3(%arg0: i32) -> (i32, i32) {
    %c0_i32 = arith.constant 0 : i32
    %c0_i32_0 = arith.constant 0 : i32
    %c0_i32_1 = arith.constant 0 : i32
    return %c0_i32, %c0_i32_0 : i32, i32
  }
  func.func @transform_4(%arg0: i32) -> (i32, i32) {
    %c0_i32 = arith.constant 0 : i32
    %c0_i32_0 = arith.constant 0 : i32
    %c0_i32_1 = arith.constant 0 : i32
    return %c0_i32, %c0_i32_0 : i32, i32
  }
  func.func @transform_5(%arg0: i32) -> (i32, i32) {
    %c0_i32 = arith.constant 0 : i32
    %c0_i32_0 = arith.constant 0 : i32
    %c0_i32_1 = arith.constant 0 : i32
    return %c0_i32, %c0_i32_0 : i32, i32
  }
  func.func @transform_6(%arg0: i32) -> (i32, i32) {
    %c0_i32 = arith.constant 0 : i32
    %c0_i32_0 = arith.constant 0 : i32
    %c0_i32_1 = arith.constant 0 : i32
    return %c0_i32, %c0_i32_0 : i32, i32
  }
  func.func @transform_7(%arg0: i32) -> (i32, i32) {
    %c0_i32 = arith.constant 0 : i32
    %c0_i32_0 = arith.constant 0 : i32
    %c0_i32_1 = arith.constant 0 : i32
    return %c0_i32, %c0_i32_0 : i32, i32
  }
  func.func @transform_8(%arg0: i32) -> (i32, i32) {
    %c0_i32 = arith.constant 0 : i32
    %c0_i32_0 = arith.constant 0 : i32
    %c0_i32_1 = arith.constant 0 : i32
    return %c0_i32, %c0_i32_0 : i32, i32
  }
  func.func @transform_9(%arg0: i32) -> (i32, i32) {
    %c0_i32 = arith.constant 0 : i32
    %c0_i32_0 = arith.constant 0 : i32
    %c0_i32_1 = arith.constant 0 : i32
    return %c0_i32, %c0_i32_0 : i32, i32
  }
  func.func @transform_10(%arg0: i32) -> (i32, i32) {
    %c0_i32 = arith.constant 0 : i32
    %c0_i32_0 = arith.constant 0 : i32
    return %arg0, %c0_i32 : i32, i32
  }
}

</mosaic_0001>

<bundles_post_ra>
// kernel: convnext_forward.2
= control target key start
LH: loop header
LB: loop body
LE: loop exit
PB: predicated region body
PF: predicated region fallthrough
CT: control target
= control target key end

     0   :  { %s403_s1 = inlined_call_operand.vmem [shape: bf16[128,128], index: 1, kind: input, shape index: {}]   ;;  %s404_s0 = inlined_call_operand.vmem [shape: bf16[32,128], index: 0, kind: input, shape index: {}]   ;;  %s405_s2 = inlined_call_operand.vmem [shape: f32[1,128], index: 2, kind: input, shape index: {}]   ;;  %s406_s3 = inlined_call_operand.vmem [shape: f32[1,128], index: 3, kind: input, shape index: {}]   ;;  %s407_s4 = inlined_call_operand.vmem [shape: f32[1,128], index: 4, kind: input, shape index: {}]   ;;  %s408_s5 = inlined_call_operand.vmem [shape: bf16[32,128], index: 5, kind: output, shape index: {}]  }
   0x1   :  { %v310_v0 = vld [vmem:[%s403_s1 + $0x38] sm:$0xff]   ;;  %v311_v1 = vld [vmem:[%s403_s1 + $0x30] sm:$0xff]   ;;  %v312_v2 = vld [vmem:[%s403_s1 + $0x28] sm:$0xff]  }
   0x2   :  { %290 = vmatprep.subr.bf16.mxu0 %v310_v0  ;;  %v313_v3 = vld [vmem:[%s403_s1 + $0x20] sm:$0xff]   ;;  %v314_v5 = vld [vmem:[%s403_s1 + $0x18] sm:$0xff]   ;;  %v315_v6 = vld [vmem:[%s403_s1 + $0x10] sm:$0xff]  }
   0x3   :  { %291 = vmatpush3.bf16.msra.mxu0 %v310_v0  ;;  %v318_v4 = vld [vmem:[%s404_s0] sm:$0xff]   ;;  %v316_v7 = vld [vmem:[%s403_s1 + $0x8] sm:$0xff]  }
   0x4   :  { %292 = vmatprep.subr.bf16.mxu0 %v311_v1  ;;  %306 = vmatprep.mubr.bf16.mxu0 %v318_v4  ;;  %v317_v8 = vld [vmem:[%s403_s1] sm:$0xff]   ;;  %v319_v9 = vld [vmem:[%s404_s0 + $0x8] sm:$0xff]  }
   0x5   :  { %v248_v10 = vld [vmem:[%s405_s2] ss:$0 sm:$0xff] }
   0x6   :  { %v259_v49 = vld [vmem:[%s406_s3] ss:$0 sm:$0xff] }
   0x7   :  { %293 = vmatpush3.bf16.msra.mxu0 %v311_v1  ;;  %v260_v54 = vld [vmem:[%s407_s4] ss:$0 sm:$0xff] }
   0x8   :  { %294 = vmatprep.subr.bf16.mxu0 %v312_v2 }
   0xb   :  { %295 = vmatpush3.bf16.msra.mxu0 %v312_v2 }
   0xc   :  { %296 = vmatprep.subr.bf16.mxu0 %v313_v3 }
   0xf   :  { %297 = vmatpush3.bf16.msra.mxu0 %v313_v3 }
  0x10   :  { %298 = vmatprep.subr.bf16.mxu0 %v314_v5 }
  0x13   :  { %299 = vmatpush3.bf16.msra.mxu0 %v314_v5 }
  0x14   :  { %300 = vmatprep.subr.bf16.mxu0 %v315_v6 }
  0x17   :  { %301 = vmatpush3.bf16.msra.mxu0 %v315_v6 }
  0x18   :  { %302 = vmatprep.subr.bf16.mxu0 %v316_v7 }
  0x1b   :  { %303 = vmatpush3.bf16.msra.mxu0 %v316_v7 }
  0x1c   :  { %304 = vmatprep.subr.bf16.mxu0 %v317_v8 }
  0x1f   :  { %305 = vmatpush3.bf16.msra.mxu0 %v317_v8 }
  0x22   :  { %307 = vmatmul.mubr.bf16.vlgmr.msra.gmra.mxu0 %v319_v9 }
  0xe2   :  { %v308_v11 = vpop.f32.mrf.mxu0 }
  0xe3   :  { %v151_v12 = vadd.f32 %v308_v11, %v248_v10 }
  0xe4   :  { %v142_v13 = vpop.f32.mrf.mxu0 }
  0xe5   :  { %v143_v14 = vadd.f32 %v248_v10, %v142_v13  ;;  %161 = vadd.xlane.f32.xlu1 %v151_v12 }
  0xe6   :  { %v309_v15 = vpop.f32.mrf.mxu0 }
  0xe7   :  { %v154_v16 = vadd.f32 %v309_v15, %v248_v10  ;;  %157 = vadd.xlane.f32.xlu0 %v143_v14 }
  0xe8   :  { %v145_v17 = vpop.f32.mrf.mxu0 }
  0xe9   :  { %v146_v18 = vadd.f32 %v248_v10, %v145_v17  ;;  %163 = vadd.xlane.f32.xlu1 %v154_v16 }
  0xeb   :  { %159 = vadd.xlane.f32.xlu0 %v146_v18 }
 0x16e   :  { %v162_v19 = vpop.xlane.xlu1 %161 }
 0x16f   :  { %v168_v21 = vmul.f32 0.0078125, %v162_v19 }
 0x170   :  { %v158_v20 = vpop.xlane.xlu0 %157 }
 0x171   :  { %v166_v22 = vmul.f32 0.0078125, %v158_v20  ;;  %v172_v26 = vsub.f32 %v151_v12, %v168_v21 }
 0x172   :  { %v164_v23 = vpop.xlane.xlu1 %163 }
 0x173   :  { %v170_v24 = vsub.f32 %v143_v14, %v166_v22  ;;  %v169_v27 = vmul.f32 0.0078125, %v164_v23  ;;  %v176_v32 = vmul.f32 %v172_v26, %v172_v26 }
 0x174   :  { %v160_v25 = vpop.xlane.xlu0 %159 }
 0x175   :  { %v167_v28 = vmul.f32 0.0078125, %v160_v25  ;;  %v174_v29 = vmul.f32 %v170_v24, %v170_v24  ;;  %v173_v31 = vsub.f32 %v154_v16, %v169_v27 }
 0x177   :  { %v171_v30 = vsub.f32 %v146_v18, %v167_v28  ;;  %178 = vadd.xlane.f32.xlu0 %v174_v29  ;;  %v177_v34 = vmul.f32 %v173_v31, %v173_v31 }
 0x179   :  { %v175_v33 = vmul.f32 %v171_v30, %v171_v30 }
 0x17b   :  { %182 = vadd.xlane.f32.xlu0 %v176_v32  ;;  %180 = vadd.xlane.f32.xlu1 %v175_v33 }
 0x17f   :  { %184 = vadd.xlane.f32.xlu1 %v177_v34 }
 0x200   :  { %v179_v35 = vpop.xlane.xlu0 %178 }
 0x201   :  { %v186_v36 = vmul.f32 0.0078125, %v179_v35 }
 0x203   :  { %v190_v37 = vadd.f32 1e-06, %v186_v36 }
 0x204   :  { %v181_v38 = vpop.xlane.xlu1 %180  ;;  %v183_v39 = vpop.xlane.xlu0 %182 }
 0x205   :  { %320 = vrsqrt.f32 %v190_v37  ;;  %v187_v40 = vmul.f32 0.0078125, %v181_v38  ;;  %v188_v41 = vmul.f32 0.0078125, %v183_v39 }
 0x207   :  { %v191_v42 = vadd.f32 1e-06, %v187_v40  ;;  %v192_v43 = vadd.f32 1e-06, %v188_v41 }
 0x208   :  { %v185_v44 = vpop.xlane.xlu1 %184 }
 0x209   :  { %322 = vrsqrt.f32 %v191_v42  ;;  %v189_v45 = vmul.f32 0.0078125, %v185_v44 }
 0x20a   :  { %324 = vrsqrt.f32 %v192_v43 }
 0x20b   :  { %v193_v46 = vadd.f32 1e-06, %v189_v45 }
 0x20d   :  { %326 = vrsqrt.f32 %v193_v46 }
 0x212   :  { %v321_v47 = vpop.eup %320 }
 0x213   :  { %v198_v48 = vmul.f32 %v321_v47, %v170_v24 }
 0x215   :  { %v209_v52 = vmul.f32 %v259_v49, %v198_v48 }
 0x216   :  { %v323_v50 = vpop.eup %322 }
 0x217   :  { %v325_v51 = vpop.eup %324  ;;  %v199_v53 = vmul.f32 %v323_v50, %v171_v30  ;;  %v220_v58 = vadd.f32 %v260_v54, %v209_v52 }
 0x218   :  { %v200_v55 = vmul.f32 %v325_v51, %v172_v26 }
 0x219   :  { %v210_v56 = vmul.f32 %v259_v49, %v199_v53 }
 0x21a   :  { %v327_v57 = vpop.eup %326  ;;  %v211_v60 = vmul.f32 %v259_v49, %v200_v55 }
 0x21b   :  { %v221_v59 = vadd.f32 %v260_v54, %v210_v56  ;;  %v201_v61 = vmul.f32 %v327_v57, %v173_v31 }
 0x21c   :  { %v222_v0 = vadd.f32 %v260_v54, %v211_v60 }
 0x21d   :  { %v272_v62 = vpack.c.bf16 %v221_v59, %v220_v58  ;;  %v212_v63 = vmul.f32 %v259_v49, %v201_v61 }
 0x21f   :  { %273 = vst [vmem:[%s408_s5] sm:$0xff] %v272_v62   ;;  %v223_v1 = vadd.f32 %v260_v54, %v212_v63 }
 0x221   :  { %v277_v2 = vpack.c.bf16 %v223_v1, %v222_v0 }
 0x223   :  { %279 = vst [vmem:[%s408_s5 + $0x8] sm:$0xff] %v277_v2  }

// kernel: convnext_forward.3
= control target key start
LH: loop header
LB: loop body
LE: loop exit
PB: predicated region body
PF: predicated region fallthrough
CT: control target
= control target key end

     0   :  { %s4583_s0 = inlined_call_operand.vmem [shape: bf16[32,128], index: 0, kind: input, shape index: {}]   ;;  %s4584_s1 = inlined_call_operand.vmem [shape: f32[49,128], index: 1, kind: input, shape index: {}]   ;;  %s4585_s2 = inlined_call_operand.vmem [shape: f32[1,128], index: 2, kind: input, shape index: {}]   ;;  %s4586_s3 = inlined_call_operand.vmem [shape: f32[1,128], index: 3, kind: input, shape index: {}]   ;;  %s4587_s4 = inlined_call_operand.vmem [shape: f32[1,128], index: 4, kind: input, shape index: {}]   ;;  %s4588_s5 = inlined_call_operand.vmem [shape: bf16[128,512], index: 5, kind: input, shape index: {}]   ;;  %s4589_s6 = inlined_call_operand.vmem [shape: f32[1,512], index: 6, kind: input, shape index: {}]   ;;  %s4590_s7 = inlined_call_operand.vmem [shape: bf16[512,128], index: 7, kind: input, shape index: {}]   ;;  %s4591_s8 = inlined_call_operand.vmem [shape: f32[1,128], index: 8, kind: input, shape index: {}]   ;;  %s4592_s9 = inlined_call_operand.vmem [shape: f32[1,128], index: 9, kind: input, shape index: {}]   ;;  %s4593_s10 = inlined_call_operand.hbm [shape: f32[32,128], index: 10, kind: output, shape index: {}]  }
   0x1   :  { %4596 = sst [smem:[#allocation8_spill]] %s4583_s0 }
   0x2   :  { %4597 = sst [smem:[#allocation9_spill]] %s4584_s1 }
   0x3   :  { %15 = vsyncpa [#allocation5], 0 }
   0x4   :  { %17 = vsyncpa [#allocation5 + $0x1], 0  ;;  %s3592_s13 = smov 0   ;;  %s3594_s14 = smov 0  }
   0x5   :  { %s3596_s15 = smov 0   ;;  %s3598_s16 = smov 0  }
   0x6 LB: > { %s3613_s17 = sadd.s32 4294967295, %s3530_s16   ;;  %s2985_s18 = sadd.s32 4294967294, %s3530_s16   ;;  %s3530_s16 = sphi %s3598_s16, %s4608_s16   ;;  %s3526_s15 = sphi %s3596_s15, %s4607_s15   ;;  %s3522_s14 = sphi %s3594_s14, %s4606_s14   ;;  %s3518_s13 = sphi %s3592_s13, %s4605_s13  }
   0x7   : > { %s3617_s19 = sadd.s32 1, %s3530_s16   ;;  %s245_s20 = sadd.s32 1, %s3526_s15 }
   0x8   : > { %s242_s21 = ssub.s32 %s3530_s16, %s3617_s19  ;;  %p255_p0 = scmp.ne.s32.totalorder %s3526_s15, %s3522_s14 }
   0x9   : > { %p243_p1 = scmp.eq.s32.totalorder %s242_s21, 0  ;;  %p256_p2 = scmp.eq.s32.totalorder %s3613_s17, 1 }
   0xa   : > { %p261_p3 = scmp.ne.s32.totalorder %s3522_s14, %s3518_s13  ;;  %p262_p4 = scmp.eq.s32.totalorder %s2985_s18, 1 }
   0xb   : > { %s3628_s22 = scalar_select %p243_p1, %s3526_s15, %s245_s20  }
   0xc   : > { %p3630_p5 = por %p256_p2, %p255_p0  ;;  %p3634_p6 = por %p262_p4, %p261_p3 }
   0xd   : > { %p2988_p7 = scmp.ge.s32.totalorder %s3530_s16, 1  ;;  %p316_p8 = scmp.lt.s32.totalorder %s3530_s16, 3 }
   0xf   : > { %p317_p9 = pnand %p2988_p7, %p316_p8 }
  0x11   : > { %320 = sbr.rel (%p317_p9) target bundleno = 988 (0x3dc), region = 60 }
  0x16   : > { %s2990_s25 = sshll.u32 %s3613_s17, 1  ;;  %v3532_v0 = vmov 0.0   ;;  %s4601_s0 = sld [smem:[#allocation8_spill]]  ;;  %v3655_v1 = vld [vmem:[%s4585_s2] ss:$0 sm:$0xff] }
  0x17   : > { %p3641_p10 = scmp.lt.s32.totalorder %s2990_s25, 3  ;;  %362 = vst [vmem:[#allocation2] sm:$0xff] %v3532_v0  ;;  %363 = vst [vmem:[#allocation2 + $0x8] sm:$0x3] %v3532_v0  ;;  %s4602_s1 = sld [smem:[#allocation9_spill]] }
  0x18   : > { %364 = vst [vmem:[#allocation2 + $0x10] sm:$0xff] %v3532_v0  ;;  %365 = vst [vmem:[#allocation2 + $0x18] sm:$0x3] %v3532_v0  ;;  %s3262_s11 = sshll.u32 %s3613_s17, 8  ;;  %s3534_s17 = smov [#allocation4]  }
  0x19   : > { %366 = vst [vmem:[#allocation2 + $0x20] sm:$0xff] %v3532_v0  ;;  %367 = vst [vmem:[#allocation2 + $0x28] sm:$0x3] %v3532_v0  ;;  %s4610_s25 = smov (!%p3641_p10, %s2990_s25), 3  ;;  %s4539_s21 = scalar_lea.hbm %s4593_s10, %s3262_s11 }
  0x1a   : > { %368 = vst [vmem:[#allocation2 + $0x30] sm:$0xff] %v3532_v0  ;;  %369 = vst [vmem:[#allocation2 + $0x38] sm:$0x3] %v3532_v0  ;;  %s2991_s27 = sshll.u32 %s4610_s25, 2 }
  0x1b   : > { %370 = vst [vmem:[#allocation2 + $0x40] sm:$0xff] %v3532_v0  ;;  %371 = vst [vmem:[#allocation2 + $0x48] sm:$0x3] %v3532_v0 }
  0x1c   : > { %372 = vst [vmem:[#allocation2 + $0x50] sm:$0xff] %v3532_v0  ;;  %373 = vst [vmem:[#allocation2 + $0x58] sm:$0x3] %v3532_v0  ;;  %s3650_s30 = scalar_lea.vmem %s4601_s0, %s2991_s27  ;;  %s351_s0 = sand.u32 1, %s3522_s14  }
  0x1d   : > { %374 = vst [vmem:[#allocation2 + $0x60] sm:$0xff] %v3532_v0  ;;  %375 = vst [vmem:[#allocation2 + $0x68] sm:$0x3] %v3532_v0  ;;  %v3660_v2 = vld [vmem:[%s4602_s1] ss:$0 sm:$0xff]  ;;  %s2989_s29 = sshll.u32 %s351_s0, 4 }
  0x1e   : > { %376 = vst [vmem:[#allocation2 + $0x70] sm:$0xff] %v3532_v0  ;;  %377 = vst [vmem:[#allocation2 + $0x78] sm:$0x3] %v3532_v0  ;;  %v3665_v3 = vld [vmem:[%s4602_s1 + $0x1] ss:$0 sm:$0xff]  ;;  %s4543_s25 = scalar_lea.sflag [#allocation5], %s351_s0 }
  0x1f   : > { %378 = vst [vmem:[#allocation2 + $0x80] sm:$0xff] %v3532_v0  ;;  %379 = vst [vmem:[#allocation2 + $0x88] sm:$0x3] %v3532_v0  ;;  %v3670_v4 = vld [vmem:[%s4602_s1 + $0x2] ss:$0 sm:$0xff]  ;;  %s3474_s27 = sshll.u32 %s3534_s17, 4  ;;  %s3475_s27 = int_to_ptr.vmem [resolvable:$false] %s3474_s27 }
  0x20   : > { %380 = vst [vmem:[#allocation2 + $0x90] sm:$0xff] %v3532_v0  ;;  %381 = vst [vmem:[#allocation2 + $0x98] sm:$0x3] %v3532_v0  ;;  %v382_v5 = vld [vmem:[%s3650_s30] ss:$4 sps:$2 sm:$0xf]  }
  0x21   : > { %v386_v6 = vld [vmem:[%s3650_s30] sm:$0xc]  ;;  %v383_v7 = vunpack.c.l.bf16 %v382_v5  ;;  %v394_v9 = vld [vmem:[%s3650_s30 + $0x4] sm:$0xc]  ;;  %v3687_v21 = vld [vmem:[%s4602_s1 + $0x4] ss:$0 sm:$0xff] }
  0x22   : > { %v387_v8 = vunpack.c.l.bf16 %v386_v6  ;;  %v406_v10 = vld [vmem:[#allocation2] sm:$0xf]  ;;  %v395_v12 = vunpack.c.l.bf16 %v394_v9  ;;  %v438_v20 = vld [vmem:[#allocation2 + $0x4] sm:$0xf]  ;;  %v463_v32 = vld [vmem:[#allocation2 + $0x10] sm:$0xf] }
  0x23   : > { %v414_v11 = vld [vmem:[#allocation2 + $0x1] sm:$0xf]  ;;  %v412_v13 = vmul.f32 %v3660_v2, %v406_v10  ;;  %385 = vst [vmem:[#allocation2 + $0x33] sm:$0xf] %v383_v7  ;;  %393 = vst [vmem:[#allocation2 + $0x4f] sm:$0xf0] %v383_v7  ;;  %v444_v27 = vmul.f32 %v3687_v21, %v438_v20 }
  0x24   : > { %v420_v14 = vmul.f32 %v3665_v3, %v414_v11  ;;  %v422_v15 = vld [vmem:[#allocation2 + $0x2] sm:$0xf]  ;;  %389 = vst [vmem:[#allocation2 + $0x3f] sm:$0xf0] %v387_v8  ;;  %397 = vst [vmem:[#allocation2 + $0x5f] sm:$0xf0] %v395_v12 }
  0x25   : > { %v430_v16 = vld [vmem:[#allocation2 + $0x3] sm:$0xf]  ;;  %v413_v18 = vadd.f32 %v3655_v1, %v412_v13  ;;  %v428_v19 = vmul.f32 %v3670_v4, %v422_v15  ;;  %v3705_v33 = vld [vmem:[%s4602_s1 + $0x7] ss:$0 sm:$0xff]  ;;  %v471_v36 = vld [vmem:[#allocation2 + $0x11] sm:$0xf] }
  0x26   : > { %v3680_v17 = vld [vmem:[%s4602_s1 + $0x3] ss:$0 sm:$0xff]  ;;  %v446_v24 = vld [vmem:[#allocation2 + $0x5] sm:$0xf]  ;;  %v469_v39 = vmul.f32 %v3705_v33, %v463_v32  ;;  %v479_v40 = vld [vmem:[#allocation2 + $0x12] sm:$0xf] }
  0x27   : > { %v421_v22 = vadd.f32 %v420_v14, %v413_v18  ;;  %v436_v23 = vmul.f32 %v3680_v17, %v430_v16  ;;  %v3693_v25 = vld [vmem:[%s4602_s1 + $0x5] ss:$0 sm:$0xff]  ;;  %v454_v28 = vld [vmem:[#allocation2 + $0x6] sm:$0xf]  ;;  %v487_v44 = vld [vmem:[#allocation2 + $0x13] sm:$0xf] }
  0x28   : > { %v3699_v29 = vld [vmem:[%s4602_s1 + $0x6] ss:$0 sm:$0xff]  ;;  %v452_v31 = vmul.f32 %v3693_v25, %v446_v24  ;;  %v3711_v37 = vld [vmem:[%s4602_s1 + $0x8] ss:$0 sm:$0xff]  ;;  %v3717_v41 = vld [vmem:[%s4602_s1 + $0x9] ss:$0 sm:$0xff] }
  0x29   : > { %v429_v26 = vadd.f32 %v428_v19, %v421_v22  ;;  %v460_v35 = vmul.f32 %v3699_v29, %v454_v28  ;;  %v477_v43 = vmul.f32 %v3711_v37, %v471_v36  ;;  %v3723_v45 = vld [vmem:[%s4602_s1 + $0xa] ss:$0 sm:$0xff]  ;;  %v485_v47 = vmul.f32 %v3717_v41, %v479_v40  ;;  %v495_v48 = vld [vmem:[#allocation2 + $0x14] sm:$0xf]  ;;  %v3729_v49 = vld [vmem:[%s4602_s1 + $0xb] ss:$0 sm:$0xff] }
  0x2a   : > { %v493_v51 = vmul.f32 %v3723_v45, %v487_v44  ;;  %v503_v52 = vld [vmem:[#allocation2 + $0x15] sm:$0xf]  ;;  %v3735_v53 = vld [vmem:[%s4602_s1 + $0xc] ss:$0 sm:$0xff]  ;;  %v501_v55 = vmul.f32 %v3729_v49, %v495_v48  ;;  %v3741_v57 = vld [vmem:[%s4602_s1 + $0xd] ss:$0 sm:$0xff] }
  0x2b   : > { %v437_v30 = vadd.f32 %v436_v23, %v429_v26  ;;  %v511_v56 = vld [vmem:[#allocation2 + $0x16] sm:$0xf]  ;;  %v509_v59 = vmul.f32 %v3735_v53, %v503_v52  ;;  %v520_v60 = vld [vmem:[#allocation2 + $0x20] sm:$0xf]  ;;  %v3747_v61 = vld [vmem:[%s4602_s1 + $0xe] ss:$0 sm:$0xff] }
  0x2c   : > { %v517_v63 = vmul.f32 %v3741_v57, %v511_v56  ;;  %v528_v0 = vld [vmem:[#allocation2 + $0x21] sm:$0xf]  ;;  %v3753_v5 = vld [vmem:[%s4602_s1 + $0xf] ss:$0 sm:$0xff]  ;;  %v526_v7 = vmul.f32 %v3747_v61, %v520_v60  ;;  %v801_v9 = vld [vmem:[#allocation2 + $0x10] sm:$0xf] }
  0x2d   : > { %v445_v34 = vadd.f32 %v444_v27, %v437_v30  ;;  %v536_v8 = vld [vmem:[#allocation2 + $0x22] sm:$0xf]  ;;  %v3759_v10 = vld [vmem:[%s4602_s1 + $0x10] ss:$0 sm:$0xff]  ;;  %v807_v11 = vmul.f32 %v3660_v2, %v801_v9  ;;  %v809_v12 = vld [vmem:[#allocation2 + $0x11] sm:$0xf]  ;;  %v534_v15 = vmul.f32 %v3753_v5, %v528_v0 }
  0x2e   : > { %v817_v13 = vld [vmem:[#allocation2 + $0x12] sm:$0xf]  ;;  %v815_v16 = vmul.f32 %v3665_v3, %v809_v12  ;;  %v544_v19 = vld [vmem:[#allocation2 + $0x23] sm:$0xf]  ;;  %v3767_v20 = vld [vmem:[%s4602_s1 + $0x11] ss:$0 sm:$0xff]  ;;  %v542_v26 = vmul.f32 %v3759_v10, %v536_v8 }
  0x2f   : > { %v453_v38 = vadd.f32 %v452_v31, %v445_v34  ;;  %v825_v18 = vld [vmem:[#allocation2 + $0x13] sm:$0xf]  ;;  %v808_v22 = vadd.f32 %v3655_v1, %v807_v11  ;;  %v823_v23 = vmul.f32 %v3670_v4, %v817_v13  ;;  %v552_v28 = vld [vmem:[#allocation2 + $0x24] sm:$0xf]  ;;  %v3775_v30 = vld [vmem:[%s4602_s1 + $0x12] ss:$0 sm:$0xff] }
  0x30   : > { %v833_v27 = vld [vmem:[#allocation2 + $0x14] sm:$0xf]  ;;  %v831_v32 = vmul.f32 %v3680_v17, %v825_v18  ;;  %v558_v44 = vmul.f32 %v3775_v30, %v552_v28  ;;  %v576_v56 = vld [vmem:[#allocation2 + $0x30] sm:$0xf]  ;;  %v865_v0 = vld [vmem:[#allocation2 + $0x21] sm:$0xf] }
  0x31   : > { %v461_v42 = vadd.f32 %v460_v35, %v453_v38  ;;  %v816_v31 = vadd.f32 %v815_v16, %v808_v22  ;;  %v550_v35 = vmul.f32 %v3767_v20, %v544_v19  ;;  %v841_v36 = vld [vmem:[#allocation2 + $0x15] sm:$0xf]  ;;  %v560_v38 = vld [vmem:[#allocation2 + $0x25] sm:$0xf]  ;;  %v3789_v48 = vld [vmem:[%s4602_s1 + $0x14] ss:$0 sm:$0xff]  ;;  %v871_v18 = vmul.f32 %v3711_v37, %v865_v0 }
  0x32   : > { %v873_v13 = vld [vmem:[#allocation2 + $0x22] sm:$0xf] }
  0x33   : > { %v470_v46 = vadd.f32 %v469_v39, %v461_v42  ;;  %v3782_v39 = vld [vmem:[%s4602_s1 + $0x13] ss:$0 sm:$0xff]  ;;  %v824_v40 = vadd.f32 %v823_v23, %v816_v31  ;;  %v839_v42 = vmul.f32 %v3687_v21, %v833_v27  ;;  %v879_v28 = vmul.f32 %v3717_v41, %v873_v13  ;;  %v1195_v31 = vld [vmem:[#allocation2 + $0x20] sm:$0xf] }
  0x34   : > { %v600_v23 = vld [vmem:[#allocation2 + $0x33] sm:$0xf] }
  0x35   : > { %v478_v50 = vadd.f32 %v477_v43, %v470_v46  ;;  %v849_v46 = vld [vmem:[#allocation2 + $0x16] sm:$0xf] }
  0x36   : > { %v855_v60 = vmul.f32 %v3699_v29, %v849_v46 }
  0x37   : > { %v486_v54 = vadd.f32 %v485_v47, %v478_v50  ;;  %v568_v47 = vld [vmem:[#allocation2 + $0x26] sm:$0xf]  ;;  %v832_v50 = vadd.f32 %v831_v32, %v824_v40  ;;  %v1589_v32 = vld [vmem:[#allocation2 + $0x30] sm:$0xf] }
  0x38   : > { %v889_v40 = vld [vmem:[#allocation2 + $0x24] sm:$0xf] }
  0x39   : > { %v494_v58 = vadd.f32 %v493_v51, %v486_v54  ;;  %v847_v51 = vmul.f32 %v3693_v25, %v841_v36  ;;  %v566_v54 = vmul.f32 %v3782_v39, %v560_v38  ;;  %v608_v36 = vld [vmem:[#allocation2 + $0x34] sm:$0xf]  ;;  %v3824_v38 = vld [vmem:[%s4602_s1 + $0x19] ss:$0 sm:$0xff] }
  0x3b   : > { %v502_v62 = vadd.f32 %v501_v55, %v494_v58  ;;  %v857_v55 = vld [vmem:[#allocation2 + $0x20] sm:$0xf]  ;;  %v3796_v58 = vld [vmem:[%s4602_s1 + $0x15] ss:$0 sm:$0xff] }
  0x3c   : > { %v863_v9 = vmul.f32 %v3705_v33, %v857_v55  ;;  %v582_v12 = vmul.f32 %v3796_v58, %v576_v56  ;;  %v1203_v55 = vld [vmem:[#allocation2 + $0x21] sm:$0xf] }
  0x3d   : > { %v510_v6 = vadd.f32 %v509_v59, %v502_v62  ;;  %v840_v59 = vadd.f32 %v839_v42, %v832_v50  ;;  %v1201_v42 = vmul.f32 %v3660_v2, %v1195_v31  ;;  %v1211_v56 = vld [vmem:[#allocation2 + $0x22] sm:$0xf]  ;;  %v1209_v0 = vmul.f32 %v3665_v3, %v1203_v55 }
  0x3e   : > { %v1217_v13 = vmul.f32 %v3670_v4, %v1211_v56  ;;  %v1235_v31 = vld [vmem:[#allocation2 + $0x25] sm:$0xf] }
  0x3f   : > { %v518_v14 = vadd.f32 %v517_v63, %v510_v6  ;;  %v574_v63 = vmul.f32 %v3789_v48, %v568_v47  ;;  %v584_v6 = vld [vmem:[#allocation2 + $0x31] sm:$0xf]  ;;  %v848_v8 = vadd.f32 %v847_v51, %v840_v59  ;;  %v614_v59 = vmul.f32 %v3824_v38, %v608_v36 }
  0x40   : > { %v1597_v47 = vld [vmem:[#allocation2 + $0x31] sm:$0xf] }
  0x41   : > { %v527_v24 = vadd.f32 %v526_v7, %v518_v14  ;;  %v3803_v7 = vld [vmem:[%s4602_s1 + $0x16] ss:$0 sm:$0xff]  ;;  %v592_v14 = vld [vmem:[#allocation2 + $0x32] sm:$0xf]  ;;  %v856_v16 = vadd.f32 %v855_v60, %v848_v8 }
  0x42   : > { %v590_v22 = vmul.f32 %v3803_v7, %v584_v6  ;;  %v616_v60 = vld [vmem:[#allocation2 + $0x35] sm:$0xf]  ;;  %v1219_v6 = vld [vmem:[#allocation2 + $0x23] sm:$0xf] }
  0x43   : > { %v535_v34 = vadd.f32 %v534_v15, %v527_v24  ;;  %v3810_v15 = vld [vmem:[%s4602_s1 + $0x17] ss:$0 sm:$0xff]  ;;  %v881_v24 = vld [vmem:[#allocation2 + $0x23] sm:$0xf]  ;;  %v864_v27 = vadd.f32 %v863_v9, %v856_v16 }
  0x44   : > { %v887_v46 = vmul.f32 %v3723_v45, %v881_v24  ;;  %v905_v9 = vld [vmem:[#allocation2 + $0x26] sm:$0xf]  ;;  %v624_v16 = vld [vmem:[#allocation2 + $0x36] sm:$0xf] }
  0x45   : > { %v543_v43 = vadd.f32 %v542_v26, %v535_v34  ;;  %v3817_v26 = vld [vmem:[%s4602_s1 + $0x18] ss:$0 sm:$0xff]  ;;  %v911_v36 = vmul.f32 %v3741_v57, %v905_v9  ;;  %v3870_v9 = vld [vmem:[%s4602_s1 + $0x1e] ss:$0 sm:$0xff] }
  0x46   : > { %v606_v51 = vmul.f32 %v3817_v26, %v600_v23  ;;  %v1605_v23 = vld [vmem:[#allocation2 + $0x32] sm:$0xf] }
  0x47   : > { %v551_v52 = vadd.f32 %v550_v35, %v543_v43  ;;  %v598_v35 = vmul.f32 %v3810_v15, %v592_v14  ;;  %v1595_v43 = vmul.f32 %v3660_v2, %v1589_v32  ;;  %v1227_v14 = vld [vmem:[#allocation2 + $0x24] sm:$0xf]  ;;  %v632_v32 = vld [vmem:[#allocation2 + $0x40] sm:$0xf] }
  0x49   : > { %v559_v62 = vadd.f32 %v558_v44, %v551_v52  ;;  %v872_v44 = vadd.f32 %v871_v18, %v864_v27  ;;  %v897_v52 = vld [vmem:[#allocation2 + $0x25] sm:$0xf]  ;;  %v3845_v18 = vld [vmem:[%s4602_s1 + $0x1b] ss:$0 sm:$0xff]  ;;  %v1225_v27 = vmul.f32 %v3680_v17, %v1219_v6  ;;  %v929_v6 = vld [vmem:[#allocation2 + $0x32] sm:$0xf] }
  0x4b   : > { %v567_v11 = vadd.f32 %v566_v54, %v559_v62  ;;  %v1202_v54 = vadd.f32 %v3655_v1, %v1201_v42  ;;  %v3835_v62 = vld [vmem:[%s4602_s1 + $0x1a] ss:$0 sm:$0xff]  ;;  %v880_v2 = vadd.f32 %v879_v28, %v872_v44  ;;  %v1233_v42 = vmul.f32 %v3687_v21, %v1227_v14 }
  0x4c   : > { %v630_v44 = vmul.f32 %v3845_v18, %v624_v16 }
  0x4d   : > { %v575_v19 = vadd.f32 %v574_v63, %v567_v11  ;;  %v895_v63 = vmul.f32 %v3729_v49, %v889_v40  ;;  %v1596_v11 = vadd.f32 %v3655_v1, %v1595_v43  ;;  %v1210_v24 = vadd.f32 %v1209_v0, %v1202_v54  ;;  %v3862_v54 = vld [vmem:[%s4602_s1 + $0x1d] ss:$0 sm:$0xff] }
  0x4e   : > { %v622_v1 = vmul.f32 %v3835_v62, %v616_v60  ;;  %v1613_v60 = vld [vmem:[#allocation2 + $0x33] sm:$0xf] }
  0x4f   : > { %v583_v34 = vadd.f32 %v582_v12, %v575_v19  ;;  %v1603_v12 = vmul.f32 %v3665_v3, %v1597_v47  ;;  %v888_v19 = vadd.f32 %v887_v46, %v880_v2  ;;  %v913_v3 = vld [vmem:[#allocation2 + $0x30] sm:$0xf]  ;;  %v1218_v40 = vadd.f32 %v1217_v13, %v1210_v24 }
  0x50   : > { %v921_v46 = vld [vmem:[#allocation2 + $0x31] sm:$0xf]  ;;  %v919_v56 = vmul.f32 %v3747_v61, %v913_v3  ;;  %v1619_v24 = vmul.f32 %v3680_v17, %v1613_v60  ;;  %v664_v17 = vld [vmem:[#allocation2 + $0x44] sm:$0xf] }
  0x51   : > { %v591_v50 = vadd.f32 %v590_v22, %v583_v34  ;;  %v903_v22 = vmul.f32 %v3735_v53, %v897_v52  ;;  %v3853_v34 = vld [vmem:[%s4602_s1 + $0x1c] ss:$0 sm:$0xff]  ;;  %v1604_v47 = vadd.f32 %v1603_v12, %v1596_v11  ;;  %v640_v52 = vld [vmem:[#allocation2 + $0x41] sm:$0xf]  ;;  %v1226_v2 = vadd.f32 %v1225_v27, %v1218_v40  ;;  %v1259_v27 = vld [vmem:[#allocation2 + $0x31] sm:$0xf] }
  0x52   : > { %v638_v0 = vmul.f32 %v3853_v34, %v632_v32  ;;  %v927_v12 = vmul.f32 %v3753_v5, %v921_v46  ;;  %v1621_v32 = vld [vmem:[#allocation2 + $0x34] sm:$0xf]  ;;  %v3887_v46 = vld [vmem:[%s4602_s1 + $0x20] ss:$0 sm:$0xff] }
  0x53   : > { %v599_v8 = vadd.f32 %v598_v35, %v591_v50  ;;  %v896_v35 = vadd.f32 %v895_v63, %v888_v19  ;;  %v1611_v50 = vmul.f32 %v3670_v4, %v1605_v23  ;;  %v648_v4 = vld [vmem:[#allocation2 + $0x42] sm:$0xf]  ;;  %v1234_v13 = vadd.f32 %v1233_v42, %v1226_v2 }
  0x54   : > { %v646_v19 = vmul.f32 %v3862_v54, %v640_v52  ;;  %v654_v42 = vmul.f32 %v3870_v9, %v648_v4  ;;  %v1265_v52 = vmul.f32 %v3711_v37, %v1259_v27  ;;  %v1627_v2 = vmul.f32 %v3687_v21, %v1621_v32  ;;  %v1629_v4 = vld [vmem:[#allocation2 + $0x35] sm:$0xf]  ;;  %v3912_v32 = vld [vmem:[%s4602_s1 + $0x23] ss:$0 sm:$0xff] }
  0x55   : > { %v607_v28 = vadd.f32 %v606_v51, %v599_v8  ;;  %v1243_v51 = vld [vmem:[#allocation2 + $0x26] sm:$0xf]  ;;  %v904_v55 = vadd.f32 %v903_v22, %v896_v35  ;;  %v1251_v8 = vld [vmem:[#allocation2 + $0x30] sm:$0xf]  ;;  %v1612_v23 = vadd.f32 %v1611_v50, %v1604_v47  ;;  %v1283_v21 = vld [vmem:[#allocation2 + $0x34] sm:$0xf] }
  0x56   : > { %v1249_v14 = vmul.f32 %v3699_v29, %v1243_v51  ;;  %v937_v22 = vld [vmem:[#allocation2 + $0x33] sm:$0xf] }
  0x57   : > { %v615_v43 = vadd.f32 %v614_v59, %v607_v28  ;;  %v1241_v59 = vmul.f32 %v3693_v25, %v1235_v31  ;;  %v912_v11 = vadd.f32 %v911_v36, %v904_v55  ;;  %v656_v28 = vld [vmem:[#allocation2 + $0x43] sm:$0xf]  ;;  %v935_v31 = vmul.f32 %v3759_v10, %v929_v6  ;;  %v1637_v27 = vld [vmem:[#allocation2 + $0x36] sm:$0xf] }
  0x58   : > { %v1257_v36 = vmul.f32 %v3705_v33, %v1251_v8  ;;  %v943_v50 = vmul.f32 %v3767_v20, %v937_v22  ;;  %v1620_v60 = vadd.f32 %v1619_v24, %v1612_v23  ;;  %v688_v22 = vld [vmem:[#allocation2 + $0x50] sm:$0xf] }
  0x59   : > { %v623_v63 = vadd.f32 %v622_v1, %v615_v43  ;;  %v3879_v1 = vld [vmem:[%s4602_s1 + $0x1f] ss:$0 sm:$0xff]  ;;  %v920_v3 = vadd.f32 %v919_v56, %v912_v11  ;;  %v1242_v35 = vadd.f32 %v1241_v59, %v1234_v13  ;;  %v945_v43 = vld [vmem:[#allocation2 + $0x34] sm:$0xf]  ;;  %v670_v13 = vmul.f32 %v3887_v46, %v664_v17 }
  0x5a   : > { %v662_v33 = vmul.f32 %v3879_v1, %v656_v28  ;;  %v953_v56 = vld [vmem:[#allocation2 + $0x35] sm:$0xf]  ;;  %v951_v8 = vmul.f32 %v3775_v30, %v945_v43  ;;  %v696_v43 = vld [vmem:[#allocation2 + $0x51] sm:$0xf] }
  0x5b   : > { %v631_v16 = vadd.f32 %v630_v44, %v623_v63  ;;  %v1267_v44 = vld [vmem:[#allocation2 + $0x32] sm:$0xf]  ;;  %v928_v47 = vadd.f32 %v927_v12, %v920_v3  ;;  %v1250_v51 = vadd.f32 %v1249_v14, %v1242_v35  ;;  %v672_v63 = vld [vmem:[#allocation2 + $0x45] sm:$0xf]  ;;  %v959_v24 = vmul.f32 %v3782_v39, %v953_v56  ;;  %v969_v35 = vld [vmem:[#allocation2 + $0x40] sm:$0xf] }
  0x5c   : > { %v1275_v59 = vld [vmem:[#allocation2 + $0x33] sm:$0xf]  ;;  %v1273_v37 = vmul.f32 %v3717_v41, %v1267_v44  ;;  %v680_v14 = vld [vmem:[#allocation2 + $0x46] sm:$0xf]  ;;  %v1643_v56 = vmul.f32 %v3699_v29, %v1637_v27  ;;  %v3936_v29 = vld [vmem:[%s4602_s1 + $0x25] ss:$0 sm:$0xff] }
  0x5d   : > { %v639_v40 = vadd.f32 %v638_v0, %v631_v16  ;;  %v3896_v0 = vld [vmem:[%s4602_s1 + $0x21] ss:$0 sm:$0xff]  ;;  %v936_v6 = vadd.f32 %v935_v31, %v928_v47  ;;  %v1258_v11 = vadd.f32 %v1257_v36, %v1250_v51  ;;  %v961_v16 = vld [vmem:[#allocation2 + $0x36] sm:$0xf]  ;;  %v1281_v3 = vmul.f32 %v3723_v45, %v1275_v59  ;;  %v3147_v51 = vld [vmem:[%s4602_s1 + $0x7] ss:$0 sm:$0xff] }
  0x5e   : > { %v678_v31 = vmul.f32 %v3896_v0, %v672_v63  ;;  %v1628_v36 = vadd.f32 %v1627_v2, %v1620_v60  ;;  %v967_v17 = vmul.f32 %v3789_v48, %v961_v16  ;;  %v1645_v47 = vld [vmem:[#allocation2 + $0x40] sm:$0xf]  ;;  %v1289_v45 = vmul.f32 %v3729_v49, %v1283_v21  ;;  %v1299_v60 = vld [vmem:[#allocation2 + $0x36] sm:$0xf]  ;;  %v704_v2 = vld [vmem:[#allocation2 + $0x52] sm:$0xf] }
  0x5f   : > { %v647_v55 = vadd.f32 %v646_v19, %v639_v40  ;;  %v3904_v19 = vld [vmem:[%s4602_s1 + $0x22] ss:$0 sm:$0xff]  ;;  %v944_v23 = vadd.f32 %v943_v50, %v936_v6  ;;  %v1266_v28 = vadd.f32 %v1265_v52, %v1258_v11  ;;  %v1635_v40 = vmul.f32 %v3693_v25, %v1629_v4  ;;  %v3924_v25 = vld [vmem:[%s4602_s1 + $0x24] ss:$0 sm:$0xff]  ;;  %v3148_v4 = vld [vmem:[%s4602_s1 + $0x8] ss:$0 sm:$0xff] }
  0x60   : > { %v975_v49 = vmul.f32 %v3796_v58, %v969_v35  ;;  %v1651_v16 = vmul.f32 %v3147_v51, %v1645_v47  ;;  %v712_v21 = vld [vmem:[#allocation2 + $0x53] sm:$0xf]  ;;  %v1305_v27 = vmul.f32 %v3741_v57, %v1299_v60  ;;  %v993_v35 = vld [vmem:[#allocation2 + $0x43] sm:$0xf] }
  0x61   : > { %v655_v12 = vadd.f32 %v654_v42, %v647_v55  ;;  %v1291_v42 = vld [vmem:[#allocation2 + $0x35] sm:$0xf]  ;;  %v952_v44 = vadd.f32 %v951_v8, %v944_v23  ;;  %v1274_v50 = vadd.f32 %v1273_v37, %v1266_v28  ;;  %v686_v55 = vmul.f32 %v3904_v19, %v680_v14  ;;  %v1653_v8 = vld [vmem:[#allocation2 + $0x41] sm:$0xf] }
  0x62   : > { %v1297_v6 = vmul.f32 %v3735_v53, %v1291_v42  ;;  %v694_v37 = vmul.f32 %v3912_v32, %v688_v22  ;;  %v1636_v14 = vadd.f32 %v1635_v40, %v1628_v36  ;;  %v1661_v28 = vld [vmem:[#allocation2 + $0x42] sm:$0xf]  ;;  %v3149_v22 = vld [vmem:[%s4602_s1 + $0x9] ss:$0 sm:$0xff]  ;;  %v1659_v42 = vmul.f32 %v3148_v4, %v1653_v8 }
  0x63   : > { %v663_v41 = vadd.f32 %v662_v33, %v655_v12  ;;  %v977_v33 = vld [vmem:[#allocation2 + $0x41] sm:$0xf]  ;;  %v960_v59 = vadd.f32 %v959_v24, %v952_v44  ;;  %v1282_v63 = vadd.f32 %v1281_v3, %v1274_v50  ;;  %v720_v44 = vld [vmem:[#allocation2 + $0x54] sm:$0xf] }
  0x64   : > { %v985_v12 = vld [vmem:[#allocation2 + $0x42] sm:$0xf]  ;;  %v983_v53 = vmul.f32 %v3803_v7, %v977_v33  ;;  %v1644_v40 = vadd.f32 %v1643_v56, %v1636_v14 }
  0x65   : > { %v671_v52 = vadd.f32 %v670_v13, %v663_v41  ;;  %v1307_v13 = vld [vmem:[#allocation2 + $0x40] sm:$0xf]  ;;  %v968_v23 = vadd.f32 %v967_v17, %v960_v59  ;;  %v1290_v24 = vadd.f32 %v1289_v45, %v1282_v63  ;;  %v702_v41 = vmul.f32 %v3924_v25, %v696_v43  ;;  %v3150_v43 = vld [vmem:[%s4602_s1 + $0xa] ss:$0 sm:$0xff]  ;;  %v1001_v33 = vld [vmem:[#allocation2 + $0x44] sm:$0xf] }
  0x66   : > { %v1315_v36 = vld [vmem:[#allocation2 + $0x41] sm:$0xf]  ;;  %v991_v57 = vmul.f32 %v3810_v15, %v985_v12  ;;  %v1313_v50 = vmul.f32 %v3747_v61, %v1307_v13  ;;  %v1652_v60 = vadd.f32 %v1651_v16, %v1644_v40  ;;  %v1667_v59 = vmul.f32 %v3149_v22, %v1661_v28  ;;  %v3969_v12 = vld [vmem:[%s4602_s1 + $0x28] ss:$0 sm:$0xff] }
  0x67   : > { %v679_v11 = vadd.f32 %v678_v31, %v671_v52  ;;  %v3947_v31 = vld [vmem:[%s4602_s1 + $0x26] ss:$0 sm:$0xff]  ;;  %v976_v17 = vadd.f32 %v975_v49, %v968_v23  ;;  %v1298_v47 = vadd.f32 %v1297_v6, %v1290_v24  ;;  %v710_v52 = vmul.f32 %v3936_v29, %v704_v2  ;;  %v1323_v56 = vld [vmem:[#allocation2 + $0x42] sm:$0xf]  ;;  %v728_v49 = vld [vmem:[#allocation2 + $0x55] sm:$0xf] }
  0x68   : > { %v1669_v45 = vld [vmem:[#allocation2 + $0x43] sm:$0xf]  ;;  %v999_v61 = vmul.f32 %v3817_v26, %v993_v35  ;;  %v1321_v8 = vmul.f32 %v3753_v5, %v1315_v36  ;;  %v3151_v2 = vld [vmem:[%s4602_s1 + $0xb] ss:$0 sm:$0xff]  ;;  %v1660_v16 = vadd.f32 %v1659_v42, %v1652_v60  ;;  %v1007_v5 = vmul.f32 %v3824_v38, %v1001_v33  ;;  %v3980_v35 = vld [vmem:[%s4602_s1 + $0x29] ss:$0 sm:$0xff] }
  0x69   : > { %v687_v3 = vadd.f32 %v686_v55, %v679_v11  ;;  %v3958_v55 = vld [vmem:[%s4602_s1 + $0x27] ss:$0 sm:$0xff]  ;;  %v984_v63 = vadd.f32 %v983_v53, %v976_v17  ;;  %v1306_v6 = vadd.f32 %v1305_v27, %v1298_v47  ;;  %v1331_v14 = vld [vmem:[#allocation2 + $0x43] sm:$0xf]  ;;  %v1675_v23 = vmul.f32 %v3150_v43, %v1669_v45  ;;  %v736_v53 = vld [vmem:[#allocation2 + $0x56] sm:$0xf] }
  0x6a   : > { %v1677_v4 = vld [vmem:[#allocation2 + $0x44] sm:$0xf]  ;;  %v1329_v28 = vmul.f32 %v3759_v10, %v1323_v56  ;;  %v1668_v42 = vadd.f32 %v1667_v59, %v1660_v16  ;;  %v1337_v45 = vmul.f32 %v3767_v20, %v1331_v14  ;;  %v3991_v33 = vld [vmem:[%s4602_s1 + $0x2a] ss:$0 sm:$0xff]  ;;  %v1025_v56 = vld [vmem:[#allocation2 + $0x50] sm:$0xf] }
  0x6b   : > { %v695_v51 = vadd.f32 %v694_v37, %v687_v3  ;;  %v718_v37 = vmul.f32 %v3947_v31, %v712_v21  ;;  %v1009_v13 = vld [vmem:[#allocation2 + $0x45] sm:$0xf]  ;;  %v992_v24 = vadd.f32 %v991_v57, %v984_v63  ;;  %v1314_v27 = vadd.f32 %v1313_v50, %v1306_v6  ;;  %v3152_v21 = vld [vmem:[%s4602_s1 + $0xc] ss:$0 sm:$0xff]  ;;  %v744_v57 = vld [vmem:[#allocation2 + $0x60] sm:$0xf] }
  0x6c   : > { %v1685_v22 = vld [vmem:[#allocation2 + $0x45] sm:$0xf]  ;;  %v1683_v17 = vmul.f32 %v3151_v2, %v1677_v4  ;;  %v1015_v10 = vmul.f32 %v3835_v62, %v1009_v13  ;;  %v1676_v59 = vadd.f32 %v1675_v23, %v1668_v42  ;;  %v1701_v2 = vld [vmem:[#allocation2 + $0x50] sm:$0xf]  ;;  %v4002_v13 = vld [vmem:[%s4602_s1 + $0x2b] ss:$0 sm:$0xff] }
  0x6d   : > { %v703_v11 = vadd.f32 %v702_v41, %v695_v51  ;;  %v726_v41 = vmul.f32 %v3958_v55, %v720_v44  ;;  %v1017_v36 = vld [vmem:[#allocation2 + $0x46] sm:$0xf]  ;;  %v1000_v47 = vadd.f32 %v999_v61, %v992_v24  ;;  %v1322_v50 = vadd.f32 %v1321_v8, %v1314_v27  ;;  %v3153_v44 = vld [vmem:[%s4602_s1 + $0xd] ss:$0 sm:$0xff]  ;;  %v752_v61 = vld [vmem:[#allocation2 + $0x61] sm:$0xf] }
  0x6e   : > { %v1339_v40 = vld [vmem:[#allocation2 + $0x44] sm:$0xf]  ;;  %v1691_v63 = vmul.f32 %v3152_v21, %v1685_v22  ;;  %v1023_v20 = vmul.f32 %v3845_v18, %v1017_v36  ;;  %v1033_v14 = vld [vmem:[#allocation2 + $0x51] sm:$0xf]  ;;  %v1684_v23 = vadd.f32 %v1683_v17, %v1676_v59  ;;  %v4013_v36 = vld [vmem:[%s4602_s1 + $0x2c] ss:$0 sm:$0xff] }
  0x6f   : > { %v711_v3 = vadd.f32 %v710_v52, %v703_v11  ;;  %v1693_v43 = vld [vmem:[#allocation2 + $0x46] sm:$0xf]  ;;  %v734_v52 = vmul.f32 %v3969_v12, %v728_v49  ;;  %v1008_v6 = vadd.f32 %v1007_v5, %v1000_v47  ;;  %v1330_v8 = vadd.f32 %v1329_v28, %v1322_v50  ;;  %v3154_v49 = vld [vmem:[%s4602_s1 + $0xe] ss:$0 sm:$0xff]  ;;  %v760_v5 = vld [vmem:[#allocation2 + $0x62] sm:$0xf] }
  0x70   : > { %v1347_v60 = vld [vmem:[#allocation2 + $0x45] sm:$0xf]  ;;  %v1345_v4 = vmul.f32 %v3775_v30, %v1339_v40  ;;  %v1699_v24 = vmul.f32 %v3153_v44, %v1693_v43  ;;  %v1031_v30 = vmul.f32 %v3853_v34, %v1025_v56  ;;  %v1709_v21 = vld [vmem:[#allocation2 + $0x51] sm:$0xf]  ;;  %v1692_v17 = vadd.f32 %v1691_v63, %v1684_v23  ;;  %v4024_v56 = vld [vmem:[%s4602_s1 + $0x2d] ss:$0 sm:$0xff] }
  0x71   : > { %v719_v51 = vadd.f32 %v718_v37, %v711_v3  ;;  %v742_v37 = vmul.f32 %v3980_v35, %v736_v53  ;;  %v1355_v16 = vld [vmem:[#allocation2 + $0x46] sm:$0xf]  ;;  %v1016_v27 = vadd.f32 %v1015_v10, %v1008_v6  ;;  %v1338_v28 = vadd.f32 %v1337_v45, %v1330_v8  ;;  %v3155_v53 = vld [vmem:[%s4602_s1 + $0xf] ss:$0 sm:$0xff]  ;;  %v1041_v40 = vld [vmem:[#allocation2 + $0x52] sm:$0xf] }
  0x72   : > { %v1353_v22 = vmul.f32 %v3782_v39, %v1347_v60  ;;  %v1363_v42 = vld [vmem:[#allocation2 + $0x50] sm:$0xf]  ;;  %v1707_v47 = vmul.f32 %v3154_v49, %v1701_v2  ;;  %v768_v10 = vld [vmem:[#allocation2 + $0x63] sm:$0xf]  ;;  %v1039_v39 = vmul.f32 %v3862_v54, %v1033_v14  ;;  %v1361_v43 = vmul.f32 %v3789_v48, %v1355_v16  ;;  %v4029_v48 = vld [vmem:[%s4602_s1 + $0x2e] ss:$0 sm:$0xff] }
  0x73   : > { %v727_v11 = vadd.f32 %v726_v41, %v719_v51  ;;  %v750_v41 = vmul.f32 %v3991_v33, %v744_v57  ;;  %v1024_v50 = vadd.f32 %v1023_v20, %v1016_v27  ;;  %v1346_v45 = vadd.f32 %v1345_v4, %v1338_v28  ;;  %v1717_v44 = vld [vmem:[#allocation2 + $0x52] sm:$0xf]  ;;  %v3156_v57 = vld [vmem:[%s4602_s1 + $0x10] ss:$0 sm:$0xff]  ;;  %v776_v20 = vld [vmem:[#allocation2 + $0x64] sm:$0xf] }
  0x74   : > { %v1049_v60 = vld [vmem:[#allocation2 + $0x53] sm:$0xf]  ;;  %v1700_v63 = vadd.f32 %v1699_v24, %v1692_v17  ;;  %v1715_v6 = vmul.f32 %v3155_v53, %v1709_v21  ;;  %4603 = vst [vmem:[#allocation7_spill] sm:$0xff] %v4029_v48  ;;  %v1047_v4 = vmul.f32 %v3870_v9, %v1041_v40  ;;  %v766_v14 = vmul.f32 %v4013_v36, %v760_v5  ;;  %v784_v21 = vld [vmem:[#allocation2 + $0x65] sm:$0xf] }
  0x75   : > { %v735_v3 = vadd.f32 %v734_v52, %v727_v11  ;;  %v758_v52 = vmul.f32 %v4002_v13, %v752_v61  ;;  %v1371_v59 = vld [vmem:[#allocation2 + $0x51] sm:$0xf]  ;;  %v1032_v8 = vadd.f32 %v1031_v30, %v1024_v50  ;;  %v1354_v2 = vadd.f32 %v1353_v22, %v1346_v45  ;;  %v1065_v23 = vld [vmem:[#allocation2 + $0x55] sm:$0xf]  ;;  %v4040_v30 = vld [vmem:[%s4602_s1 + $0x2f] ss:$0 sm:$0xff] }
  0x76   : > { %v1369_v61 = vmul.f32 %v3796_v58, %v1363_v42  ;;  %v1725_v49 = vld [vmem:[#allocation2 + $0x53] sm:$0xf]  ;;  %v3157_v11 = vld [vmem:[%s4602_s1 + $0x11] ss:$0 sm:$0xff]  ;;  %v1708_v27 = vadd.f32 %v1707_v47, %v1700_v63  ;;  %v1723_v28 = vmul.f32 %v3156_v57, %v1717_v44  ;;  %v1055_v22 = vmul.f32 %v3879_v1, %v1049_v60  ;;  %v3158_v5 = vld [vmem:[%s4602_s1 + $0x12] ss:$0 sm:$0xff] }
  0x77   : > { %v743_v51 = vadd.f32 %v742_v37, %v735_v3  ;;  %v1057_v16 = vld [vmem:[#allocation2 + $0x54] sm:$0xf]  ;;  %v1040_v58 = vadd.f32 %v1039_v39, %v1032_v8  ;;  %v1362_v53 = vadd.f32 %v1361_v43, %v1354_v2  ;;  %v1377_v3 = vmul.f32 %v3803_v7, %v1371_v59  ;;  %v3159_v39 = vld [vmem:[%s4602_s1 + $0x13] ss:$0 sm:$0xff]  ;;  %v792_v43 = vld [vmem:[#allocation2 + $0x66] sm:$0xf] }
  0x78   : > { %v1379_v24 = vld [vmem:[#allocation2 + $0x52] sm:$0xf]  ;;  %v774_v17 = vmul.f32 %v4024_v56, %v768_v10  ;;  %v1073_v47 = vld [vmem:[#allocation2 + $0x56] sm:$0xf]  ;;  %v1716_v45 = vadd.f32 %v1715_v6, %v1708_v27  ;;  %v1731_v44 = vmul.f32 %v3157_v11, %v1725_v49  ;;  %v4054_v7 = vld [vmem:[%s4602_s1 + $0x30] ss:$0 sm:$0xff]  ;;  %v782_v8 = vmul.f32 %v4029_v48, %v776_v20 }
  0x79   : > { %v751_v37 = vadd.f32 %v750_v41, %v743_v51  ;;  %v1387_v41 = vld [vmem:[#allocation2 + $0x53] sm:$0xf]  ;;  %v1048_v51 = vadd.f32 %v1047_v4, %v1040_v58  ;;  %v1370_v60 = vadd.f32 %v1369_v61, %v1362_v53  ;;  %v1385_v10 = vmul.f32 %v3810_v15, %v1379_v24  ;;  %v1081_v2 = vld [vmem:[#allocation2 + $0x60] sm:$0xf] }
  0x7a   : > { %v1733_v40 = vld [vmem:[#allocation2 + $0x54] sm:$0xf]  ;;  %v1724_v11 = vadd.f32 %v1723_v28, %v1716_v45  ;;  %v1071_v4 = vmul.f32 %v3896_v0, %v1065_v23  ;;  %v1393_v61 = vmul.f32 %v3817_v26, %v1387_v41  ;;  %v1089_v53 = vld [vmem:[#allocation2 + $0x61] sm:$0xf] }
  0x7b   : > { %v759_v42 = vadd.f32 %v758_v52, %v751_v37  ;;  %v1395_v50 = vld [vmem:[#allocation2 + $0x54] sm:$0xf]  ;;  %v1063_v52 = vmul.f32 %v3887_v46, %v1057_v16  ;;  %v1739_v37 = vmul.f32 %v3158_v5, %v1733_v40  ;;  %v1056_v27 = vadd.f32 %v1055_v22, %v1048_v51  ;;  %v1757_v16 = vld [vmem:[#allocation2 + $0x60] sm:$0xf] }
  0x7c   : > { %v1741_v57 = vld [vmem:[#allocation2 + $0x55] sm:$0xf]  ;;  %v3160_v63 = vld [vmem:[%s4602_s1 + $0x14] ss:$0 sm:$0xff]  ;;  %v1378_v58 = vadd.f32 %v1377_v3, %v1370_v60  ;;  %v1079_v22 = vmul.f32 %v3904_v19, %v1073_v47  ;;  %v1401_v23 = vmul.f32 %v3824_v38, %v1395_v50  ;;  %v1765_v3 = vld [vmem:[#allocation2 + $0x61] sm:$0xf]  ;;  %v798_v5 = vmul.f32 %v4054_v7, %v792_v43 }
  0x7d   : > { %v1749_v59 = vld [vmem:[#allocation2 + $0x56] sm:$0xf]  ;;  %v767_v6 = vadd.f32 %v766_v14, %v759_v42  ;;  %v3161_v15 = vld [vmem:[%s4602_s1 + $0x15] ss:$0 sm:$0xff]  ;;  %v790_v14 = vmul.f32 %v4040_v30, %v784_v21  ;;  %v1732_v42 = vadd.f32 %v1731_v44, %v1724_v11  ;;  %v1747_v48 = vmul.f32 %v3159_v39, %v1741_v57  ;;  %v1419_v21 = vld [vmem:[#allocation2 + $0x60] sm:$0xf] }
  0x7e   : > { %v1403_v49 = vld [vmem:[#allocation2 + $0x55] sm:$0xf]  ;;  %v1064_v28 = vadd.f32 %v1063_v52, %v1056_v27  ;;  %v1386_v40 = vadd.f32 %v1385_v10, %v1378_v58  ;;  %v1755_v51 = vmul.f32 %v3160_v63, %v1749_v59  ;;  %v1087_v57 = vmul.f32 %v3912_v32, %v1081_v2  ;;  %v1773_v52 = vld [vmem:[#allocation2 + $0x62] sm:$0xf] }
  0x7f   : > { %v775_v24 = vadd.f32 %v774_v17, %v767_v6  ;;  %v1411_v20 = vld [vmem:[#allocation2 + $0x56] sm:$0xf]  ;;  %v1097_v17 = vld [vmem:[#allocation2 + $0x62] sm:$0xf]  ;;  %v1740_v45 = vadd.f32 %v1739_v37, %v1732_v42  ;;  %v1409_v47 = vmul.f32 %v3835_v62, %v1403_v49  ;;  %v1763_v43 = vmul.f32 %v3161_v15, %v1757_v16 }
  0x80   : > { %v3162_v26 = vld [vmem:[%s4602_s1 + $0x16] ss:$0 sm:$0xff]  ;;  %v1072_v44 = vadd.f32 %v1071_v4, %v1064_v28  ;;  %v1394_v39 = vadd.f32 %v1393_v61, %v1386_v40  ;;  %v3163_v38 = vld [vmem:[%s4602_s1 + $0x17] ss:$0 sm:$0xff]  ;;  %v1105_v60 = vld [vmem:[#allocation2 + $0x63] sm:$0xf]  ;;  %v1095_v11 = vmul.f32 %v3924_v25, %v1089_v53  ;;  %v1417_v63 = vmul.f32 %v3845_v18, %v1411_v20 }
  0x81   : > { %v783_v41 = vadd.f32 %v782_v8, %v775_v24  ;;  %v1427_v10 = vld [vmem:[#allocation2 + $0x61] sm:$0xf]  ;;  %v1748_v6 = vadd.f32 %v1747_v48, %v1740_v45  ;;  %v3164_v62 = vld [vmem:[%s4602_s1 + $0x18] ss:$0 sm:$0xff]  ;;  %v1771_v58 = vmul.f32 %v3162_v26, %v1765_v3  ;;  %v1103_v48 = vmul.f32 %v3936_v29, %v1097_v17  ;;  %v3165_v18 = vld [vmem:[%s4602_s1 + $0x19] ss:$0 sm:$0xff] }
  0x82   : > { %v1080_v8 = vadd.f32 %v1079_v22, %v1072_v44  ;;  %v1402_v59 = vadd.f32 %v1401_v23, %v1394_v39  ;;  %v1781_v2 = vld [vmem:[#allocation2 + $0x63] sm:$0xf]  ;;  %v1425_v15 = vmul.f32 %v3853_v34, %v1419_v21  ;;  %v1779_v42 = vmul.f32 %v3163_v38, %v1773_v52  ;;  %v3166_v34 = vld [vmem:[%s4602_s1 + $0x1a] ss:$0 sm:$0xff]  ;;  %v1138_v39 = vld [vmem:[#allocation2 + $0x70] sm:$0xf] }
  0x83   : > { %v791_v50 = vadd.f32 %v790_v14, %v783_v41  ;;  %v1113_v37 = vld [vmem:[#allocation2 + $0x64] sm:$0xf]  ;;  %v1756_v4 = vadd.f32 %v1755_v51, %v1748_v6  ;;  %v1111_v22 = vmul.f32 %v3947_v31, %v1105_v60  ;;  %v1433_v23 = vmul.f32 %v3862_v54, %v1427_v10  ;;  %v3167_v54 = vld [vmem:[%s4602_s1 + $0x1b] ss:$0 sm:$0xff] }
  0x84   : > { %v1435_v27 = vld [vmem:[#allocation2 + $0x62] sm:$0xf]  ;;  %v1088_v61 = vadd.f32 %v1087_v57, %v1080_v8  ;;  %v1410_v16 = vadd.f32 %v1409_v47, %v1402_v59  ;;  %v1129_v26 = vld [vmem:[#allocation2 + $0x66] sm:$0xf]  ;;  %v1787_v17 = vmul.f32 %v3164_v62, %v1781_v2  ;;  %v1119_v45 = vmul.f32 %v3958_v55, %v1113_v37  ;;  %v1146_v8 = vld [vmem:[#allocation2 + $0x71] sm:$0xf] }
  0x85   : > { %v799_v49 = vadd.f32 %v798_v5, %v791_v50  ;;  %v1789_v24 = vld [vmem:[#allocation2 + $0x64] sm:$0xf]  ;;  %v1764_v20 = vadd.f32 %v1763_v43, %v1756_v4  ;;  %v1441_v44 = vmul.f32 %v3870_v9, %v1435_v27  ;;  %v1813_v43 = vld [vmem:[#allocation2 + $0x70] sm:$0xf]  ;;  %v3168_v9 = vld [vmem:[%s4602_s1 + $0x1c] ss:$0 sm:$0xff]  ;;  %v1135_v62 = vmul.f32 %v3980_v35, %v1129_v26 }
  0x86   : > { %v1121_v14 = vld [vmem:[#allocation2 + $0x65] sm:$0xf]  ;;  %v1096_v28 = vadd.f32 %v1095_v11, %v1088_v61  ;;  %v1418_v40 = vadd.f32 %v1417_v63, %v1410_v16  ;;  %v1795_v38 = vmul.f32 %v3165_v18, %v1789_v24  ;;  %v1821_v27 = vld [vmem:[#allocation2 + $0x71] sm:$0xf] }
  0x87   : > { %800 = vst [vmem:[#allocation3] sm:$0xf] %v799_v49  ;;  %v1443_v53 = vld [vmem:[#allocation2 + $0x63] sm:$0xf]  ;;  %v1772_v5 = vadd.f32 %v1771_v58, %v1764_v20  ;;  %v1127_v60 = vmul.f32 %v3969_v12, %v1121_v14  ;;  %v1154_v4 = vld [vmem:[#allocation2 + $0x72] sm:$0xf] }
  0x88   : > { %v1797_v3 = vld [vmem:[#allocation2 + $0x65] sm:$0xf]  ;;  %v1104_v21 = vadd.f32 %v1103_v48, %v1096_v28  ;;  %v1426_v51 = vadd.f32 %v1425_v15, %v1418_v40  ;;  %v1449_v6 = vmul.f32 %v3879_v1, %v1443_v53  ;;  %v3169_v1 = vld [vmem:[%s4602_s1 + $0x1d] ss:$0 sm:$0xff]  ;;  %v1475_v58 = vld [vmem:[#allocation2 + $0x70] sm:$0xf]  ;;  %v1144_v15 = vmul.f32 %v3991_v33, %v1138_v39 }
  0x89   : > { %v1451_v41 = vld [vmem:[#allocation2 + $0x64] sm:$0xf]  ;;  %v1780_v52 = vadd.f32 %v1779_v42, %v1772_v5  ;;  %v1803_v63 = vmul.f32 %v3166_v34, %v1797_v3  ;;  %v1829_v14 = vld [vmem:[#allocation2 + $0x72] sm:$0xf]  ;;  %v1819_v28 = vmul.f32 %v3168_v9, %v1813_v43  ;;  %v1152_v40 = vmul.f32 %v4002_v13, %v1146_v8  ;;  %v1186_v43 = vld [vmem:[#allocation2 + $0x76] sm:$0xf] }
  0x8a   : > { %v1805_v57 = vld [vmem:[#allocation2 + $0x66] sm:$0xf]  ;;  %v1112_v50 = vadd.f32 %v1111_v22, %v1104_v21  ;;  %v1434_v10 = vadd.f32 %v1433_v23, %v1426_v51  ;;  %v1457_v37 = vmul.f32 %v3887_v46, %v1451_v41  ;;  %v3170_v46 = vld [vmem:[%s4602_s1 + $0x1e] ss:$0 sm:$0xff]  ;;  %v1162_v53 = vld [vmem:[#allocation2 + $0x73] sm:$0xf] }
  0x8b   : > { %v1459_v47 = vld [vmem:[#allocation2 + $0x65] sm:$0xf]  ;;  %v1788_v59 = vadd.f32 %v1787_v17, %v1780_v52  ;;  %v1811_v48 = vmul.f32 %v3167_v54, %v1805_v57  ;;  %v1483_v20 = vld [vmem:[#allocation2 + $0x71] sm:$0xf]  ;;  %v1827_v17 = vmul.f32 %v3169_v1, %v1821_v27  ;;  %v1178_v54 = vld [vmem:[#allocation2 + $0x75] sm:$0xf]  ;;  %v1835_v52 = vmul.f32 %v3170_v46, %v1829_v14 }
  0x8c   : > { %v1467_v11 = vld [vmem:[#allocation2 + $0x66] sm:$0xf]  ;;  %v1120_v2 = vadd.f32 %v1119_v45, %v1112_v50  ;;  %v1442_v49 = vadd.f32 %v1441_v44, %v1434_v10  ;;  %v1465_v18 = vmul.f32 %v3896_v0, %v1459_v47  ;;  %v1837_v34 = vld [vmem:[#allocation2 + $0x73] sm:$0xf]  ;;  %v3171_v0 = vld [vmem:[%s4602_s1 + $0x1f] ss:$0 sm:$0xff]  ;;  %v1160_v45 = vmul.f32 %v4013_v36, %v1154_v4 }
  0x8d   : > { %v1796_v61 = vadd.f32 %v1795_v38, %v1788_v59  ;;  %v1473_v3 = vmul.f32 %v3904_v19, %v1467_v11  ;;  %v1170_v26 = vld [vmem:[#allocation2 + $0x74] sm:$0xf]  ;;  %v1481_v44 = vmul.f32 %v3912_v32, %v1475_v58  ;;  %v3172_v19 = vld [vmem:[%s4602_s1 + $0x20] ss:$0 sm:$0xff]  ;;  %v1168_v50 = vmul.f32 %v4024_v56, %v1162_v53  ;;  %v3173_v32 = vld [vmem:[%s4602_s1 + $0x21] ss:$0 sm:$0xff] }
  0x8e   : > { %v1128_v16 = vadd.f32 %v1127_v60, %v1120_v2  ;;  %v1450_v24 = vadd.f32 %v1449_v6, %v1442_v49  ;;  %v1491_v41 = vld [vmem:[#allocation2 + $0x72] sm:$0xf]  ;;  %v1489_v10 = vmul.f32 %v3924_v25, %v1483_v20  ;;  %v1843_v11 = vmul.f32 %v3171_v0, %v1837_v34  ;;  %v3174_v25 = vld [vmem:[%s4602_s1 + $0x22] ss:$0 sm:$0xff]  ;;  %v3175_v20 = vld [vmem:[%s4602_s1 + $0x23] ss:$0 sm:$0xff] }
  0x8f   : > { %v1804_v42 = vadd.f32 %v1803_v63, %v1796_v61  ;;  %v1845_v57 = vld [vmem:[#allocation2 + $0x74] sm:$0xf]  ;;  %v1497_v49 = vmul.f32 %v3936_v29, %v1491_v41  ;;  %v1184_v58 = vmul.f32 %v4040_v30, %v1178_v54  ;;  %v1192_v14 = vmul.f32 %v4054_v7, %v1186_v43  ;;  %v1869_v53 = vld [vmem:[#allocation2 + $0x80] sm:$0xf]  ;;  %v3176_v34 = vld [vmem:[%s4602_s1 + $0x24] ss:$0 sm:$0xff] }
  0x90   : > { %v1136_v22 = vadd.f32 %v1135_v62, %v1128_v16  ;;  %v1458_v23 = vadd.f32 %v1457_v37, %v1450_v24  ;;  %v1499_v39 = vld [vmem:[#allocation2 + $0x73] sm:$0xf]  ;;  %v1851_v1 = vmul.f32 %v3172_v19, %v1845_v57  ;;  %v1532_v0 = vld [vmem:[#allocation2 + $0x80] sm:$0xf] }
  0x91   : > { %v1812_v5 = vadd.f32 %v1811_v48, %v1804_v42  ;;  %v1853_v6 = vld [vmem:[#allocation2 + $0x75] sm:$0xf]  ;;  %v1505_v48 = vmul.f32 %v3947_v31, %v1499_v39  ;;  %v1538_v19 = vmul.f32 %v3991_v33, %v1532_v0  ;;  %v1893_v54 = vld [vmem:[#allocation2 + $0x83] sm:$0xf] }
  0x92   : > { %v1145_v21 = vadd.f32 %v1144_v15, %v1136_v22  ;;  %v1466_v51 = vadd.f32 %v1465_v18, %v1458_v23  ;;  %v1507_v9 = vld [vmem:[#allocation2 + $0x74] sm:$0xf]  ;;  %v1859_v24 = vmul.f32 %v3173_v32, %v1853_v6  ;;  %v3178_v39 = vld [vmem:[%s4602_s1 + $0x26] ss:$0 sm:$0xff] }
  0x93   : > { %v1820_v47 = vadd.f32 %v1819_v28, %v1812_v5  ;;  %v4604_v63 = vld [vmem:[#allocation7_spill] sm:$0xff]  ;;  %v1513_v46 = vmul.f32 %v3958_v55, %v1507_v9  ;;  %v1875_v55 = vmul.f32 %v3175_v20, %v1869_v53  ;;  %v1556_v6 = vld [vmem:[#allocation2 + $0x83] sm:$0xf]  ;;  %v1899_v43 = vmul.f32 %v3178_v39, %v1893_v54 }
  0x94   : > { %v1153_v38 = vadd.f32 %v1152_v40, %v1145_v21  ;;  %v1474_v60 = vadd.f32 %v1473_v3, %v1466_v51  ;;  %v1176_v2 = vmul.f32 %v4604_v63, %v1170_v26  ;;  %v1861_v37 = vld [vmem:[#allocation2 + $0x76] sm:$0xf]  ;;  %v1877_v3 = vld [vmem:[#allocation2 + $0x81] sm:$0xf] }
  0x95   : > { %v1828_v8 = vadd.f32 %v1827_v17, %v1820_v47  ;;  %v1515_v16 = vld [vmem:[#allocation2 + $0x75] sm:$0xf]  ;;  %v1867_v22 = vmul.f32 %v3174_v25, %v1861_v37  ;;  %v1885_v21 = vld [vmem:[#allocation2 + $0x82] sm:$0xf]  ;;  %v1917_v37 = vld [vmem:[#allocation2 + $0x86] sm:$0xf] }
  0x96   : > { %v1161_v59 = vadd.f32 %v1160_v45, %v1153_v38  ;;  %v1482_v62 = vadd.f32 %v1481_v44, %v1474_v60  ;;  %v1523_v42 = vld [vmem:[#allocation2 + $0x76] sm:$0xf]  ;;  %v1521_v31 = vmul.f32 %v3969_v12, %v1515_v16  ;;  %v3177_v45 = vld [vmem:[%s4602_s1 + $0x25] ss:$0 sm:$0xff]  ;;  %v1540_v51 = vld [vmem:[#allocation2 + $0x81] sm:$0xf]  ;;  %v1883_v12 = vmul.f32 %v3176_v34, %v1877_v3 }
  0x97   : > { %v1836_v27 = vadd.f32 %v1835_v52, %v1828_v8  ;;  %v1529_v17 = vmul.f32 %v3980_v35, %v1523_v42  ;;  %v1548_v47 = vld [vmem:[#allocation2 + $0x82] sm:$0xf]  ;;  %v1891_v35 = vmul.f32 %v3177_v45, %v1885_v21  ;;  %v3181_v25 = vld [vmem:[%s4602_s1 + $0x29] ss:$0 sm:$0xff]  ;;  %v3182_v16 = vld [vmem:[%s4602_s1 + $0x2a] ss:$0 sm:$0xff] }
  0x98   : > { %v1169_v4 = vadd.f32 %v1168_v50, %v1161_v59  ;;  %v1490_v61 = vadd.f32 %v1489_v10, %v1482_v62  ;;  %v1546_v50 = vmul.f32 %v4002_v13, %v1540_v51  ;;  %v1901_v60 = vld [vmem:[#allocation2 + $0x84] sm:$0xf]  ;;  %v1554_v9 = vmul.f32 %v4013_v36, %v1548_v47  ;;  %v1950_v3 = vld [vmem:[#allocation2 + $0x93] sm:$0xf]  ;;  %v3187_v21 = vld [vmem:[%s4602_s1 + $0x2f] ss:$0 sm:$0xff] }
  0x99   : > { %v1844_v15 = vadd.f32 %v1843_v11, %v1836_v27  ;;  %v3179_v10 = vld [vmem:[%s4602_s1 + $0x27] ss:$0 sm:$0xff]  ;;  %v3180_v11 = vld [vmem:[%s4602_s1 + $0x28] ss:$0 sm:$0xff] }
  0x9a   : > { %v1177_v18 = vadd.f32 %v1176_v2, %v1169_v4  ;;  %v1498_v29 = vadd.f32 %v1497_v49, %v1490_v61  ;;  %v1909_v8 = vld [vmem:[#allocation2 + $0x85] sm:$0xf]  ;;  %v1907_v62 = vmul.f32 %v3179_v10, %v1901_v60  ;;  %v1562_v49 = vmul.f32 %v4024_v56, %v1556_v6 }
  0x9b   : > { %v1852_v28 = vadd.f32 %v1851_v1, %v1844_v15  ;;  %v1564_v59 = vld [vmem:[#allocation2 + $0x84] sm:$0xf]  ;;  %v1915_v36 = vmul.f32 %v3180_v11, %v1909_v8  ;;  %v3362_v8 = vld [vmem:[%s4588_s5 + $0xcc] ss:$16 sps:$4 sm:$0xff]   ;;  %v3364_v11 = vld [vmem:[%s4588_s5 + $0xc0] ss:$16 sps:$4 sm:$0xff]  }
  0x9c   : > { %v1185_v40 = vadd.f32 %v1184_v58, %v1177_v18  ;;  %v1506_v23 = vadd.f32 %v1505_v48, %v1498_v29  ;;  %v1572_v1 = vld [vmem:[#allocation2 + $0x85] sm:$0xf]  ;;  %v1570_v61 = vmul.f32 %v4604_v63, %v1564_v59  ;;  %v1926_v48 = vld [vmem:[#allocation2 + $0x90] sm:$0xf] }
  0x9d   : > { %v1860_v26 = vadd.f32 %v1859_v24, %v1852_v28  ;;  %v1580_v15 = vld [vmem:[#allocation2 + $0x86] sm:$0xf]  ;;  %v1923_v24 = vmul.f32 %v3181_v25, %v1917_v37  ;;  %v1934_v29 = vld [vmem:[#allocation2 + $0x91] sm:$0xf]  ;;  %v1932_v20 = vmul.f32 %v3182_v16, %v1926_v48  ;;  %v3368_v25 = vld [vmem:[%s4588_s5 + $0xac] ss:$16 sps:$4 sm:$0xff]  }
  0x9e   : > { %v1193_v41 = vadd.f32 %v1192_v14, %v1185_v40  ;;  %v1514_v5 = vadd.f32 %v1513_v46, %v1506_v23  ;;  %v1578_v14 = vmul.f32 %v4040_v30, %v1572_v1  ;;  %v3183_v46 = vld [vmem:[%s4602_s1 + $0x2b] ss:$0 sm:$0xff]  ;;  %v1586_v63 = vmul.f32 %v4054_v7, %v1580_v15  ;;  %v1942_v28 = vld [vmem:[#allocation2 + $0x92] sm:$0xf]  ;;  %v3185_v30 = vld [vmem:[%s4602_s1 + $0x2d] ss:$0 sm:$0xff] }
  0x9f   : > { %v1868_v44 = vadd.f32 %v1867_v22, %v1860_v26  ;;  %v3184_v22 = vld [vmem:[%s4602_s1 + $0x2c] ss:$0 sm:$0xff]  ;;  %v1940_v23 = vmul.f32 %v3183_v46, %v1934_v29  ;;  %v3186_v7 = vld [vmem:[%s4602_s1 + $0x2e] ss:$0 sm:$0xff]  ;;  %v3354_v6 = vld [vmem:[%s4588_s5 + $0xe4] ss:$16 sps:$4 sm:$0xff]  }
  0xa0   : > { %1194 = vst [vmem:[#allocation3 + $0x4] sm:$0xf] %v1193_v41  ;;  %v1522_v57 = vadd.f32 %v1521_v31, %v1514_v5  ;;  %v1948_v0 = vmul.f32 %v3184_v22, %v1942_v28  ;;  %v1956_v5 = vmul.f32 %v3185_v30, %v1950_v3  ;;  %2241 = vmatprep.subr.bf16.mxu0 %v3354_v6  ;;  %v3365_v59 = vld [vmem:[%s4588_s5 + $0xc8] ss:$16 sps:$4 sm:$0xff]   ;;  %v3366_v37 = vld [vmem:[%s4588_s5 + $0xa4] ss:$16 sps:$4 sm:$0xff]  }
  0xa1   : > { %v1876_v52 = vadd.f32 %v1875_v55, %v1868_v44  ;;  %v1958_v55 = vld [vmem:[#allocation2 + $0x94] sm:$0xf]  ;;  %v3371_v1 = vld [vmem:[%s4588_s5 + $0xa8] ss:$16 sps:$4 sm:$0xff]   ;;  %v3380_v16 = vld [vmem:[%s4588_s5 + $0x6c] ss:$16 sps:$4 sm:$0xff]  }
  0xa2   : > { %v1530_v38 = vadd.f32 %v1529_v17, %v1522_v57  ;;  %v1966_v17 = vld [vmem:[#allocation2 + $0x95] sm:$0xf]  ;;  %v1964_v51 = vmul.f32 %v3186_v7, %v1958_v55  ;;  %v3382_v15 = vld [vmem:[%s4588_s5 + $0x60] ss:$16 sps:$4 sm:$0xff]   ;;  %v3398_v22 = vld [vmem:[%s4588_s5 + $0xc] ss:$16 sps:$4 sm:$0xff]  }
  0xa3   : > { %v1884_v32 = vadd.f32 %v1883_v12, %v1876_v52  ;;  %v1974_v44 = vld [vmem:[#allocation2 + $0x96] sm:$0xf]  ;;  %v3188_v12 = vld [vmem:[%s4602_s1 + $0x30] ss:$0 sm:$0xff]  ;;  %v3412_v6 = vld [vmem:[%s4590_s7 + $0x28] sm:$0xff]   ;;  %s3476_s1 = scalar_lea.vmem %s3475_s27, 512 }
  0xa4   : > { %v1539_v33 = vadd.f32 %v1538_v19, %v1530_v38  ;;  %v1972_v19 = vmul.f32 %v3187_v21, %v1966_v17  ;;  %v1980_v39 = vmul.f32 %v3188_v12, %v1974_v44  ;;  %v3378_v48 = vld [vmem:[%s4588_s5 + $0x64] ss:$16 sps:$4 sm:$0xff]   ;;  %v3389_v29 = vld [vmem:[%s4588_s5 + $0x48] ss:$16 sps:$4 sm:$0xff]  }
  0xa5   : > { %v1892_v2 = vadd.f32 %v1891_v35, %v1884_v32  ;;  %v3356_v32 = vld [vmem:[%s4588_s5 + $0xec] ss:$16 sps:$4 sm:$0xff]   ;;  %v3390_v46 = vld [vmem:[%s4588_s5 + $0x24] ss:$16 sps:$4 sm:$0xff]  }
  0xa6   : > { %v1547_v13 = vadd.f32 %v1546_v50, %v1539_v33  ;;  %v3359_v33 = vld [vmem:[%s4588_s5 + $0xe8] ss:$16 sps:$4 sm:$0xff]   ;;  %2284 = vmatprep.subr.bf16.mxu1 %v3356_v32  ;;  %v3396_v28 = vld [vmem:[%s4588_s5 + $0x4] ss:$16 sps:$4 sm:$0xff]  }
  0xa7   : > { %v1983_v27 = vld [vmem:[#allocation3] sm:$0xff]  ;;  %v1900_v4 = vadd.f32 %v1899_v43, %v1892_v2  ;;  %2285 = vmatpush1.bf16.msra.mxu1 %v3359_v33  ;;  %v3413_v32 = vld [vmem:[%s4590_s7 + $0xa8] sm:$0xff]  }
  0xa8   : > { %1985 = vadd.xlane.f32.xlu0 %v1983_v27  ;;  %v1555_v58 = vadd.f32 %v1554_v9, %v1547_v13  ;;  %v3358_v43 = vld [vmem:[%s4588_s5 + $0xe0] ss:$16 sps:$4 sm:$0xff]   ;;  %v3360_v9 = vld [vmem:[%s4588_s5 + $0xc4] ss:$16 sps:$4 sm:$0xff]   ;;  %2286 = vmatprep.subr.bf16.mxu1 %v3362_v8 }
  0xa9   : > { %v1908_v56 = vadd.f32 %v1907_v62, %v1900_v4  ;;  %2242 = vmatpush1.bf16.msra.mxu0 %v3358_v43  ;;  %v3372_v4 = vld [vmem:[%s4588_s5 + $0x84] ss:$16 sps:$4 sm:$0xff]  }
  0xaa   : > { %v1563_v18 = vadd.f32 %v1562_v49, %v1555_v58  ;;  %2243 = vmatprep.subr.bf16.mxu0 %v3360_v9  ;;  %v3376_v58 = vld [vmem:[%s4588_s5 + $0x80] ss:$16 sps:$4 sm:$0xff]  }
  0xab   : > { %v1916_v53 = vadd.f32 %v1915_v36, %v1908_v56  ;;  %2287 = vmatpush1.bf16.msra.mxu1 %v3365_v59  ;;  %v3374_v36 = vld [vmem:[%s4588_s5 + $0x8c] ss:$16 sps:$4 sm:$0xff]   ;;  %v3383_v56 = vld [vmem:[%s4588_s5 + $0x68] ss:$16 sps:$4 sm:$0xff]   ;;  %v3414_v43 = vld [vmem:[%s4590_s7 + $0x60] sm:$0xff]  }
  0xac   : > { %v1571_v42 = vadd.f32 %v1570_v61, %v1563_v18  ;;  %2288 = vmatprep.subr.bf16.mxu1 %v3368_v25  ;;  %v3377_v61 = vld [vmem:[%s4588_s5 + $0x88] ss:$16 sps:$4 sm:$0xff]   ;;  %v3386_v18 = vld [vmem:[%s4588_s5 + $0x4c] ss:$16 sps:$4 sm:$0xff]   ;;  %v3415_v33 = vld [vmem:[%s4590_s7 + $0xe0] sm:$0xff]  }
  0xad   : > { %v1924_v40 = vadd.f32 %v1923_v24, %v1916_v53  ;;  %2244 = vmatpush1.bf16.msra.mxu0 %v3364_v11  ;;  %v3384_v24 = vld [vmem:[%s4588_s5 + $0x44] ss:$16 sps:$4 sm:$0xff]   ;;  %v3392_v53 = vld [vmem:[%s4588_s5 + $0x2c] ss:$16 sps:$4 sm:$0xff]  }
  0xae   : > { %v1579_v31 = vadd.f32 %v1578_v14, %v1571_v42  ;;  %2245 = vmatprep.subr.bf16.mxu0 %v3366_v37  ;;  %v3388_v14 = vld [vmem:[%s4588_s5 + $0x40] ss:$16 sps:$4 sm:$0xff]   ;;  %v3418_v11 = vld [vmem:[%s4590_s7 + $0x58] sm:$0xff]  }
  0xaf   : > { %v1933_v34 = vadd.f32 %v1932_v20, %v1924_v40  ;;  %2289 = vmatpush1.bf16.msra.mxu1 %v3371_v1  ;;  %v3533_v20 = vmov 0   ;;  %v3394_v42 = vld [vmem:[%s4588_s5 + $0x20] ss:$16 sps:$4 sm:$0xff]   ;;  %v3419_v59 = vld [vmem:[%s4590_s7 + $0xd8] sm:$0xff]   ;;  %v3427_v1 = vld [vmem:[%s4590_s7 + $0xc8] sm:$0xff]  }
  0xb0   : > { %v1587_v26 = vadd.f32 %v1586_v63, %v1579_v31  ;;  %2290 = vmatprep.subr.bf16.mxu1 %v3374_v36  ;;  %2273 = vmatprep.mubr.bf16.mxu0 %v3533_v20  ;;  %v3395_v63 = vld [vmem:[%s4588_s5 + $0x28] ss:$16 sps:$4 sm:$0xff]   ;;  %v3400_v40 = vld [vmem:[%s4588_s5] ss:$16 sps:$4 sm:$0xff]  }
  0xb1   : > { %v1941_v41 = vadd.f32 %v1940_v23, %v1933_v34  ;;  %2316 = vmatprep.mubr.bf16.mxu1 %v3533_v20  ;;  %v3401_v23 = vld [vmem:[%s4588_s5 + $0x8] ss:$16 sps:$4 sm:$0xff]   ;;  %v3416_v9 = vld [vmem:[%s4590_s7 + $0x20] sm:$0xff]   ;;  %v3424_v37 = vld [vmem:[%s4590_s7 + $0x10] sm:$0xff]  }
  0xb2   : > { %1588 = vst [vmem:[#allocation3 + $0x8] sm:$0xf] %v1587_v26  ;;  %v3417_v8 = vld [vmem:[%s4590_s7 + $0xa0] sm:$0xff]   ;;  %v3425_v25 = vld [vmem:[%s4590_s7 + $0x90] sm:$0xff]   ;;  %v3429_v36 = vld [vmem:[%s4590_s7 + $0x88] sm:$0xff]  }
  0xb3   : > { %v1949_v45 = vadd.f32 %v1948_v0, %v1941_v41  ;;  %2291 = vmatpush1.bf16.msra.mxu1 %v3377_v61  ;;  %v3189_v41 = vld [vmem:[%s4586_s3] ss:$0 sm:$0xff] }
  0xb4   : > { %2292 = vmatprep.subr.bf16.mxu1 %v3380_v16  ;;  %v3431_v61 = vld [vmem:[%s4590_s7 + $0xc0] sm:$0xff]  }
  0xb5   : > { %v1957_v57 = vadd.f32 %v1956_v5, %v1949_v45  ;;  %v3190_v45 = vld [vmem:[%s4587_s4] ss:$0 sm:$0xff] }
  0xb6   : > { %v3433_v16 = vld [vmem:[%s4590_s7 + $0x80] sm:$0xff]  }
  0xb7   : > { %v1965_v54 = vadd.f32 %v1964_v51, %v1957_v57  ;;  %2293 = vmatpush1.bf16.msra.mxu1 %v3383_v56 }
  0xb8   : > { %2294 = vmatprep.subr.bf16.mxu1 %v3386_v18 }
  0xb9   : > { %v1973_v47 = vadd.f32 %v1972_v19, %v1965_v54  ;;  %v3402_v19 = vld [vmem:[%s4590_s7 + $0x78] sm:$0xff]  }
  0xba   : > { %v3403_v54 = vld [vmem:[%s4590_s7 + $0xf8] sm:$0xff]  }
  0xbb   : > { %v1981_v52 = vadd.f32 %v1980_v39, %v1973_v47  ;;  %2295 = vmatpush1.bf16.msra.mxu1 %v3389_v29  ;;  %v3404_v39 = vld [vmem:[%s4590_s7 + $0x38] sm:$0xff]  }
  0xbc   : > { %2296 = vmatprep.subr.bf16.mxu1 %v3392_v53  ;;  %v3405_v47 = vld [vmem:[%s4590_s7 + $0xb8] sm:$0xff]  }
  0xbd   : > { %1982 = vst [vmem:[#allocation3 + $0xc] sm:$0xf] %v1981_v52  ;;  %v3406_v52 = vld [vmem:[%s4590_s7 + $0x70] sm:$0xff]  }
  0xbf   : > { %2297 = vmatpush1.bf16.msra.mxu1 %v3395_v63 }
  0xc0   : > { %2298 = vmatprep.subr.bf16.mxu1 %v3398_v22 }
  0xc3   : > { %2299 = vmatpush1.bf16.msra.mxu1 %v3401_v23 }
  0xc4   : > { %v1984_v35 = vld [vmem:[#allocation3 + $0x8] sm:$0xff]  ;;  %3289 = vmatprep.subr.bf16.mxu1 %v3403_v54 }
  0xc5   : > { %1987 = vadd.xlane.f32.xlu0 %v1984_v35 }
 0x131   : > { %v1986_v38 = vpop.xlane.xlu0 %1985 }
 0x132   : > { %v1990_v50 = vmul.f32 0.0078125, %v1986_v38  ;;  %v3408_v38 = vld [vmem:[%s4590_s7 + $0x30] sm:$0xff]  }
 0x134   : > { %v4189_v60 = vsub.f32 %v1983_v27, %v1990_v50  ;;  %v3370_v27 = vld [vmem:[%s4588_s5 + $0xa0] ss:$16 sps:$4 sm:$0xff]  }
 0x135   : > { %2246 = vmatpush1.bf16.msra.mxu0 %v3370_v27  ;;  %v3409_v50 = vld [vmem:[%s4590_s7 + $0xb0] sm:$0xff]   ;;  %v3426_v27 = vld [vmem:[%s4590_s7 + $0x48] sm:$0xff]  }
 0x136   : > { %v1994_v10 = vmul.f32 %v4189_v60, %v4189_v60  ;;  %2247 = vmatprep.subr.bf16.mxu0 %v3372_v4  ;;  %v3428_v4 = vld [vmem:[%s4590_s7 + $0x8] sm:$0xff]  }
 0x138   : > { %1996 = vadd.xlane.f32.xlu1 %v1994_v10  ;;  %v3411_v10 = vld [vmem:[%s4590_s7 + $0xe8] sm:$0xff]  }
 0x139   : > { %2248 = vmatpush1.bf16.msra.mxu0 %v3376_v58  ;;  %v3430_v58 = vld [vmem:[%s4590_s7 + $0x40] sm:$0xff]  }
 0x13a   : > { %2249 = vmatprep.subr.bf16.mxu0 %v3378_v48  ;;  %v3432_v48 = vld [vmem:[%s4590_s7] sm:$0xff]  }
 0x13d   : > { %2250 = vmatpush1.bf16.msra.mxu0 %v3382_v15  ;;  %v2061_v15 = vlaneseq }
 0x13e   : > { %2251 = vmatprep.subr.bf16.mxu0 %v3384_v24 }
 0x13f   : > { %v2062_v56 = vshrl.u32 %v2061_v15, 7 }
 0x141   : > { %2252 = vmatpush1.bf16.msra.mxu0 %v3388_v14  ;;  %v2063_v24 = vsub.s32 0, %v2062_v56  ;;  %v2071_v18 = vsub.s32 2, %v2062_v56  ;;  %v2059_v14 = vld [vmem:[%s4589_s6] sm:$0xf]  ;;  %v2067_v29 = vsub.s32 1, %v2062_v56 }
 0x142   : > { %2253 = vmatprep.subr.bf16.mxu0 %v3390_v46  ;;  %v2075_v46 = vsub.s32 3, %v2062_v56 }
 0x143   : > { %v2064_v53 = vrot.slane %v2059_v14, %v2063_v24  ;;  %v2072_v20 = vrot.slane %v2059_v14, %v2071_v18 }
 0x144   : > { %v2076_v22 = vrot.slane %v2059_v14, %v2075_v46 }
 0x145   : > { %2254 = vmatpush1.bf16.msra.mxu0 %v3394_v42 }
 0x146   : > { %2255 = vmatprep.subr.bf16.mxu0 %v3396_v28  ;;  %v2068_v28 = vrot.slane %v2059_v14, %v2067_v29 }
 0x149   : > { %2256 = vmatpush1.bf16.msra.mxu0 %v3400_v40 }
 0x14a   : > { %3267 = vmatprep.subr.bf16.mxu0 %v3402_v19 }
 0x14e   : > { %v1988_v2 = vpop.xlane.xlu0 %1987 }
 0x14f   : > { %v1991_v62 = vmul.f32 0.0078125, %v1988_v2  ;;  %v3420_v2 = vld [vmem:[%s4590_s7 + $0x18] sm:$0xff]  }
 0x151   : > { %v4217_v13 = vsub.f32 %v1984_v35, %v1991_v62  ;;  %v3407_v35 = vld [vmem:[%s4590_s7 + $0xf0] sm:$0xff]   ;;  %v3421_v62 = vld [vmem:[%s4590_s7 + $0x98] sm:$0xff]  }
 0x153   : > { %v1995_v49 = vmul.f32 %v4217_v13, %v4217_v13 }
 0x155   : > { %1998 = vadd.xlane.f32.xlu1 %v1995_v49  ;;  %v3423_v49 = vld [vmem:[%s4590_s7 + $0xd0] sm:$0xff]  }
 0x1c1   : > { %v1997_v31 = vpop.xlane.xlu1 %1996 }
 0x1c2   : > { %v2000_v3 = vmul.f32 0.0078125, %v1997_v31 }
 0x1c4   : > { %v2002_v30 = vadd.f32 1e-06, %v2000_v3 }
 0x1c6   : > { %3434 = vrsqrt.f32 %v2002_v30 }
 0x1d3   : > { %v3435_v55 = vpop.eup %3434 }
 0x1d4   : > { %v2006_v7 = vmul.f32 %v3435_v55, %v4189_v60  ;;  %v3410_v60 = vld [vmem:[%s4590_s7 + $0x68] sm:$0xff]  }
 0x1d6   : > { %v2015_v21 = vmul.f32 %v3189_v41, %v2006_v7 }
 0x1d8   : > { %v2024_v44 = vadd.f32 %v3190_v45, %v2015_v21 }
 0x1de   : > { %v1999_v34 = vpop.xlane.xlu1 %1998 }
 0x1df   : > { %v2001_v0 = vmul.f32 0.0078125, %v1999_v34 }
 0x1e1   : > { %v2003_v26 = vadd.f32 1e-06, %v2001_v0 }
 0x1e3   : > { %3436 = vrsqrt.f32 %v2003_v26 }
 0x1f0   : > { %v3437_v5 = vpop.eup %3436 }
 0x1f1   : > { %v2007_v17 = vmul.f32 %v3437_v5, %v4217_v13  ;;  %v3422_v13 = vld [vmem:[%s4590_s7 + $0x50] sm:$0xff]  }
 0x1f3   : > { %v2016_v51 = vmul.f32 %v3189_v41, %v2007_v17 }
 0x1f5   : > { %v2025_v12 = vadd.f32 %v3190_v45, %v2016_v51 }
 0x1f7   : > { %v2026_v57 = vpack.c.bf16 %v2025_v12, %v2024_v44 }
 0x1f9   : > { %2274 = vmatmul.mubr.bf16.vlgmr.msra.gmra.mxu0 %v2026_v57  ;;  %2317 = vmatmul.mubr.bf16.vlgmr.msra.gmra.mxu1 %v2026_v57 }
 0x1fa   : > { %3268 = vmatpush3.bf16.msra.mxu0 %v3404_v39  ;;  %3290 = vmatpush3.bf16.msra.mxu1 %v3405_v47 }
 0x1fb   : > { %3269 = vmatprep.subr.bf16.mxu0 %v3406_v52  ;;  %3291 = vmatprep.subr.bf16.mxu1 %v3407_v35 }
 0x1fe   : > { %3270 = vmatpush3.bf16.msra.mxu0 %v3408_v38  ;;  %3292 = vmatpush3.bf16.msra.mxu1 %v3409_v50 }
 0x1ff   : > { %3271 = vmatprep.subr.bf16.mxu0 %v3410_v60  ;;  %3293 = vmatprep.subr.bf16.mxu1 %v3411_v10 }
 0x202   : > { %3272 = vmatpush3.bf16.msra.mxu0 %v3412_v6  ;;  %3294 = vmatpush3.bf16.msra.mxu1 %v3413_v32 }
 0x203   : > { %3273 = vmatprep.subr.bf16.mxu0 %v3414_v43  ;;  %3295 = vmatprep.subr.bf16.mxu1 %v3415_v33 }
 0x206   : > { %3274 = vmatpush3.bf16.msra.mxu0 %v3416_v9  ;;  %3296 = vmatpush3.bf16.msra.mxu1 %v3417_v8 }
 0x207   : > { %3275 = vmatprep.subr.bf16.mxu0 %v3418_v11  ;;  %3297 = vmatprep.subr.bf16.mxu1 %v3419_v59 }
 0x20a   : > { %3276 = vmatpush3.bf16.msra.mxu0 %v3420_v2  ;;  %3298 = vmatpush3.bf16.msra.mxu1 %v3421_v62 }
 0x20b   : > { %3277 = vmatprep.subr.bf16.mxu0 %v3422_v13  ;;  %3299 = vmatprep.subr.bf16.mxu1 %v3423_v49 }
 0x20e   : > { %3278 = vmatpush3.bf16.msra.mxu0 %v3424_v37  ;;  %3300 = vmatpush3.bf16.msra.mxu1 %v3425_v25 }
 0x20f   : > { %3279 = vmatprep.subr.bf16.mxu0 %v3426_v27  ;;  %3301 = vmatprep.subr.bf16.mxu1 %v3427_v1 }
 0x212   : > { %3280 = vmatpush3.bf16.msra.mxu0 %v3428_v4  ;;  %3302 = vmatpush3.bf16.msra.mxu1 %v3429_v36 }
 0x213   : > { %3281 = vmatprep.subr.bf16.mxu0 %v3430_v58  ;;  %3303 = vmatprep.subr.bf16.mxu1 %v3431_v61 }
 0x216   : > { %3282 = vmatpush3.bf16.msra.mxu0 %v3432_v48  ;;  %3304 = vmatpush3.bf16.msra.mxu1 %v3433_v16 }
 0x2b9   : > { %v2275_v42 = vpop.f32.mrf.mxu0  ;;  %v2318_v63 = vpop.f32.mrf.mxu1 }
 0x2ba   : > { %v4400_v40 = vadd.f32 %v2275_v42, %v2064_v53  ;;  %v4402_v23 = vadd.f32 %v2318_v63, %v2072_v20 }
 0x2bb   : > { %v2277_v31 = vpop.f32.mrf.mxu0  ;;  %v2320_v3 = vpop.f32.mrf.mxu1 }
 0x2bc   : > { %v4405_v30 = vmul.f32 0.70710677, %v4400_v40  ;;  %v4408_v34 = vmul.f32 0.70710677, %v4402_v23  ;;  %v4410_v0 = vadd.f32 %v2277_v31, %v2068_v28  ;;  %v4412_v26 = vadd.f32 %v2320_v3, %v2076_v22 }
 0x2bd   : > { %v2279_v45 = vpop.f32.mrf.mxu0  ;;  %v2322_v47 = vpop.f32.mrf.mxu1 }
 0x2be   : > { %v2343_v55 = vand.u32 2147483647, %v4405_v30  ;;  %v2345_v7 = vand.u32 2147483647, %v4408_v34  ;;  %v4417_v41 = vmul.f32 0.70710677, %v4410_v0  ;;  %v4424_v39 = vadd.f32 %v2279_v45, %v2064_v53 }
 0x2bf   : > { %v4420_v5 = vmul.f32 0.70710677, %v4412_v26  ;;  %v2281_v52 = vpop.f32.mrf.mxu0  ;;  %v4429_v60 = vadd.f32 %v2322_v47, %v2072_v20  ;;  %v2324_v32 = vpop.f32.mrf.mxu1  ;;  %vm2503_vm1 = vcmp.ge.f32.partialorder %v4405_v30, 0.0  ;;  %vm2505_vm3 = vcmp.ge.f32.partialorder %v4408_v34, 0.0 }
 0x2c0   : > { %v2351_v17 = vmul.f32 0.3275911, %v2343_v55  ;;  %v2353_v21 = vmul.f32 0.3275911, %v2345_v7  ;;  %v2344_v51 = vand.u32 2147483647, %v4417_v41  ;;  %v4431_v10 = vadd.f32 %v2281_v52, %v2068_v28 }
 0x2c1   : > { %v2346_v44 = vand.u32 2147483647, %v4420_v5  ;;  %v4427_v50 = vmul.f32 0.70710677, %v4424_v39  ;;  %v4435_v43 = vmul.f32 0.70710677, %v4429_v60  ;;  %v4441_v11 = vadd.f32 %v2324_v32, %v2076_v22 }
 0x2c2   : > { %v2359_v12 = vadd.f32 1.0, %v2351_v17  ;;  %v2361_v57 = vadd.f32 1.0, %v2353_v21  ;;  %v2352_v19 = vmul.f32 0.3275911, %v2344_v51  ;;  %v4438_v9 = vmul.f32 0.70710677, %v4431_v10 }
 0x2c3   : > { %v2354_v54 = vmul.f32 0.3275911, %v2346_v44  ;;  %v2347_v6 = vand.u32 2147483647, %v4427_v50  ;;  %v2349_v8 = vand.u32 2147483647, %v4435_v43 }
 0x2c4   : > { %3438 = vrcp.f32 %v2359_v12  ;;  %v2360_v35 = vadd.f32 1.0, %v2352_v19  ;;  %v2455_v59 = vsub.f32 0.0, %v2343_v55  ;;  %v2348_v62 = vand.u32 2147483647, %v4438_v9 }
 0x2c5   : > { %3440 = vrcp.f32 %v2361_v57  ;;  %v2362_v38 = vadd.f32 1.0, %v2354_v54  ;;  %v2355_v33 = vmul.f32 0.3275911, %v2347_v6  ;;  %v2357_v13 = vmul.f32 0.3275911, %v2349_v8 }
 0x2c6   : > { %3442 = vrcp.f32 %v2360_v35  ;;  %v4445_v49 = vmul.f32 0.70710677, %v4441_v11  ;;  %v2457_v37 = vsub.f32 0.0, %v2345_v7  ;;  %v2356_v25 = vmul.f32 0.3275911, %v2348_v62 }
 0x2c7   : > { %3444 = vrcp.f32 %v2362_v38  ;;  %v2363_v2 = vadd.f32 1.0, %v2355_v33  ;;  %v2456_v27 = vsub.f32 0.0, %v2344_v51  ;;  %v2365_v1 = vadd.f32 1.0, %v2357_v13 }
 0x2c8   : > { %v4448_v4 = vand.u32 2147483647, %v4445_v49  ;;  %v2463_v36 = vmul.f32 %v2455_v59, %v2343_v55  ;;  %v2364_v58 = vadd.f32 1.0, %v2356_v25  ;;  %v2458_v48 = vsub.f32 0.0, %v2346_v44 }
 0x2c9   : > { %3446 = vrcp.f32 %v2363_v2  ;;  %v2465_v24 = vmul.f32 %v2457_v37, %v2345_v7  ;;  %v2464_v14 = vmul.f32 %v2456_v27, %v2344_v51  ;;  %v2459_v29 = vsub.f32 0.0, %v2347_v6 }
 0x2ca   : > { %3448 = vrcp.f32 %v2365_v1  ;;  %v2358_v16 = vmul.f32 0.3275911, %v4448_v4  ;;  %v2471_v20 = vmul.f32 1.442695, %v2463_v36  ;;  %v2466_v28 = vmul.f32 %v2458_v48, %v2346_v44 }
 0x2cb   : > { %3450 = vrcp.f32 %v2364_v58  ;;  %v2461_v22 = vsub.f32 0.0, %v2349_v8  ;;  %v2475_v3 = vmul.f32 1.442695, %v2465_v24  ;;  %v2473_v21 = vmul.f32 1.442695, %v2464_v14 }
 0x2cc   : > { %v2366_v46 = vadd.f32 1.0, %v2358_v16  ;;  %v2467_v45 = vmul.f32 %v2459_v29, %v2347_v6  ;;  %v2460_v51 = vsub.f32 0.0, %v2348_v62  ;;  %v2477_v54 = vmul.f32 1.442695, %v2466_v28 }
 0x2cd   : > { %v2469_v47 = vmul.f32 %v2461_v22, %v2349_v8  ;;  %v2462_v27 = vsub.f32 0.0, %v4448_v4  ;;  %vm2507_vm0 = vcmp.ge.f32.partialorder %v4427_v50, 0.0  ;;  %vm2504_vm2 = vcmp.ge.f32.partialorder %v4417_v41, 0.0 }
 0x2ce   : > { %3452 = vrcp.f32 %v2366_v46  ;;  %v2479_v6 = vmul.f32 1.442695, %v2467_v45  ;;  %v2468_v59 = vmul.f32 %v2460_v51, %v2348_v62  ;;  %vm2506_vm4 = vcmp.ge.f32.partialorder %v4420_v5, 0.0 }
 0x2cf   : > { %3454 = vpow2.f32 %v2471_v20  ;;  %v2483_v8 = vmul.f32 1.442695, %v2469_v47  ;;  %vm2509_vm5 = vcmp.ge.f32.partialorder %v4435_v43, 0.0  ;;  %vm2508_vm6 = vcmp.ge.f32.partialorder %v4438_v9, 0.0 }
 0x2d0   : > { %3456 = vpow2.f32 %v2475_v3  ;;  %v2481_v46 = vmul.f32 1.442695, %v2468_v59  ;;  %v2327_v5 = vmul.f32 0.5, %v4400_v40  ;;  %vm2510_vm7 = vcmp.ge.f32.partialorder %v4445_v49, 0.0 }
 0x2d1   : > { %v4450_v61 = vpop.eup %3438  ;;  %3458 = vpow2.f32 %v2473_v21  ;;  %v2334_v34 = vmul.f32 0.5, %v4441_v11  ;;  %v3223_v11 = vld [vmem:[%s4591_s8] ss:$0 sm:$0xff] }
 0x2d2   : > { %v4453_v15 = vpop.eup %3440  ;;  %v2383_v56 = vmul.f32 1.0614054, %v4450_v61  ;;  %3460 = vpow2.f32 %v2477_v54 }
 0x2d3   : > { %v2385_v18 = vmul.f32 1.0614054, %v4453_v15  ;;  %v4457_v42 = vpop.eup %3442  ;;  %3462 = vpow2.f32 %v2479_v6 }
 0x2d4   : > { %v2391_v53 = vadd.f32 -1.4531521, %v2383_v56  ;;  %v2384_v55 = vmul.f32 1.0614054, %v4457_v42  ;;  %v4461_v7 = vpop.eup %3444  ;;  %3464 = vpow2.f32 %v2483_v8 }
 0x2d5   : > { %v2393_v63 = vadd.f32 -1.4531521, %v2385_v18  ;;  %v2386_v19 = vmul.f32 1.0614054, %v4461_v7  ;;  %3466 = vpow2.f32 %v2481_v46 }
 0x2d6   : > { %v2399_v31 = vmul.f32 %v4450_v61, %v2391_v53  ;;  %v2392_v57 = vadd.f32 -1.4531521, %v2384_v55  ;;  %v4467_v32 = vpop.eup %3446 }
 0x2d7   : > { %v2401_v17 = vmul.f32 %v4453_v15, %v2393_v63  ;;  %v2394_v38 = vadd.f32 -1.4531521, %v2386_v19  ;;  %v2387_v25 = vmul.f32 1.0614054, %v4467_v32  ;;  %v4473_v1 = vpop.eup %3448  ;;  %v2470_v63 = vmul.f32 %v2462_v27, %v4448_v4 }
 0x2d8   : > { %v2407_v12 = vadd.f32 1.4214138, %v2399_v31  ;;  %v2400_v35 = vmul.f32 %v4457_v42, %v2392_v57  ;;  %v4477_v56 = vpop.eup %3450  ;;  %v2389_v24 = vmul.f32 1.0614054, %v4473_v1 }
 0x2d9   : > { %v2409_v44 = vadd.f32 1.4214138, %v2401_v17  ;;  %v2402_v37 = vmul.f32 %v4461_v7, %v2394_v38  ;;  %v2395_v16 = vadd.f32 -1.4531521, %v2387_v25  ;;  %v2388_v20 = vmul.f32 1.0614054, %v4477_v56 }
 0x2da   : > { %v2415_v52 = vmul.f32 %v4450_v61, %v2407_v12  ;;  %v2408_v13 = vadd.f32 1.4214138, %v2400_v35  ;;  %v2397_v53 = vadd.f32 -1.4531521, %v2389_v24  ;;  %v2485_v47 = vmul.f32 1.442695, %v2470_v63 }
 0x2db   : > { %v2417_v33 = vmul.f32 %v4453_v15, %v2409_v44  ;;  %v2410_v48 = vadd.f32 1.4214138, %v2402_v37  ;;  %v2403_v29 = vmul.f32 %v4467_v32, %v2395_v16  ;;  %v4484_v28 = vpop.eup %3452  ;;  %v2396_v45 = vadd.f32 -1.4531521, %v2388_v20 }
 0x2dc   : > { %v2423_v2 = vadd.f32 -0.28449672, %v2415_v52  ;;  %v2416_v58 = vmul.f32 %v4457_v42, %v2408_v13  ;;  %v2405_v21 = vmul.f32 %v4473_v1, %v2397_v53  ;;  %v2390_v51 = vmul.f32 1.0614054, %v4484_v28  ;;  %v3455_v52 = vpop.eup %3454 }
 0x2dd   : > { %v2425_v62 = vadd.f32 -0.28449672, %v2417_v33  ;;  %v2418_v14 = vmul.f32 %v4461_v7, %v2410_v48  ;;  %v2411_v55 = vadd.f32 1.4214138, %v2403_v29  ;;  %v2404_v44 = vmul.f32 %v4477_v56, %v2396_v45  ;;  %v3457_v59 = vpop.eup %3456 }
 0x2de   : > { %v2431_v36 = vmul.f32 %v4450_v61, %v2423_v2  ;;  %v2424_v18 = vadd.f32 -0.28449672, %v2416_v58  ;;  %v2413_v4 = vadd.f32 1.4214138, %v2405_v21  ;;  %v2398_v54 = vadd.f32 -1.4531521, %v2390_v51  ;;  %v3459_v8 = vpop.eup %3458 }
 0x2df   : > { %v2426_v3 = vadd.f32 -0.28449672, %v2418_v14  ;;  %v2433_v17 = vmul.f32 %v4453_v15, %v2425_v62  ;;  %v2419_v19 = vmul.f32 %v4467_v32, %v2411_v55  ;;  %v2412_v37 = vadd.f32 1.4214138, %v2404_v44 }
 0x2e0   : > { %v2439_v22 = vadd.f32 0.2548296, %v2431_v36  ;;  %v2432_v31 = vmul.f32 %v4457_v42, %v2424_v18  ;;  %v2421_v13 = vmul.f32 %v4473_v1, %v2413_v4  ;;  %v2406_v25 = vmul.f32 %v4484_v28, %v2398_v54 }
 0x2e1   : > { %v2434_v57 = vmul.f32 %v4461_v7, %v2426_v3  ;;  %v2427_v6 = vadd.f32 -0.28449672, %v2419_v19  ;;  %v2441_v2 = vadd.f32 0.2548296, %v2433_v17  ;;  %v2420_v48 = vmul.f32 %v4477_v56, %v2412_v37 }
 0x2e2   : > { %v2440_v12 = vadd.f32 0.2548296, %v2432_v31  ;;  %v2447_v35 = vmul.f32 %v4450_v61, %v2439_v22  ;;  %v2429_v58 = vadd.f32 -0.28449672, %v2421_v13  ;;  %v2414_v16 = vadd.f32 1.4214138, %v2406_v25  ;;  %v3461_v61 = vpop.eup %3460 }
 0x2e3   : > { %v2442_v33 = vadd.f32 0.2548296, %v2434_v57  ;;  %v2435_v27 = vmul.f32 %v4467_v32, %v2427_v6  ;;  %3468 = vpow2.f32 %v2485_v47  ;;  %v2449_v18 = vmul.f32 %v4453_v15, %v2441_v2  ;;  %v3463_v46 = vpop.eup %3462 }
 0x2e4   : > { %v2448_v38 = vmul.f32 %v4457_v42, %v2440_v12  ;;  %v2487_v62 = vmul.f32 %v3455_v52, %v2447_v35  ;;  %v2437_v14 = vmul.f32 %v4473_v1, %v2429_v58  ;;  %v2428_v29 = vadd.f32 -0.28449672, %v2420_v48  ;;  %v3465_v3 = vpop.eup %3464 }
 0x2e5   : > { %v2450_v42 = vmul.f32 %v4461_v7, %v2442_v33  ;;  %v2443_v24 = vadd.f32 0.2548296, %v2435_v27  ;;  %v2422_v31 = vmul.f32 %v4484_v28, %v2414_v16  ;;  %v2489_v21 = vmul.f32 %v3457_v59, %v2449_v18  ;;  %v3467_v57 = vpop.eup %3466 }
 0x2e6   : > { %v2488_v36 = vmul.f32 %v3459_v8, %v2448_v38  ;;  %v2445_v63 = vadd.f32 0.2548296, %v2437_v14  ;;  %v2436_v22 = vmul.f32 %v4477_v56, %v2428_v29  ;;  %v2495_v55 = vsub.f32 1.0, %v2487_v62 }
 0x2e7   : > { %v2451_v53 = vmul.f32 %v4467_v32, %v2443_v24  ;;  %v2490_v17 = vmul.f32 %v3461_v61, %v2450_v42  ;;  %v2430_v51 = vadd.f32 -0.28449672, %v2422_v31  ;;  %v2497_v35 = vsub.f32 1.0, %v2489_v21 }
 0x2e8   : > { %v2496_v20 = vsub.f32 1.0, %v2488_v36  ;;  %v2453_v45 = vmul.f32 %v4473_v1, %v2445_v63  ;;  %v2444_v15 = vadd.f32 0.2548296, %v2436_v22  ;;  %v2511_v44 = vsub.f32 0.0, %v2495_v55 }
 0x2e9   : > { %v2491_v7 = vmul.f32 %v3463_v46, %v2451_v53  ;;  %v2498_v54 = vsub.f32 1.0, %v2490_v17  ;;  %v2438_v52 = vmul.f32 %v4484_v28, %v2430_v51  ;;  %v2328_v37 = vmul.f32 0.5, %v4410_v0 }
 0x2ea   : > { %v2512_v19 = vsub.f32 0.0, %v2496_v20  ;;  %v2493_v4 = vmul.f32 %v3465_v3, %v2453_v45  ;;  %v2452_v32 = vmul.f32 %v4477_v56, %v2444_v15  ;;  %v2519_v13 = vsel %vm2503_vm1, %v2495_v55, %v2511_v44 }
 0x2eb   : > { %v2499_v12 = vsub.f32 1.0, %v2491_v7  ;;  %v2446_v6 = vadd.f32 0.2548296, %v2438_v52  ;;  %v2514_v25 = vsub.f32 0.0, %v2498_v54  ;;  %v2513_v27 = vsub.f32 0.0, %v2497_v35 }
 0x2ec   : > { %v2501_v38 = vsub.f32 1.0, %v2493_v4  ;;  %v2492_v33 = vmul.f32 %v3467_v57, %v2452_v32  ;;  %v2520_v59 = vsel %vm2504_vm2, %v2496_v20, %v2512_v19  ;;  %v2527_v48 = vadd.f32 1.0, %v2519_v13  ;;  %v3264_v32 = vld [vmem:[%s3650_s30] sm:$0xff]   ;;  %s353_s30 = scalar_lea.vmem [#allocation4], %s2989_s29 }
 0x2ed   : > { %v2515_v47 = vsub.f32 0.0, %v2499_v12  ;;  %v2454_v8 = vmul.f32 %v4484_v28, %v2446_v6  ;;  %v2528_v41 = vadd.f32 1.0, %v2520_v59  ;;  %v2331_v16 = vmul.f32 0.5, %v4424_v39  ;;  %s2923_s12 = sshll.u32 %s353_s30, 4  ;;  %s4541_s12 = int_to_ptr.vmem [resolvable:$true] %s2923_s12 }
 0x2ee   : > { %v2517_v56 = vsub.f32 0.0, %v2501_v38  ;;  %v2500_v2 = vsub.f32 1.0, %v2492_v33  ;;  %v2522_v62 = vsel %vm2506_vm4, %v2498_v54, %v2514_v25  ;;  %v2332_v28 = vmul.f32 0.5, %v4431_v10  ;;  %s3470_s26 = scalar_lea.vmem %s4541_s12, 256  ;;  %p3477_p0 = scmp.lt.s32.totalorder %s4541_s12, %s3475_s27 }
 0x2ef   : > { %v2523_v1 = vsel %vm2507_vm0, %v2499_v12, %v2515_v47  ;;  %v2521_v18 = vsel %vm2505_vm3, %v2497_v35, %v2513_v27  ;;  %v2536_v43 = vmul.f32 %v2528_v41, %v2328_v37  ;;  %v2535_v53 = vmul.f32 %v2527_v48, %v2327_v5  ;;  %v3256_v47 = vld [vmem:[%s4592_s9] ss:$0 sm:$0xff]  ;;  %p3471_p11 = scmp.ne.s32.totalorder %s4541_s12, %s3470_s26  ;;  %p3478_p1 = scmp.lt.s32.totalorder %s3476_s1, %s3470_s26 }
 0x2f0   : > { %v3469_v50 = vpop.eup %3468  ;;  %v2531_v30 = vadd.f32 1.0, %v2523_v1  ;;  %v2516_v36 = vsub.f32 0.0, %v2500_v2  ;;  %v2525_v61 = vsel %vm2509_vm5, %v2501_v38, %v2517_v56  ;;  %v2530_v20 = vadd.f32 1.0, %v2522_v62 }
 0x2f1   : > { %v2494_v58 = vmul.f32 %v3469_v50, %v2454_v8  ;;  %v2533_v29 = vadd.f32 1.0, %v2525_v61  ;;  %v2529_v39 = vadd.f32 1.0, %v2521_v18  ;;  %v2333_v63 = vmul.f32 0.5, %v4429_v60  ;;  %p3472_p12 = pnand %p3471_p11, %p3630_p5  ;;  %p3479_p2 = por %p3478_p1, %p3477_p0 }
 0x2f2   : > { %v2524_v0 = vsel %vm2508_vm6, %v2500_v2, %v2516_v36  ;;  %v2539_v14 = vmul.f32 %v2531_v30, %v2331_v16  ;;  %v2330_v31 = vmul.f32 0.5, %v4412_v26  ;;  %v2329_v55 = vmul.f32 0.5, %v4402_v23 }
 0x2f3   : > { %v2532_v42 = vadd.f32 1.0, %v2524_v0  ;;  %v2502_v24 = vsub.f32 1.0, %v2494_v58  ;;  %v2541_v17 = vmul.f32 %v2533_v29, %v2333_v63  ;;  %v3265_v38 = vunpack.c.l.bf16 %v3264_v32  ;;  %p3473_p13 = pneg %p3472_p12 }
 0x2f4   : > { %v2543_v40 = vpack.c.bf16 %v2539_v14, %v2535_v53  ;;  %v2538_v7 = vmul.f32 %v2530_v20, %v2330_v31  ;;  %v2537_v49 = vmul.f32 %v2529_v39, %v2329_v55  ;;  %v3266_v13 = vunpack.c.h.bf16 %v3264_v32 }
 0x2f5   : > { %v2540_v9 = vmul.f32 %v2532_v42, %v2332_v28  ;;  %v2518_v46 = vsub.f32 0.0, %v2502_v24  ;;  %p3480_p3 = pnand %p3479_p2, %p3473_p13 }
 0x2f6   : > { %v2545_v60 = vpack.c.bf16 %v2541_v17, %v2537_v49 }
 0x2f7   : > { %v2526_v10 = vsel %vm2510_vm7, %v2502_v24, %v2518_v46  ;;  %v2544_v22 = vpack.c.bf16 %v2540_v9, %v2536_v43 }
 0x2f8   : > { %v2534_v3 = vadd.f32 1.0, %v2526_v10 }
 0x2f9   : > { %2842 = vmatprep.mubr.bf16.mxu0 %v2544_v22 }
 0x2fa   : > { %v2542_v21 = vmul.f32 %v2534_v3, %v2334_v34  ;;  %2843 = vmatmul.mubr.bf16.vlgmr.msra.gmra.mxu0 %v2543_v40 }
 0x2fc   : > { %v2546_v45 = vpack.c.bf16 %v2542_v21, %v2538_v7 }
 0x2fe   : > { %2883 = vmatprep.mubr.bf16.mxu1 %v2546_v45 }
 0x2ff   : > { %2884 = vmatmul.mubr.bf16.vlgmr.msra.gmra.mxu1 %v2545_v60 }
 0x3ba   : > { %v3283_v15 = vpop.f32.mrf.mxu0 }
 0x3bc   : > { %v3284_v26 = vpop.f32.mrf.mxu0 }
 0x3bd   : > { %v3285_v51 = vadd.f32 %v3284_v26, %v3283_v15 }
 0x3be   : > { %v3286_v23 = vpop.f32.mrf.mxu0 }
 0x3bf   : > { %v3305_v12 = vpop.f32.mrf.mxu1  ;;  %v2845_v57 = vadd.f32 %v3285_v51, %v3223_v11 }
 0x3c0   : > { %v3287_v19 = vpop.f32.mrf.mxu0 }
 0x3c1   : > { %v3306_v4 = vpop.f32.mrf.mxu1  ;;  %v3288_v44 = vadd.f32 %v3287_v19, %v3286_v23 }
 0x3c2   : > { %v3307_v54 = vadd.f32 %v3306_v4, %v3305_v12 }
 0x3c3   : > { %v3308_v52 = vpop.f32.mrf.mxu1  ;;  %v2848_v33 = vadd.f32 %v3288_v44, %v3223_v11 }
 0x3c4   : > { %v2886_v35 = vadd.f32 %v3307_v54, %v2845_v57 }
 0x3c5   : > { %v3309_v1 = vpop.f32.mrf.mxu1 }
 0x3c6   : > { %v2903_v6 = vmul.f32 %v3256_v47, %v2886_v35  ;;  %v3310_v59 = vadd.f32 %v3309_v1, %v3308_v52 }
 0x3c8   : > { %v2905_v56 = vadd.f32 %v3265_v38, %v2903_v6  ;;  %v2889_v2 = vadd.f32 %v3310_v59, %v2848_v33 }
 0x3ca   : > { %2907 = vst [vmem:[%s353_s30] sm:$0xff] %v2905_v56  ;;  %v2904_v37 = vmul.f32 %v3256_v47, %v2889_v2 }
 0x3cc   : > { %v2906_v25 = vadd.f32 %v3266_v13, %v2904_v37 }
 0x3ce   : > { %2908 = vst [vmem:[%s353_s30 + $0x8] sm:$0xff] %v2906_v25 }
 0x3cf   : > { %3483 = shalt.err (!%p3480_p3)
}
 0x3d0   : > { %s3484_s0 = scalar_lea.hbm %s4539_s21, 256  ;;  %s3488_s11 = scalar_lea.hbm %s4593_s10, 512 }
 0x3d1   : > { %p3485_p4 = scmp.ne.s32.totalorder %s4539_s21, %s3484_s0  ;;  %p3489_p9 = scmp.lt.s32.totalorder %s4539_s21, %s4593_s10 }
 0x3d2   : > { %p3490_p10 = scmp.lt.s32.totalorder %s3488_s11, %s3484_s0 }
 0x3d3   : > { %p3486_p7 = pnand %p3485_p4, %p3630_p5 }
 0x3d4   : > { %p3491_p11 = por %p3490_p10, %p3489_p9 }
 0x3d5   : > { %p3487_p8 = pneg %p3486_p7 }
 0x3d7   : > { %p3492_p12 = pnand %p3491_p11, %p3487_p8 }
 0x3d9   : > { %3495 = shalt.err (!%p3492_p12)
}
 0x3da   : > { %s3535_s20 = smov 128   ;;  %s3536_s26 = smov 8  }
 0x3db   : > { %3311 = dma.vmem_to_hbm [thread:$0]  (%p3630_p5), %s4541_s12, 256, %s4539_s21, %s4543_s25, %s3535_s20, %s3535_s20, %s3536_s26  }
 0x3dc PF: > { %p3317_p13 = scmp.ge.s32.totalorder %s3530_s16, 2  ;;  %s2938_s17 = sand.u32 1, %s3518_s13  }
 0x3dd   : > { %s2939_s27 = scalar_lea.sflag [#allocation5], %s2938_s17 }
 0x3de   : > { %p3314_p0 = pnand %p3317_p13, %p3634_p6 }
 0x3e0   : > { %p3315_p1 = pneg %p3314_p0 }
 0x3e2   : > { %3513 = dma.done.wait (%p3315_p1), %s2939_s27, 256  }
 0x3e3   : > { %3515 = vsyncadd (%p3315_p1), %s2939_s27, 4294967040  ;;  %p20_p2 = scmp.ge.s32.totalorder %s3617_s19, 4   ;;  %s4605_s13 = smov %s3522_s14 }
 0x3e4   : > { %s4606_s14 = smov %s3526_s15  ;;  %s4607_s15 = smov %s3628_s22 }
 0x3e5   : > { %s4608_s16 = smov %s3617_s19  ;;  %22 = sbr.rel (!%p20_p2) target bundleno = 6 (0x6), region = 104 }
 0x3ea   :  { %2944 = vsyncpa [#allocation5], 1 }
 0x3eb   :  { %2946 = vsyncpa [#allocation5 + $0x1], 1 }

</bundles_post_ra>
